<compile_context>
chip_gen: v6e
topology: v6e:2x2x1
jax: 0.10.0
libtpu: 0.0.40
codegen_flags: <defaults>
</compile_context>

<pallas_src>
import functools
import numpy as np
import jax
import jax.numpy as jnp
from jax.experimental import pallas as pl
from jax.experimental.pallas import tpu as pltpu


def _edge_kernel(x_ref, d_ref, freq_ref, w_ref, b_ref, out_ref,
                 *, cutoff, p, ea, eb, ec, sqrt2):
    # One fused matmul: [TE, 2*emb+R] @ [2*emb+R, emb] + [1, emb]
    m = (jnp.dot(x_ref[...], w_ref[...], preferred_element_type=jnp.float32)
         + b_ref[...])

    # envelope * bessel basis on the scaled distance (width-1 / width-R VPU tail)
    x = d_ref[...] * (1.0 / cutoff)               # [TE, 1]
    inv_x = 1.0 / x                               # reused for env and bessel
    x_p_0 = x ** (p - 1)
    x_p_1 = x_p_0 * x
    x_p_2 = x_p_1 * x
    env = inv_x + ea * x_p_0 + eb * x_p_1 + ec * x_p_2          # [TE, 1]
    rbf_env = (sqrt2 * env) * inv_x * jnp.sin(x * freq_ref[...])  # [TE, R]

    # single fused store (one output DMA stream)
    out_ref[...] = jnp.concatenate(
        [m, rbf_env], axis=-1).astype(out_ref.dtype)


def embedding_layer_forward(Z, src, dst, rbf, d, params, *, cutoff,
                            envelope_exponent, tile_e=None):
    emb_tab = params["embedding"]                 # [num_atom_types, emb]
    emb = emb_tab.shape[1]
    E, R = rbf.shape

    # --- glue: node embedding lookup + per-edge gathers (data-dependent) ---
    h = jnp.take(emb_tab, Z, axis=0)              # [N, emb]
    h_src = h[src]                                # [E, emb]
    h_dst = h[dst]                                # [E, emb]

    # --- fold dense_rbf into dense; build ONE fused weight / bias ---
    w_rbf = params["w_rbf"]                       # [R, emb]
    b_rbf = params["b_rbf"]                       # [emb]
    w_dense = params["w_dense"]                   # [3*emb, emb]
    w1, w2, w3 = w_dense[:emb], w_dense[emb:2 * emb], w_dense[2 * emb:]
    b_dense = params["b_dense"]                   # [emb]

    w_rbf3 = w_rbf @ w3                           # [R, emb]
    w_fused = jnp.concatenate([w1, w2, w_rbf3], axis=0)   # [2*emb+R, emb]
    b_fused = (b_rbf @ w3 + b_dense).reshape(1, emb)       # [1, emb]

    # pre-concatenated edge activations: [E, 2*emb+R]
    x_edges = jnp.concatenate(
        [h_src, h_dst, rbf.astype(jnp.float32)], axis=-1)
    K = 2 * emb + R

    # bessel basis frequencies f_n(x) = sqrt(2) * sin(n*pi*x) / x, n = 1..R
    freqs = (jnp.arange(1, R + 1, dtype=jnp.float32) * jnp.pi).reshape(1, R)
    d2 = d.reshape(E, 1).astype(jnp.float32)

    # Envelope coefficients
    p = envelope_exponent + 1
    ea = -(p + 1) * (p + 2) / 2
    eb = p * (p + 2)
    ec = -p * (p + 1) / 2

    kern = functools.partial(
        _edge_kernel, cutoff=float(cutoff), p=p,
        ea=float(ea), eb=float(eb), ec=float(ec), sqrt2=float(np.sqrt(2.0)))

    # Large edge tile: per-edge working set is tiny (~0.5 KB), so a single
    # block (or 1024-row tiles for big E) removes per-step pipeline overhead
    # while staying far under the scoped-VMEM limit on v5e/v6e/v7x.
    if tile_e is None:
        tile_e = E if E <= 1024 else 1024
    assert E % tile_e == 0, "E must be divisible by tile_e"
    grid = (E // tile_e,)

    def edge_spec(feat):
        return pl.BlockSpec((tile_e, feat), lambda i: (i, 0))

    def full_spec(shape):
        return pl.BlockSpec(shape, lambda i: (0,) * len(shape))

    out_fused = pl.pallas_call(
        kern,
        out_shape=jax.ShapeDtypeStruct((E, emb + R), jnp.float32),
        grid=grid,
        in_specs=[edge_spec(K),            # fused edge activations
                  edge_spec(1),            # distances
                  full_spec((1, R)),       # bessel frequencies
                  full_spec((K, emb)),     # fused weight
                  full_spec((1, emb))],    # fused bias
        out_specs=pl.BlockSpec((tile_e, emb + R), lambda i: (i, 0)),
        compiler_params=pltpu.CompilerParams(
            dimension_semantics=("parallel",)),
    )(x_edges, d2, freqs, w_fused, b_fused)

    m = out_fused[:, :emb]
    rbf_env = out_fused[:, emb:]
    return h, m, rbf_env


def reference_forward(Z, src, dst, rbf, d, params, *, cutoff, envelope_exponent):
    emb_tab = params["embedding"]
    R = rbf.shape[1]
    h = emb_tab[Z]
    rbf_proj = rbf @ params["w_rbf"] + params["b_rbf"]
    m_in = jnp.concatenate([h[src], h[dst], rbf_proj], axis=-1)
    m = m_in @ params["w_dense"] + params["b_dense"]
    x = d / cutoff
    p = envelope_exponent + 1
    ea = -(p + 1) * (p + 2) / 2
    eb = p * (p + 2)
    ec = -p * (p + 1) / 2
    env = 1.0 / x + ea * x ** (p - 1) + eb * x ** p + ec * x ** (p + 1)
    freqs = jnp.arange(1, R + 1, dtype=jnp.float32) * jnp.pi
    bes = np.sqrt(2.0) * jnp.sin(x[:, None] * freqs[None, :]) / x[:, None]
    rbf_env = env[:, None] * bes
    return h, m, rbf_env


def make_params(key, *, emb_size, num_radial, num_atom_types=95):
    k0, k1, k2, k3, k4 = jax.random.split(key, 5)
    # embedding: uniform(-sqrt(3), sqrt(3))
    embedding = jax.random.uniform(k0, (num_atom_types, emb_size),
                                   minval=-np.sqrt(3.0), maxval=np.sqrt(3.0),
                                   dtype=jnp.float32)
    # TODO(synk): GlorotOrthogonal replaced by deterministic Glorot-scaled normal init.
    w_rbf = (jax.random.normal(k1, (num_radial, emb_size), dtype=jnp.float32)
             * np.sqrt(2.0 / (num_radial + emb_size)))
    b_rbf = jnp.zeros((emb_size,), jnp.float32)
    w_dense = (jax.random.normal(k2, (3 * emb_size, emb_size), dtype=jnp.float32)
               * np.sqrt(2.0 / (4 * emb_size)))
    b_dense = jnp.zeros((emb_size,), jnp.float32)
    return {"embedding": embedding, "w_rbf": w_rbf, "b_rbf": b_rbf,
            "w_dense": w_dense, "b_dense": b_dense}


if __name__ == "__main__":
    emb_size = 32
    num_radial = 8
    num_atom_types = 95
    cutoff = 5.0
    envelope_exponent = 5
    N = 16            # nodes
    E = 128           # edges

    key = jax.random.PRNGKey(0)
    kp, kz, ks, kd, kr, kdist = jax.random.split(key, 6)

    params = make_params(kp, emb_size=emb_size, num_radial=num_radial,
                         num_atom_types=num_atom_types)

    Z = jax.random.randint(kz, (N,), 0, num_atom_types)
    src = jax.random.randint(ks, (E,), 0, N)
    dst = jax.random.randint(kd, (E,), 0, N)
    rbf = jax.random.normal(kr, (E, num_radial), dtype=jnp.float32)
    d = jax.random.uniform(kdist, (E,), minval=0.5, maxval=cutoff,
                           dtype=jnp.float32)
    # NOTE: 1/x terms diverge as d -> 0; real data with zero-length edges must
    # be guarded upstream (test range keeps d >= 0.5, matching the reference).

    h, m, rbf_env = embedding_layer_forward(
        Z, src, dst, rbf, d, params,
        cutoff=cutoff, envelope_exponent=envelope_exponent)
    jax.block_until_ready((h, m, rbf_env))

    h_ref, m_ref, env_ref = reference_forward(
        Z, src, dst, rbf, d, params,
        cutoff=cutoff, envelope_exponent=envelope_exponent)

    np.testing.assert_allclose(np.asarray(h), np.asarray(h_ref), rtol=1e-5, atol=1e-5)
    np.testing.assert_allclose(np.asarray(m), np.asarray(m_ref), rtol=1e-4, atol=1e-4)
    np.testing.assert_allclose(np.asarray(rbf_env), np.asarray(env_ref), rtol=1e-4, atol=1e-4)

    print("KERNEL_OK")
</pallas_src>

<mosaic_0001>
module attributes {stable_mosaic.version = 11 : i64} {
  func.func @_edge_kernel(%arg0: i32, %arg1: memref<128x72xf32, #tpu.memory_space<vmem>>, %arg2: memref<128x1xf32, #tpu.memory_space<vmem>>, %arg3: memref<1x8xf32, #tpu.memory_space<vmem>>, %arg4: memref<72x32xf32, #tpu.memory_space<vmem>>, %arg5: memref<1x32xf32, #tpu.memory_space<vmem>>, %arg6: memref<128x40xf32, #tpu.memory_space<vmem>>) attributes {dimension_semantics = [#tpu.dimension_semantics<parallel>], iteration_bounds = array<i64: 1>, scalar_prefetch = 0 : i64, scratch_operands = 0 : i64, tpu.core_type = #tpu.core_type<tc>, window_params = [{transform_indices = @transform_0, window_bounds = array<i64: 128, 72>}, {transform_indices = @transform_1, window_bounds = array<i64: 128, 1>}, {pipeline_mode = #tpu.pipeline_mode<synchronous>, transform_indices = @transform_2, window_bounds = array<i64: 1, 8>}, {pipeline_mode = #tpu.pipeline_mode<synchronous>, transform_indices = @transform_3, window_bounds = array<i64: 72, 32>}, {pipeline_mode = #tpu.pipeline_mode<synchronous>, transform_indices = @transform_4, window_bounds = array<i64: 1, 32>}, {transform_indices = @transform_5, window_bounds = array<i64: 128, 40>}]} {
    %c0 = arith.constant 0 : index
    %c0_0 = arith.constant 0 : index
    %0 = vector.load %arg1[%c0, %c0_0] : memref<128x72xf32, #tpu.memory_space<vmem>>, vector<128x72xf32>
    %c0_1 = arith.constant 0 : index
    %c0_2 = arith.constant 0 : index
    %1 = vector.load %arg4[%c0_1, %c0_2] : memref<72x32xf32, #tpu.memory_space<vmem>>, vector<72x32xf32>
    %cst = arith.constant dense<0.000000e+00> : vector<128x32xf32>
    %2 = tpu.matmul %0, %1, %cst {dimension_numbers = #tpu.dot_dimension_numbers<[1], [0], [0], [1], [0, 0, 1, 1], [], []>} : vector<128x72xf32>, vector<72x32xf32>, vector<128x32xf32> -> vector<128x32xf32>
    %c0_3 = arith.constant 0 : index
    %c0_4 = arith.constant 0 : index
    %3 = vector.load %arg5[%c0_3, %c0_4] : memref<1x32xf32, #tpu.memory_space<vmem>>, vector<1x32xf32>
    %4 = vector.broadcast %3 : vector<1x32xf32> to vector<128x32xf32>
    %5 = arith.addf %2, %4 : vector<128x32xf32>
    %c0_5 = arith.constant 0 : index
    %c0_6 = arith.constant 0 : index
    %6 = vector.load %arg2[%c0_5, %c0_6] : memref<128x1xf32, #tpu.memory_space<vmem>>, vector<128x1xf32>
    %cst_7 = arith.constant 2.000000e-01 : f32
    %7 = vector.broadcast %cst_7 : f32 to vector<128x1xf32>
    %8 = arith.mulf %6, %7 : vector<128x1xf32>
    %cst_8 = arith.constant 1.000000e+00 : f32
    %9 = vector.broadcast %cst_8 : f32 to vector<128x1xf32>
    %10 = arith.divf %9, %8 : vector<128x1xf32>
    %11 = arith.mulf %8, %8 : vector<128x1xf32>
    %12 = arith.mulf %11, %11 : vector<128x1xf32>
    %13 = arith.mulf %8, %12 : vector<128x1xf32>
    %14 = arith.mulf %13, %8 : vector<128x1xf32>
    %15 = arith.mulf %14, %8 : vector<128x1xf32>
    %cst_9 = arith.constant -2.800000e+01 : f32
    %16 = vector.broadcast %cst_9 : f32 to vector<128x1xf32>
    %17 = arith.mulf %16, %13 : vector<128x1xf32>
    %18 = arith.addf %10, %17 : vector<128x1xf32>
    %cst_10 = arith.constant 4.800000e+01 : f32
    %19 = vector.broadcast %cst_10 : f32 to vector<128x1xf32>
    %20 = arith.mulf %19, %14 : vector<128x1xf32>
    %21 = arith.addf %18, %20 : vector<128x1xf32>
    %cst_11 = arith.constant -2.100000e+01 : f32
    %22 = vector.broadcast %cst_11 : f32 to vector<128x1xf32>
    %23 = arith.mulf %22, %15 : vector<128x1xf32>
    %24 = arith.addf %21, %23 : vector<128x1xf32>
    %cst_12 = arith.constant 1.41421354 : f32
    %25 = vector.broadcast %cst_12 : f32 to vector<128x1xf32>
    %26 = arith.mulf %25, %24 : vector<128x1xf32>
    %27 = arith.mulf %26, %10 : vector<128x1xf32>
    %c0_13 = arith.constant 0 : index
    %c0_14 = arith.constant 0 : index
    %28 = vector.load %arg3[%c0_13, %c0_14] : memref<1x8xf32, #tpu.memory_space<vmem>>, vector<1x8xf32>
    %29 = vector.broadcast %8 : vector<128x1xf32> to vector<128x8xf32>
    %30 = vector.broadcast %28 : vector<1x8xf32> to vector<128x8xf32>
    %31 = arith.mulf %29, %30 : vector<128x8xf32>
    %32 = math.sin %31 : vector<128x8xf32>
    %33 = vector.broadcast %27 : vector<128x1xf32> to vector<128x8xf32>
    %34 = arith.mulf %33, %32 : vector<128x8xf32>
    %35 = tpu.concatenate %5, %34 in 1 : vector<128x32xf32>, vector<128x8xf32> -> vector<128x40xf32>
    %c0_15 = arith.constant 0 : index
    %c0_16 = arith.constant 0 : index
    %36 = vector.load %arg6[%c0_15, %c0_16] : memref<128x40xf32, #tpu.memory_space<vmem>>, vector<128x40xf32>
    tpu.vector_store %arg6[%c0_15, %c0_16], %35 {strides = array<i32>} : memref<128x40xf32, #tpu.memory_space<vmem>>, vector<128x40xf32>,
    return
  }
  func.func @transform_0(%arg0: i32) -> (i32, i32) {
    %c0_i32 = arith.constant 0 : i32
    %c0_i32_0 = arith.constant 0 : i32
    return %arg0, %c0_i32 : i32, i32
  }
  func.func @transform_1(%arg0: i32) -> (i32, i32) {
    %c0_i32 = arith.constant 0 : i32
    %c0_i32_0 = arith.constant 0 : i32
    return %arg0, %c0_i32 : i32, i32
  }
  func.func @transform_2(%arg0: i32) -> (i32, i32) {
    %c0_i32 = arith.constant 0 : i32
    %c0_i32_0 = arith.constant 0 : i32
    %c0_i32_1 = arith.constant 0 : i32
    return %c0_i32, %c0_i32_0 : i32, i32
  }
  func.func @transform_3(%arg0: i32) -> (i32, i32) {
    %c0_i32 = arith.constant 0 : i32
    %c0_i32_0 = arith.constant 0 : i32
    %c0_i32_1 = arith.constant 0 : i32
    return %c0_i32, %c0_i32_0 : i32, i32
  }
  func.func @transform_4(%arg0: i32) -> (i32, i32) {
    %c0_i32 = arith.constant 0 : i32
    %c0_i32_0 = arith.constant 0 : i32
    %c0_i32_1 = arith.constant 0 : i32
    return %c0_i32, %c0_i32_0 : i32, i32
  }
  func.func @transform_5(%arg0: i32) -> (i32, i32) {
    %c0_i32 = arith.constant 0 : i32
    %c0_i32_0 = arith.constant 0 : i32
    return %arg0, %c0_i32 : i32, i32
  }
}

</mosaic_0001>

<bundles_post_ra>
// kernel: tpu_custom_call.1
= control target key start
LH: loop header
LB: loop body
LE: loop exit
PB: predicated region body
PF: predicated region fallthrough
CT: control target
= control target key end

     0   :  { %v2820_v0 = vmov 0   ;;  %vm52_vm0 = vcmask 588800   ;;  %s5329_s1 = inlined_call_operand.vmem [shape: f32[128,1], index: 1, kind: input, shape index: {}]   ;;  %s5330_s3 = inlined_call_operand.vmem [shape: f32[72,32], index: 3, kind: input, shape index: {}]   ;;  %s5331_s0 = inlined_call_operand.vmem [shape: f32[128,72], index: 0, kind: input, shape index: {}]   ;;  %s5332_s2 = inlined_call_operand.vmem [shape: f32[1,8], index: 2, kind: input, shape index: {}]   ;;  %s5333_s4 = inlined_call_operand.vmem [shape: f32[1,32], index: 4, kind: input, shape index: {}]   ;;  %s5334_s5 = inlined_call_operand.vmem [shape: f32[128,40], index: 5, kind: output, shape index: {}]  }
   0x1   :  { %2723 = vset.pattern.permute.xlu1 %v2820_v0  ;;  %2722 = vset.pattern.permute.xlu0 %v2820_v0  ;;  %v248_v1 = vld [vmem:[%s5329_s1 + $0x10] sm:$0xff]  ;;  %v246_v2 = vld [vmem:[%s5329_s1] sm:$0xff]  ;;  %v249_v3 = vld [vmem:[%s5329_s1 + $0x18] sm:$0xff] }
   0x2   :  { %v2867_v4 = vmul.f32 0.2, %v248_v1  ;;  %v262_v5 = vmul.f32 0.2, %v246_v2  ;;  %v2869_v6 = vmul.f32 0.2, %v249_v3 }
   0x3   :  { %v247_v7 = vld [vmem:[%s5329_s1 + $0x8] sm:$0xff]  ;;  %v250_v9 = vld [vmem:[%s5329_s1 + $0x20] sm:$0xff]  ;;  %v253_v13 = vld [vmem:[%s5329_s1 + $0x38] sm:$0xff] }
   0x4   :  { %v251_v8 = vld [vmem:[%s5329_s1 + $0x28] sm:$0xff]  ;;  %531 = vperm.xlu1 %2723, %v2867_v4   ;;  %521 = vperm.xlu0 %2722, %v262_v5   ;;  %v2881_v10 = vmul.f32 0.2, %v247_v7  ;;  %v2885_v12 = vmul.f32 0.2, %v250_v9  ;;  %2724 = vrcp.f32 %v262_v5  ;;  %v252_v14 = vld [vmem:[%s5329_s1 + $0x30] sm:$0xff]  ;;  %v310_v16 = vmul.f32 %v262_v5, %v262_v5 }
   0x5   :  { %v2883_v11 = vmul.f32 0.2, %v251_v8  ;;  %v255_v15 = vld [vmem:[%s5329_s1 + $0x48] sm:$0xff]  ;;  %2726 = vrcp.f32 %v2869_v6  ;;  %v313_v17 = vmul.f32 %v2869_v6, %v2869_v6  ;;  %v312_v18 = vmul.f32 %v2867_v4, %v2867_v4  ;;  %v254_v22 = vld [vmem:[%s5329_s1 + $0x40] sm:$0xff]  ;;  %v257_v23 = vld [vmem:[%s5329_s1 + $0x58] sm:$0xff] }
   0x6   :  { %v2901_v19 = vmul.f32 0.2, %v253_v13  ;;  %v2903_v20 = vmul.f32 0.2, %v252_v14  ;;  %v2905_v21 = vmul.f32 0.2, %v255_v15  ;;  %2728 = vrcp.f32 %v2881_v10 }
   0x7   :  { %v256_v24 = vld [vmem:[%s5329_s1 + $0x50] sm:$0xff]  ;;  %v311_v25 = vmul.f32 %v2881_v10, %v2881_v10  ;;  %v326_v26 = vmul.f32 %v310_v16, %v310_v16  ;;  %v329_v27 = vmul.f32 %v313_v17, %v313_v17  ;;  %2730 = vrcp.f32 %v2867_v4  ;;  %v259_v32 = vld [vmem:[%s5329_s1 + $0x68] sm:$0xff]  ;;  %v258_v33 = vld [vmem:[%s5329_s1 + $0x60] sm:$0xff] }
   0x8   :  { %536 = vperm.xlu1 %2723, %v2869_v6   ;;  %526 = vperm.xlu0 %2722, %v2881_v10   ;;  %v2922_v28 = vmul.f32 0.2, %v254_v22  ;;  %v2924_v29 = vmul.f32 0.2, %v257_v23  ;;  %v2926_v30 = vmul.f32 0.2, %v256_v24  ;;  %v328_v31 = vmul.f32 %v312_v18, %v312_v18 }
   0x9   :  { %v261_v34 = vld [vmem:[%s5329_s1 + $0x78] sm:$0xff]  ;;  %v327_v35 = vmul.f32 %v311_v25, %v311_v25  ;;  %v342_v36 = vmul.f32 %v326_v26, %v262_v5  ;;  %v345_v37 = vmul.f32 %v329_v27, %v2869_v6  ;;  %2732 = vrcp.f32 %v2883_v11  ;;  %v260_v42 = vld [vmem:[%s5329_s1 + $0x70] sm:$0xff]  ;;  %v44_v47 = vld [vmem:[%s5330_s3 + $0x40] sm:$0xff] }
   0xa   :  { %v2939_v38 = vmul.f32 0.2, %v259_v32  ;;  %v2941_v39 = vmul.f32 0.2, %v258_v33  ;;  %v2943_v40 = vmul.f32 0.2, %v261_v34  ;;  %v344_v41 = vmul.f32 %v328_v31, %v2867_v4  ;;  %2590 = vmatprep.subr.mxu0 %v44_v47  ;;  %2632 = vmatprep.subr.mxu1 %v44_v47 }
   0xb   :  { %v343_v43 = vmul.f32 %v327_v35, %v2881_v10  ;;  %v358_v44 = vmul.f32 %v342_v36, %v262_v5  ;;  %v390_v45 = vmul.f32 -28.0, %v342_v36  ;;  %v361_v46 = vmul.f32 %v345_v37, %v2869_v6  ;;  %v43_v52 = vld [vmem:[%s5330_s3 + $0x38] sm:$0xff]  ;;  %2591 = vmatpush3.msra.mxu0 %v44_v47  ;;  %2641 = vmatpush3.msra.mxu1 %v44_v47  ;;  %v42_v1 = vld [vmem:[%s5330_s3 + $0x30] sm:$0xff]  ;;  %v41_v15 = vld [vmem:[%s5330_s3 + $0x28] sm:$0xff] }
   0xc   :  { %546 = vperm.xlu1 %2723, %v2883_v11   ;;  %541 = vperm.xlu0 %2722, %v2885_v12   ;;  %v2956_v48 = vmul.f32 0.2, %v260_v42  ;;  %v393_v49 = vmul.f32 -28.0, %v345_v37  ;;  %v360_v50 = vmul.f32 %v344_v41, %v2867_v4  ;;  %v392_v51 = vmul.f32 -28.0, %v344_v41  ;;  %v40_v27 = vld [vmem:[%s5330_s3 + $0x20] sm:$0xff]  ;;  %v39_v47 = vld [vmem:[%s5330_s3 + $0x18] sm:$0xff] }
   0xd   :  { %v359_v53 = vmul.f32 %v343_v43, %v2881_v10  ;;  %v391_v54 = vmul.f32 -28.0, %v343_v43  ;;  %v374_v55 = vmul.f32 %v358_v44, %v262_v5  ;;  %v422_v56 = vmul.f32 48.0, %v358_v44  ;;  %2592 = vmatprep.subr.mxu0 %v43_v52  ;;  %2633 = vmatprep.subr.mxu1 %v43_v52 }
   0xe   :  { %v377_v57 = vmul.f32 %v361_v46, %v2869_v6  ;;  %v425_v58 = vmul.f32 48.0, %v361_v46  ;;  %v376_v59 = vmul.f32 %v360_v50, %v2867_v4  ;;  %v424_v60 = vmul.f32 48.0, %v360_v50  ;;  %2593 = vmatpush3.msra.mxu0 %v43_v52  ;;  %2642 = vmatpush3.msra.mxu1 %v43_v52 }
   0xf   :  { %v375_v61 = vmul.f32 %v359_v53, %v2881_v10  ;;  %v423_v62 = vmul.f32 48.0, %v359_v53  ;;  %v454_v63 = vmul.f32 -21.0, %v374_v55  ;;  %v315_v0 = vmul.f32 %v2883_v11, %v2883_v11  ;;  %2594 = vmatprep.subr.mxu0 %v42_v1  ;;  %2634 = vmatprep.subr.mxu1 %v42_v1 }
  0x10   :  { %556 = vperm.xlu1 %2723, %v2901_v19   ;;  %551 = vperm.xlu0 %2722, %v2903_v20   ;;  %v457_v2 = vmul.f32 -21.0, %v377_v57  ;;  %v456_v3 = vmul.f32 -21.0, %v376_v59  ;;  %2734 = vrcp.f32 %v2885_v12  ;;  %v314_v4 = vmul.f32 %v2885_v12, %v2885_v12 }
  0x11   :  { %v2725_v5 = vpop.eup %2724  ;;  %v455_v6 = vmul.f32 -21.0, %v375_v61  ;;  %v331_v7 = vmul.f32 %v315_v0, %v315_v0  ;;  %2736 = vrcp.f32 %v2901_v19  ;;  %v317_v8 = vmul.f32 %v2901_v19, %v2901_v19  ;;  %2595 = vmatpush3.msra.mxu0 %v42_v1  ;;  %2643 = vmatpush3.msra.mxu1 %v42_v1 }
  0x12   :  { %v2727_v9 = vpop.eup %2726  ;;  %v406_v10 = vadd.f32 %v2725_v5, %v390_v45  ;;  %v330_v13 = vmul.f32 %v314_v4, %v314_v4  ;;  %2738 = vrcp.f32 %v2903_v20  ;;  %v316_v14 = vmul.f32 %v2903_v20, %v2903_v20  ;;  %2596 = vmatprep.subr.mxu0 %v41_v15  ;;  %2635 = vmatprep.subr.mxu1 %v41_v15 }
  0x13   :  { %v2729_v16 = vpop.eup %2728  ;;  %v409_v17 = vadd.f32 %v2727_v9, %v393_v49  ;;  %v347_v18 = vmul.f32 %v331_v7, %v2883_v11  ;;  %v333_v22 = vmul.f32 %v317_v8, %v317_v8  ;;  %2740 = vrcp.f32 %v2905_v21  ;;  %2597 = vmatpush3.msra.mxu0 %v41_v15  ;;  %2644 = vmatpush3.msra.mxu1 %v41_v15 }
  0x14   :  { %v2731_v23 = vpop.eup %2730  ;;  %566 = vperm.xlu1 %2723, %v2905_v21   ;;  %561 = vperm.xlu0 %2722, %v2922_v28   ;;  %v407_v24 = vadd.f32 %v2729_v16, %v391_v54  ;;  %v438_v25 = vadd.f32 %v422_v56, %v406_v10  ;;  %v346_v26 = vmul.f32 %v330_v13, %v2885_v12  ;;  %2742 = vrcp.f32 %v2922_v28 }
  0x15   :  { %v441_v31 = vadd.f32 %v425_v58, %v409_v17  ;;  %v408_v32 = vadd.f32 %v2731_v23, %v392_v51  ;;  %v363_v33 = vmul.f32 %v347_v18, %v2883_v11  ;;  %v395_v34 = vmul.f32 -28.0, %v347_v18  ;;  %2598 = vmatprep.subr.mxu0 %v40_v27  ;;  %2636 = vmatprep.subr.mxu1 %v40_v27 }
  0x16   :  { %v2995_v35 = vpop.eup %2732  ;;  %v439_v36 = vadd.f32 %v423_v62, %v407_v24  ;;  %v470_v37 = vadd.f32 %v454_v63, %v438_v25  ;;  %v362_v41 = vmul.f32 %v346_v26, %v2885_v12  ;;  %v394_v42 = vmul.f32 -28.0, %v346_v26  ;;  %2599 = vmatpush3.msra.mxu0 %v40_v27  ;;  %2645 = vmatpush3.msra.mxu1 %v40_v27  ;;  %v36_v24 = vld [vmem:[%s5330_s3] sm:$0xff] }
  0x17   :  { %v473_v43 = vadd.f32 %v457_v2, %v441_v31  ;;  %v440_v44 = vadd.f32 %v424_v60, %v408_v32  ;;  %v379_v45 = vmul.f32 %v363_v33, %v2883_v11  ;;  %v411_v46 = vadd.f32 %v2995_v35, %v395_v34  ;;  %2600 = vmatprep.subr.mxu0 %v39_v47  ;;  %v38_v60 = vld [vmem:[%s5330_s3 + $0x10] sm:$0xff] }
  0x18   :  { %576 = vperm.xlu1 %2723, %v2924_v29   ;;  %571 = vperm.xlu0 %2722, %v2926_v30   ;;  %v471_v49 = vadd.f32 %v455_v6, %v439_v36  ;;  %v486_v50 = vmul.f32 1.4142135, %v470_v37  ;;  %v427_v51 = vmul.f32 48.0, %v363_v33  ;;  %v378_v52 = vmul.f32 %v362_v41, %v2885_v12 }
  0x19   :  { %v489_v53 = vmul.f32 1.4142135, %v473_v43  ;;  %v472_v54 = vadd.f32 %v456_v3, %v440_v44  ;;  %v459_v55 = vmul.f32 -21.0, %v379_v45  ;;  %v426_v11 = vmul.f32 48.0, %v362_v41  ;;  %2601 = vmatpush3.msra.mxu0 %v39_v47  ;;  %2637 = vmatprep.subr.mxu1 %v39_v47  ;;  %v37_v3 = vld [vmem:[%s5330_s3 + $0x8] sm:$0xff] }
  0x1a   :  { %v487_v56 = vmul.f32 1.4142135, %v471_v49  ;;  %v3006_v57 = vmul.f32 %v2725_v5, %v486_v50  ;;  %v443_v58 = vadd.f32 %v427_v51, %v411_v46  ;;  %v458_v59 = vmul.f32 -21.0, %v378_v52  ;;  %2602 = vmatprep.subr.mxu0 %v38_v60  ;;  %2646 = vmatpush3.msra.mxu1 %v39_v47 }
  0x1b   :  { %v3011_v61 = vmul.f32 %v2727_v9, %v489_v53  ;;  %v488_v12 = vmul.f32 1.4142135, %v472_v54  ;;  %v349_v62 = vmul.f32 %v333_v22, %v2901_v19  ;;  %v332_v63 = vmul.f32 %v316_v14, %v316_v14  ;;  %2603 = vmatpush3.msra.mxu0 %v38_v60  ;;  %2638 = vmatprep.subr.mxu1 %v38_v60 }
  0x1c   :  { %586 = vperm.xlu1 %2723, %v2939_v38   ;;  %581 = vperm.xlu0 %2722, %v2941_v39   ;;  %v503_v0 = vmul.f32 %v2729_v16, %v487_v56  ;;  %v475_v1 = vadd.f32 %v459_v55, %v443_v58  ;;  %v319_v2 = vmul.f32 %v2905_v21, %v2905_v21  ;;  %2744 = vrcp.f32 %v2924_v29 }
  0x1d   :  { %v2735_v4 = vpop.eup %2734  ;;  %v3022_v5 = vmul.f32 %v2731_v23, %v488_v12  ;;  %v365_v6 = vmul.f32 %v349_v62, %v2901_v19  ;;  %v397_v7 = vmul.f32 -28.0, %v349_v62  ;;  %v348_v8 = vmul.f32 %v332_v63, %v2903_v20  ;;  %2604 = vmatprep.subr.mxu0 %v37_v3  ;;  %2647 = vmatpush3.msra.mxu1 %v38_v60 }
  0x1e   :  { %v2737_v9 = vpop.eup %2736  ;;  %v491_v10 = vmul.f32 1.4142135, %v475_v1  ;;  %v410_v13 = vadd.f32 %v2735_v4, %v394_v42  ;;  %v335_v14 = vmul.f32 %v319_v2, %v319_v2  ;;  %v318_v15 = vmul.f32 %v2922_v28, %v2922_v28  ;;  %2605 = vmatpush3.msra.mxu0 %v37_v3  ;;  %2639 = vmatprep.subr.mxu1 %v37_v3 }
  0x1f   :  { %v3028_v16 = vpop.eup %2738  ;;  %v381_v17 = vmul.f32 %v365_v6, %v2901_v19  ;;  %v413_v18 = vadd.f32 %v2737_v9, %v397_v7  ;;  %v429_v22 = vmul.f32 48.0, %v365_v6  ;;  %v364_v23 = vmul.f32 %v348_v8, %v2903_v20  ;;  %2606 = vmatprep.subr.mxu0 %v36_v24  ;;  %2648 = vmatpush3.msra.mxu1 %v37_v3 }
  0x20   :  { %v3035_v25 = vpop.eup %2740  ;;  %596 = vperm.xlu1 %2723, %v2943_v40   ;;  %591 = vperm.xlu0 %2722, %v2956_v48   ;;  %v507_v26 = vmul.f32 %v2995_v35, %v491_v10  ;;  %v442_v27 = vadd.f32 %v426_v11, %v410_v13  ;;  %v396_v19 = vmul.f32 -28.0, %v348_v8  ;;  %v351_v31 = vmul.f32 %v335_v14, %v2905_v21 }
  0x21   :  { %v3041_v32 = vpop.eup %2742  ;;  %v445_v33 = vadd.f32 %v429_v22, %v413_v18  ;;  %v461_v34 = vmul.f32 -21.0, %v381_v17  ;;  %v380_v36 = vmul.f32 %v364_v23, %v2903_v20  ;;  %v428_v37 = vmul.f32 48.0, %v364_v23  ;;  %2607 = vmatpush3.msra.mxu0 %v36_v24  ;;  %2640 = vmatprep.subr.mxu1 %v36_v24 }
  0x22   :  { %v474_v41 = vadd.f32 %v458_v59, %v442_v27  ;;  %v412_v42 = vadd.f32 %v3028_v16, %v396_v19  ;;  %v367_v43 = vmul.f32 %v351_v31, %v2905_v21  ;;  %v399_v44 = vmul.f32 -28.0, %v351_v31  ;;  %2649 = vmatpush3.msra.mxu1 %v36_v24 }
  0x23   :  { %v477_v35 = vadd.f32 %v461_v34, %v445_v33  ;;  %v460_v45 = vmul.f32 -21.0, %v380_v36  ;;  %v334_v46 = vmul.f32 %v318_v15, %v318_v15  ;;  %v321_v47 = vmul.f32 %v2924_v29, %v2924_v29 }
  0x24   :  { %2292 = vperm.xlu1 %2723, %v503_v0   ;;  %2287 = vperm.xlu0 %2722, %v3006_v57   ;;  %v490_v20 = vmul.f32 1.4142135, %v474_v41  ;;  %v444_v49 = vadd.f32 %v428_v37, %v412_v42  ;;  %v383_v50 = vmul.f32 %v367_v43, %v2905_v21  ;;  %v415_v51 = vadd.f32 %v3035_v25, %v399_v44 }
  0x25   :  { %v493_v52 = vmul.f32 1.4142135, %v477_v35  ;;  %v431_v53 = vmul.f32 48.0, %v367_v43  ;;  %v350_v54 = vmul.f32 %v334_v46, %v2922_v28  ;;  %v337_v55 = vmul.f32 %v321_v47, %v321_v47  ;;  %v20_v46 = vld [vmem:[%s5331_s0] sm:$0xff] }
  0x26   :  { %v506_v11 = vmul.f32 %v2735_v4, %v490_v20  ;;  %v476_v56 = vadd.f32 %v460_v45, %v444_v49  ;;  %v463_v58 = vmul.f32 -21.0, %v383_v50  ;;  %2746 = vrcp.f32 %v2926_v30  ;;  %v21_v50 = vld [vmem:[%s5331_s0 + $0x8] sm:$0xff]  ;;  %2608 = vmatprep.mubr.msk.f32.mxu0 %vm52_vm0, %v20_v46 }
  0x27   :  { %v509_v59 = vmul.f32 %v2737_v9, %v493_v52  ;;  %v447_v60 = vadd.f32 %v431_v53, %v415_v51  ;;  %v366_v57 = vmul.f32 %v350_v54, %v2922_v28  ;;  %v398_v12 = vmul.f32 -28.0, %v350_v54  ;;  %v28_v51 = vld [vmem:[%s5331_s0 + $0x40] sm:$0xff]  ;;  %v22_v54 = vld [vmem:[%s5331_s0 + $0x10] sm:$0xff]  ;;  %2609 = vmatmul.mubr.msk.f32.vlgmr.msra.gmra.mxu0 %vm52_vm0, %v21_v50 }
  0x28   :  { %2302 = vperm.xlu1 %2723, %v3011_v61   ;;  %2297 = vperm.xlu0 %2722, %v3022_v5   ;;  %v492_v21 = vmul.f32 1.4142135, %v476_v56  ;;  %v353_v62 = vmul.f32 %v337_v55, %v2924_v29  ;;  %v320_v63 = vmul.f32 %v2926_v30, %v2926_v30  ;;  %2748 = vrcp.f32 %v2939_v38  ;;  %v29_v55 = vld [vmem:[%s5331_s0 + $0x48] sm:$0xff]  ;;  %v3160_v50 = vld [vmem:[%s5332_s2] ss:$0 sm:$0xff] }
  0x29   :  { %v2745_v0 = vpop.eup %2744  ;;  %v479_v1 = vadd.f32 %v463_v58, %v447_v60  ;;  %v382_v2 = vmul.f32 %v366_v57, %v2922_v28  ;;  %v414_v3 = vadd.f32 %v3041_v32, %v398_v12  ;;  %v430_v4 = vmul.f32 48.0, %v366_v57  ;;  %2620 = vmatprep.mubr.msk.f32.mxu1 %vm52_vm0, %v28_v51  ;;  %2611 = vmatprep.mubr.msk.f32.mxu0 %vm52_vm0, %v22_v54 }
  0x2a   :  { %v508_v6 = vmul.f32 %v3028_v16, %v492_v21  ;;  %v369_v61 = vmul.f32 %v353_v62, %v2924_v29  ;;  %v401_v5 = vmul.f32 -28.0, %v353_v62  ;;  %v336_v7 = vmul.f32 %v320_v63, %v320_v63  ;;  %2621 = vmatmul.mubr.msk.f32.vlgmr.msra.gmra.mxu1 %vm52_vm0, %v29_v55 }
  0x2b   :  { %v495_v8 = vmul.f32 1.4142135, %v479_v1  ;;  %v446_v9 = vadd.f32 %v430_v4, %v414_v3  ;;  %v462_v10 = vmul.f32 -21.0, %v382_v2  ;;  %v323_v13 = vmul.f32 %v2939_v38, %v2939_v38  ;;  %v24_v3 = vld [vmem:[%s5331_s0 + $0x20] sm:$0xff] }
  0x2c   :  { %2312 = vperm.xlu1 %2723, %v507_v26   ;;  %2307 = vperm.xlu0 %2722, %v506_v11   ;;  %v385_v14 = vmul.f32 %v369_v61, %v2924_v29  ;;  %v417_v28 = vadd.f32 %v2745_v0, %v401_v5  ;;  %v433_v15 = vmul.f32 48.0, %v369_v61  ;;  %v352_v17 = vmul.f32 %v336_v7, %v2926_v30 }
  0x2d   :  { %v511_v16 = vmul.f32 %v3035_v25, %v495_v8  ;;  %v478_v18 = vadd.f32 %v462_v10, %v446_v9  ;;  %v339_v22 = vmul.f32 %v323_v13, %v323_v13  ;;  %2750 = vrcp.f32 %v2941_v39 }
  0x2e   :  { %v449_v23 = vadd.f32 %v433_v15, %v417_v28  ;;  %v465_v24 = vmul.f32 -21.0, %v385_v14  ;;  %v368_v27 = vmul.f32 %v352_v17, %v2926_v30  ;;  %v400_v19 = vmul.f32 -28.0, %v352_v17  ;;  %v25_v14 = vld [vmem:[%s5331_s0 + $0x28] sm:$0xff] }
  0x2f   :  { %v494_v31 = vmul.f32 1.4142135, %v478_v18  ;;  %v355_v26 = vmul.f32 %v339_v22, %v2939_v38  ;;  %v322_v29 = vmul.f32 %v2941_v39, %v2941_v39  ;;  %2752 = vrcp.f32 %v2943_v40  ;;  %v26_v22 = vld [vmem:[%s5331_s0 + $0x30] sm:$0xff] }
  0x30   :  { %2322 = vperm.xlu1 %2723, %v509_v59   ;;  %2317 = vperm.xlu0 %2722, %v508_v6   ;;  %v481_v25 = vadd.f32 %v465_v24, %v449_v23  ;;  %v384_v33 = vmul.f32 %v368_v27, %v2926_v30  ;;  %v432_v34 = vmul.f32 48.0, %v368_v27  ;;  %v325_v36 = vmul.f32 %v2943_v40, %v2943_v40  ;;  %v31_v23 = vld [vmem:[%s5331_s0 + $0x58] sm:$0xff] }
  0x31   :  { %v510_v37 = vmul.f32 %v3041_v32, %v494_v31  ;;  %v371_v41 = vmul.f32 %v355_v26, %v2939_v38  ;;  %v403_v42 = vmul.f32 -28.0, %v355_v26  ;;  %v338_v43 = vmul.f32 %v322_v29, %v322_v29 }
  0x32   :  { %v497_v44 = vmul.f32 1.4142135, %v481_v25  ;;  %v464_v35 = vmul.f32 -21.0, %v384_v33  ;;  %v341_v45 = vmul.f32 %v325_v36, %v325_v36  ;;  %2754 = vrcp.f32 %v2956_v48  ;;  %v27_v33 = vld [vmem:[%s5331_s0 + $0x38] sm:$0xff] }
  0x33   :  { %v2747_v30 = vpop.eup %2746  ;;  %v387_v47 = vmul.f32 %v371_v41, %v2939_v38  ;;  %v435_v20 = vmul.f32 48.0, %v371_v41  ;;  %v354_v49 = vmul.f32 %v338_v43, %v2941_v39  ;;  %v324_v32 = vmul.f32 %v2956_v48, %v2956_v48 }
  0x34   :  { %2332 = vperm.xlu1 %2723, %v511_v16   ;;  %2327 = vperm.xlu0 %2722, %v510_v37   ;;  %v513_v52 = vmul.f32 %v2745_v0, %v497_v44  ;;  %v416_v53 = vadd.f32 %v2747_v30, %v400_v19  ;;  %v357_v38 = vmul.f32 %v341_v45, %v2943_v40  ;;  %v23_v0 = vld [vmem:[%s5331_s0 + $0x18] sm:$0xff] }
  0x35   :  { %v2749_v11 = vpop.eup %2748  ;;  %v370_v56 = vmul.f32 %v354_v49, %v2941_v39  ;;  %v340_v58 = vmul.f32 %v324_v32, %v324_v32  ;;  %v467_v57 = vmul.f32 -21.0, %v387_v47  ;;  %v402_v62 = vmul.f32 -28.0, %v354_v49  ;;  %2612 = vmatmul.mubr.msk.f32.gmra.mxu0 %vm52_vm0, %v23_v0  ;;  %v33_v47 = vld [vmem:[%s5331_s0 + $0x68] sm:$0xff]  ;;  %v34_v49 = vld [vmem:[%s5331_s0 + $0x70] sm:$0xff]  ;;  %v35_v32 = vld [vmem:[%s5331_s0 + $0x78] sm:$0xff] }
  0x36   :  { %v448_v59 = vadd.f32 %v432_v34, %v416_v53  ;;  %v419_v60 = vadd.f32 %v2749_v11, %v403_v42  ;;  %v373_v12 = vmul.f32 %v357_v38, %v2943_v40  ;;  %2614 = vmatprep.mubr.msk.f32.mxu0 %vm52_vm0, %v24_v3 }
  0x37   :  { %v386_v21 = vmul.f32 %v370_v56, %v2941_v39  ;;  %v356_v63 = vmul.f32 %v340_v58, %v2956_v48  ;;  %v434_v4 = vmul.f32 48.0, %v370_v56  ;;  %v405_v39 = vmul.f32 -28.0, %v357_v38 }
  0x38   :  { %2342 = vperm.xlu1 %2723, %v513_v52   ;;  %v480_v1 = vadd.f32 %v464_v35, %v448_v59  ;;  %v451_v2 = vadd.f32 %v435_v20, %v419_v60  ;;  %v389_v6 = vmul.f32 %v373_v12, %v2943_v40  ;;  %v437_v13 = vmul.f32 48.0, %v373_v12  ;;  %v30_v40 = vld [vmem:[%s5331_s0 + $0x50] sm:$0xff] }
  0x39   :  { %v372_v61 = vmul.f32 %v356_v63, %v2956_v48  ;;  %v466_v10 = vmul.f32 -21.0, %v386_v21  ;;  %v404_v18 = vmul.f32 -28.0, %v356_v63  ;;  %2623 = vmatprep.mubr.msk.f32.mxu1 %vm52_vm0, %v30_v40  ;;  %2615 = vmatmul.mubr.msk.f32.gmra.mxu0 %vm52_vm0, %v25_v14 }
  0x3a   :  { %v2751_v5 = vpop.eup %2750  ;;  %v496_v7 = vmul.f32 1.4142135, %v480_v1  ;;  %v483_v8 = vadd.f32 %v467_v57, %v451_v2  ;;  %v469_v19 = vmul.f32 -21.0, %v389_v6  ;;  %2624 = vmatmul.mubr.msk.f32.gmra.mxu1 %vm52_vm0, %v31_v23  ;;  %2617 = vmatprep.mubr.msk.f32.mxu0 %vm52_vm0, %v26_v22 }
  0x3b   :  { %v418_v9 = vadd.f32 %v2751_v5, %v402_v62  ;;  %v388_v16 = vmul.f32 %v372_v61, %v2956_v48  ;;  %v436_v26 = vmul.f32 48.0, %v372_v61 }
  0x3c   :  { %v2753_v28 = vpop.eup %2752  ;;  %v512_v15 = vmul.f32 %v2747_v30, %v496_v7  ;;  %v499_v17 = vmul.f32 1.4142135, %v483_v8  ;;  %v32_v30 = vld [vmem:[%s5331_s0 + $0x60] sm:$0xff]  ;;  %s2827_s0 = smov 32  }
  0x3d   :  { %v450_v24 = vadd.f32 %v434_v4, %v418_v9  ;;  %v421_v27 = vadd.f32 %v2753_v28, %v405_v39  ;;  %v468_v36 = vmul.f32 -21.0, %v388_v16  ;;  %2618 = vmatmul.mubr.msk.f32.gmra.mxu0 %vm52_vm0, %v27_v33  ;;  %2626 = vmatprep.mubr.msk.f32.mxu1 %vm52_vm0, %v32_v30 }
  0x3e   :  { %2337 = vperm.xlu0 %2722, %v512_v15   ;;  %v515_v31 = vmul.f32 %v2749_v11, %v499_v17  ;;  %2627 = vmatmul.mubr.msk.f32.gmra.mxu1 %vm52_vm0, %v33_v47 }
  0x3f   :  { %v2755_v48 = vpop.eup %2754  ;;  %v482_v29 = vadd.f32 %v466_v10, %v450_v24  ;;  %v453_v25 = vadd.f32 %v437_v13, %v421_v27  ;;  %2629 = vmatprep.mubr.msk.f32.mxu1 %vm52_vm0, %v34_v49  ;;  %v5343_v49 = vmov 1326507024  }
  0x40   :  { %2352 = vperm.xlu1 %2723, %v515_v31   ;;  %v420_v34 = vadd.f32 %v2755_v48, %v404_v18 }
  0x41   :  { %v498_v37 = vmul.f32 1.4142135, %v482_v29  ;;  %v485_v41 = vadd.f32 %v469_v19, %v453_v25 }
  0x42   :  { %v452_v42 = vadd.f32 %v436_v26, %v420_v34  ;;  %2630 = vmatmul.mubr.msk.f32.gmra.mxu1 %vm52_vm0, %v35_v32 }
  0x43   :  { %v514_v43 = vmul.f32 %v2751_v5, %v498_v37  ;;  %v501_v44 = vmul.f32 1.4142135, %v485_v41  ;;  %v5337_v37 = vmov 2102212464  }
  0x44   :  { %v484_v35 = vadd.f32 %v468_v36, %v452_v42 }
  0x45   :  { %2347 = vperm.xlu0 %2722, %v514_v43   ;;  %v517_v45 = vmul.f32 %v2753_v28, %v501_v44 }
  0x46   :  { %v500_v46 = vmul.f32 1.4142135, %v484_v35  ;;  %v5351_v35 = vmov 920167782  }
  0x47   :  { %2362 = vperm.xlu1 %2723, %v517_v45  }
  0x48   :  { %v516_v20 = vmul.f32 %v2755_v48, %v500_v46 }
  0x4a   :  { %2357 = vperm.xlu0 %2722, %v516_v20  }
  0x7f   :  { %v532_v51 = vpop.permute.xlu1 %531  ;;  %v522_v52 = vpop.permute.xlu0 %521 }
  0x80   :  { %v3163_v53 = vmul.f32 %v3160_v50, %v532_v51  ;;  %v3166_v38 = vmul.f32 %v3160_v50, %v522_v52 }
  0x82   :  { %v832_v54 = vand.u32 2139095040, %v3163_v53  ;;  %v624_v55 = vand.u32 2139095040, %v3166_v38  ;;  %v5335_v23 = vand.u32 2147483647, %v3166_v38 }
  0x83   :  { %v537_v11 = vpop.permute.xlu1 %536  ;;  %v527_v58 = vpop.permute.xlu0 %526 }
  0x84   :  { %v833_v56 = vshrl.u32 %v832_v54, 23  ;;  %v625_v59 = vshrl.u32 %v624_v55, 23  ;;  %v3171_v60 = vmul.f32 %v3160_v50, %v537_v11  ;;  %v3174_v57 = vmul.f32 %v3160_v50, %v527_v58 }
  0x85   :  { %v3207_v33 = vand.u32 8388607, %v5335_v23 }
  0x86   :  { %v2509_v12 = vadd.s32 4294967169, %v833_v56  ;;  %v2501_v21 = vadd.s32 4294967169, %v625_v59  ;;  %v936_v62 = vand.u32 2139095040, %v3171_v60  ;;  %v728_v63 = vand.u32 2139095040, %v3174_v57 }
  0x87   :  { %v547_v1 = vpop.permute.xlu1 %546  ;;  %v542_v6 = vpop.permute.xlu0 %541  ;;  %v5336_v24 = vand.u32 2147483647, %v3174_v57 }
  0x88   :  { %v839_v0 = vadd.s32 1, %v2509_v12  ;;  %v631_v2 = vadd.s32 1, %v2501_v21  ;;  %v937_v3 = vshrl.u32 %v936_v62, 23  ;;  %v729_v4 = vshrl.u32 %v728_v63, 23 }
  0x89   :  { %v3179_v39 = vmul.f32 %v3160_v50, %v547_v1  ;;  %v3182_v5 = vmul.f32 %v3160_v50, %v542_v6  ;;  %v3216_v44 = vand.u32 8388607, %v5336_v24 }
  0x8a   :  { %vm840_vm1 = vcmp.gt.s32.totalorder %v839_v0, 0  ;;  %vm632_vm2 = vcmp.gt.s32.totalorder %v631_v2, 0  ;;  %v2513_v61 = vadd.s32 4294967169, %v937_v3  ;;  %v2505_v8 = vadd.s32 4294967169, %v729_v4 }
  0x8b   :  { %5447 = vst [vmem:[#allocation2_spill] sm:$0xff] %v3179_v39  ;;  %5448 = vst [vmem:[#allocation3_spill] sm:$0xff] %v3182_v5  ;;  %v841_v7 = vsel %vm840_vm1, %v839_v0, 0  ;;  %v1144_v9 = vand.u32 2139095040, %v3179_v39  ;;  %v557_v10 = vpop.permute.xlu1 %556  ;;  %v633_v13 = vsel %vm632_vm2, %v631_v2, 0  ;;  %v1040_v28 = vand.u32 2139095040, %v3182_v5  ;;  %v552_v16 = vpop.permute.xlu0 %551 }
  0x8c   :  { %v3185_v14 = vand.u32 31, %v841_v7  ;;  %v943_v40 = vadd.s32 1, %v2513_v61  ;;  %v735_v15 = vadd.s32 1, %v2505_v8  ;;  %v3189_v17 = vmul.f32 %v3160_v50, %v557_v10 }
  0x8d   :  { %v3191_v18 = vand.u32 31, %v633_v13  ;;  %v1145_v22 = vshrl.u32 %v1144_v9, 23  ;;  %v1041_v19 = vshrl.u32 %v1040_v28, 23  ;;  %v3200_v26 = vmul.f32 %v3160_v50, %v552_v16 }
  0x8e   :  { %5449 = vst [vmem:[#allocation4_spill] sm:$0xff] %v3189_v17  ;;  %v3196_v27 = vsub.s32 32, %v3185_v14  ;;  %vm944_vm3 = vcmp.gt.s32.totalorder %v943_v40, 0  ;;  %vm736_vm4 = vcmp.gt.s32.totalorder %v735_v15, 0  ;;  %v1352_v31 = vand.u32 2139095040, %v3189_v17 }
  0x8f   :  { %5450 = vst [vmem:[#allocation5_spill] sm:$0xff] %v3200_v26  ;;  %v567_v48 = vpop.permute.xlu1 %566  ;;  %v3203_v29 = vsub.s32 32, %v3191_v18  ;;  %v2521_v25 = vadd.s32 4294967169, %v1145_v22  ;;  %v3210_v36 = vshrl.u32 %v841_v7, 5  ;;  %v855_v41 = vshll.u32 %v5337_v37, %v3185_v14  ;;  %v562_v43 = vpop.permute.xlu0 %561 }
  0x90   :  { %v945_v42 = vsel %vm944_vm3, %v943_v40, 0  ;;  %v856_v45 = vshrl.u32 %v5351_v35, %v3196_v27  ;;  %v737_v46 = vsel %vm736_vm4, %v735_v15, 0  ;;  %v2517_v30 = vadd.s32 4294967169, %v1041_v19 }
  0x91   :  { %v3222_v47 = vmul.f32 %v3160_v50, %v567_v48  ;;  %v858_v20 = vshll.u32 %v5351_v35, %v3185_v14  ;;  %v859_v32 = vshrl.u32 %v5343_v49, %v3196_v27  ;;  %v1353_v51 = vshrl.u32 %v1352_v31, 23 }
  0x92   :  { %v1248_v52 = vand.u32 2139095040, %v3200_v26  ;;  %v648_v54 = vshrl.u32 %v5351_v35, %v3203_v29  ;;  %v3231_v55 = vand.u32 31, %v945_v42  ;;  %v1151_v11 = vadd.s32 1, %v2521_v25 }
  0x93   :  { %5451 = vst [vmem:[#allocation6_spill] sm:$0xff] %v3222_v47  ;;  %v3234_v56 = vmul.f32 %v3160_v50, %v562_v43  ;;  %vm864_vm5 = vcmp.lt.s32.totalorder %v3210_v36, 4  ;;  %v3237_v58 = vshrl.u32 %v633_v13, 5  ;;  %v651_v59 = vshrl.u32 %v5343_v49, %v3203_v29  ;;  %v577_v15 = vpop.permute.xlu1 %576 }
  0x94   :  { %v3241_v12 = vand.u32 31, %v737_v46  ;;  %v3243_v21 = vor.u32 %v856_v45, %v855_v41  ;;  %v647_v62 = vshll.u32 %v5337_v37, %v3191_v18  ;;  %v1047_v63 = vadd.s32 1, %v2517_v30 }
  0x95   :  { %5452 = vst [vmem:[#allocation7_spill] sm:$0xff] %v3234_v56  ;;  %v1560_v0 = vand.u32 2139095040, %v3222_v47  ;;  %v860_v1 = vor.u32 %v859_v32, %v858_v20  ;;  %v650_v2 = vshll.u32 %v5351_v35, %v3191_v18  ;;  %v2529_v3 = vadd.s32 4294967169, %v1353_v51 }
  0x96   :  { %v1249_v4 = vshrl.u32 %v1248_v52, 23  ;;  %v3250_v6 = vor.u32 %v648_v54, %v647_v62  ;;  %v3253_v61 = vsub.s32 32, %v3231_v55  ;;  %vm1152_vm6 = vcmp.gt.s32.totalorder %v1151_v11, 0 }
  0x97   :  { %v1456_v7 = vand.u32 2139095040, %v3234_v56  ;;  %v652_v8 = vor.u32 %v651_v59, %v650_v2  ;;  %vm656_vm7 = vcmp.lt.s32.totalorder %v3237_v58, 4  ;;  %v3257_v9 = vshrl.u32 %v945_v42, 5  ;;  %v572_v2 = vpop.permute.xlu0 %571  ;;  %v587_v23 = vpop.permute.xlu1 %586 }
  0x98   :  { %v3260_v10 = vsub.s32 32, %v3241_v12  ;;  %v3265_v13 = vsel %vm864_vm5, %v3243_v21, 920167782  ;;  %v3267_v40 = vshrl.u32 %v737_v46, 5  ;;  %vm1048_vm8 = vcmp.gt.s32.totalorder %v1047_v63, 0 }
  0x99   :  { %v1561_v28 = vshrl.u32 %v1560_v0, 23  ;;  %v3271_v16 = vsel %vm864_vm5, %v860_v1, 1326507024  ;;  %v1153_v22 = vsel %vm1152_vm6, %v1151_v11, 0  ;;  %v1359_v19 = vadd.s32 1, %v2529_v3 }
  0x9a   :  { %v2525_v31 = vadd.s32 4294967169, %v1249_v4  ;;  %v3276_v48 = vsel %vm656_vm7, %v3250_v6, 920167782  ;;  %v959_v25 = vshll.u32 %v5337_v37, %v3231_v55  ;;  %v960_v41 = vshrl.u32 %v5351_v35, %v3253_v61 }
  0x9b   :  { %v1457_v42 = vshrl.u32 %v1456_v7, 23  ;;  %v963_v43 = vshrl.u32 %v5343_v49, %v3253_v61  ;;  %v752_v45 = vshrl.u32 %v5351_v35, %v3260_v10  ;;  %v1049_v46 = vsel %vm1048_vm8, %v1047_v63, 0 }
  0x9c   :  { %v3287_v30 = vmul.f32 %v3160_v50, %v577_v15  ;;  %v3291_v20 = vsel %vm656_vm7, %v652_v8, 1326507024  ;;  %v755_v32 = vshrl.u32 %v5343_v49, %v3260_v10  ;;  %v3295_v51 = vand.u32 31, %v1153_v22 }
  0x9d   :  { %v2537_v52 = vadd.s32 4294967169, %v1561_v28  ;;  %v962_v54 = vshll.u32 %v5351_v35, %v3231_v55  ;;  %v751_v11 = vshll.u32 %v5337_v37, %v3241_v12  ;;  %vm1360_vm9 = vcmp.gt.s32.totalorder %v1359_v19, 0 }
  0x9e   :  { %5453 = vst [vmem:[#allocation8_spill] sm:$0xff] %v3287_v30  ;;  %5454 = vst [vmem:[#allocation9_spill] sm:$0xff] %v3295_v51  ;;  %v1255_v59 = vadd.s32 1, %v2525_v31  ;;  %v3301_v62 = vor.u32 %v960_v41, %v959_v25  ;;  %v754_v63 = vshll.u32 %v5351_v35, %v3241_v12  ;;  %v3305_v0 = vand.u32 31, %v1049_v46 }
  0x9f   :  { %v2533_v1 = vadd.s32 4294967169, %v1457_v42  ;;  %v964_v3 = vor.u32 %v963_v43, %v962_v54  ;;  %vm968_vm10 = vcmp.lt.s32.totalorder %v3257_v9, 4  ;;  %v3308_v4 = vor.u32 %v752_v45, %v751_v11 }
  0xa0   :  { %5455 = vst [vmem:[#allocation10_spill] sm:$0xff] %v3305_v0  ;;  %v1768_v7 = vand.u32 2139095040, %v3287_v30  ;;  %v756_v8 = vor.u32 %v755_v32, %v754_v63  ;;  %v3312_v28 = vsub.s32 32, %v3295_v51  ;;  %v1361_v15 = vsel %vm1360_vm9, %v1359_v19, 0 }
  0xa1   :  { %v1567_v31 = vadd.s32 1, %v2537_v52  ;;  %vm760_vm11 = vcmp.lt.s32.totalorder %v3267_v40, 4  ;;  %vm1256_vm12 = vcmp.gt.s32.totalorder %v1255_v59, 0  ;;  %v3316_v41 = vmul.f32 %v3160_v50, %v572_v2 }
  0xa2   :  { %5456 = vst [vmem:[#allocation11_spill] sm:$0xff] %v3312_v28  ;;  %v1769_v25 = vshrl.u32 %v1768_v7, 23  ;;  %v3321_v42 = vsel %vm968_vm10, %v3301_v62, 920167782  ;;  %v3323_v43 = vshrl.u32 %v1153_v22, 5  ;;  %v3326_v45 = vsub.s32 32, %v3305_v0 }
  0xa3   :  { %5457 = vst [vmem:[#allocation12_spill] sm:$0xff] %v3316_v41  ;;  %v1463_v32 = vadd.s32 1, %v2533_v1  ;;  %v3330_v19 = vsel %vm968_vm10, %v964_v3, 1326507024  ;;  %v3335_v52 = vsel %vm760_vm11, %v3308_v4, 920167782  ;;  %v1168_v63 = vshrl.u32 %v5351_v35, %v3312_v28 }
  0xa4   :  { %5458 = vst [vmem:[#allocation13_spill] sm:$0xff] %v3326_v45  ;;  %v3337_v54 = vand.u32 31, %v1361_v15  ;;  %v2545_v11 = vadd.s32 4294967169, %v1769_v25  ;;  %v3341_v22 = vsel %vm760_vm11, %v756_v8, 1326507024  ;;  %v1257_v1 = vsel %vm1256_vm12, %v1255_v59, 0 }
  0xa5   :  { %vm1568_vm13 = vcmp.gt.s32.totalorder %v1567_v31, 0  ;;  %v1167_v2 = vshll.u32 %v5337_v37, %v3295_v51  ;;  %v1170_v3 = vshll.u32 %v5351_v35, %v3295_v51  ;;  %v1171_v7 = vshrl.u32 %v5343_v49, %v3312_v28 }
  0xa6   :  { %5459 = vst [vmem:[#allocation14_spill] sm:$0xff] %v3337_v54  ;;  %v1664_v25 = vand.u32 2139095040, %v3316_v41  ;;  %vm1176_vm14 = vcmp.lt.s32.totalorder %v3323_v43, 4  ;;  %v3353_v8 = vshrl.u32 %v1049_v46, 5  ;;  %v1064_v59 = vshrl.u32 %v5351_v35, %v3326_v45 }
  0xa7   :  { %vm1464_vm15 = vcmp.gt.s32.totalorder %v1463_v32, 0  ;;  %v3358_v24 = vsub.s32 32, %v3337_v54  ;;  %v3360_v34 = vand.u32 31, %v1257_v1  ;;  %v1569_v37 = vsel %vm1568_vm13, %v1567_v31, 0 }
  0xa8   :  { %5460 = vst [vmem:[#allocation15_spill] sm:$0xff] %v3353_v8  ;;  %v1775_v30 = vadd.s32 1, %v2545_v11  ;;  %v3362_v56 = vor.u32 %v1168_v63, %v1167_v2  ;;  %v5464_v49 = vmov 2102212464   ;;  %v5465_v47 = vmov 1326507024  }
  0xa9   :  { %5461 = vst [vmem:[#allocation16_spill] sm:$0xff] %v3358_v24  ;;  %5462 = vst [vmem:[#allocation17_spill] sm:$0xff] %v3360_v34  ;;  %v1063_v41 = vshll.u32 %v5464_v49, %v3305_v0  ;;  %v1067_v46 = vshrl.u32 %v5465_v47, %v3326_v45  ;;  %v3369_v26 = vmul.f32 %v3160_v50, %v587_v23  ;;  %v5467_v17 = vmov 920167782  }
  0xaa   :  { %5463 = vst [vmem:[#allocation18_spill] sm:$0xff] %v3362_v56  ;;  %v1172_v35 = vor.u32 %v1171_v7, %v1170_v3  ;;  %v1066_v5 = vshll.u32 %v5467_v17, %v3305_v0  ;;  %v1465_v51 = vsel %vm1464_vm15, %v1463_v32, 0  ;;  %v1665_v28 = vshrl.u32 %v1664_v25, 23 }
  0xab   :  { %5466 = vst [vmem:[#allocation19_spill] sm:$0xff] %v3369_v26  ;;  %v3373_v39 = vor.u32 %v1064_v59, %v1063_v41  ;;  %vm1072_vm0 = vcmp.lt.s32.totalorder %v3353_v8, 4  ;;  %v3376_v31 = vshrl.u32 %v1361_v15, 5  ;;  %v3378_v11 = vand.u32 31, %v1569_v37 }
  0xac   :  { %v1376_v63 = vshrl.u32 %v5467_v17, %v3358_v24  ;;  %v1379_v23 = vshrl.u32 %v5465_v47, %v3358_v24  ;;  %v3385_v2 = vsub.s32 32, %v3360_v34  ;;  %vm1776_vm1 = vcmp.gt.s32.totalorder %v1775_v30, 0 }
  0xad   :  { %5468 = vst [vmem:[#allocation20_spill] sm:$0xff] %v3373_v39  ;;  %5469 = vst [vmem:[#allocation21_spill] sm:$0xff] %v3378_v11  ;;  %v3390_v41 = vsel %vm1176_vm14, %v3362_v56, 920167782  ;;  %v1068_v32 = vor.u32 %v1067_v46, %v1066_v5  ;;  %v3392_v15 = vand.u32 31, %v1465_v51  ;;  %v1976_v3 = vand.u32 2139095040, %v3369_v26 }
  0xae   :  { %5470 = vst [vmem:[#allocation22_spill] sm:$0xff] %v3385_v2  ;;  %v3397_v7 = vsel %vm1176_vm14, %v1172_v35, 1326507024  ;;  %v1375_v25 = vshll.u32 %v5464_v49, %v3337_v54  ;;  %v1378_v59 = vshll.u32 %v5467_v17, %v3337_v54  ;;  %v2541_v24 = vadd.s32 4294967169, %v1665_v28  ;;  %v582_v28 = vpop.permute.xlu0 %581 }
  0xaf   :  { %5471 = vst [vmem:[#allocation23_spill] sm:$0xff] %v3392_v15  ;;  %5472 = vst [vmem:[#allocation24_spill] sm:$0xff] %v3397_v7  ;;  %vm1384_vm2 = vcmp.lt.s32.totalorder %v3376_v31, 4  ;;  %v3404_v0 = vshrl.u32 %v1257_v1, 5  ;;  %v3407_v5 = vsub.s32 32, %v3378_v11  ;;  %v1777_v46 = vsel %vm1776_vm1, %v1775_v30, 0 }
  0xb0   :  { %v3412_v35 = vsel %vm1072_vm0, %v3373_v39, 920167782  ;;  %v3414_v26 = vor.u32 %v1376_v63, %v1375_v25  ;;  %v1380_v45 = vor.u32 %v1379_v23, %v1378_v59  ;;  %v1272_v54 = vshrl.u32 %v5467_v17, %v3385_v2 }
  0xb1   :  { %5473 = vst [vmem:[#allocation25_spill] sm:$0xff] %v3407_v5  ;;  %5474 = vst [vmem:[#allocation26_spill] sm:$0xff] %v3412_v35  ;;  %v3420_v1 = vsel %vm1072_vm0, %v1068_v32, 1326507024  ;;  %v1271_v56 = vshll.u32 %v5464_v49, %v3360_v34  ;;  %v3425_v30 = vsub.s32 32, %v3392_v15  ;;  %v1977_v7 = vshrl.u32 %v1976_v3, 23 }
  0xb2   :  { %5475 = vst [vmem:[#allocation27_spill] sm:$0xff] %v3414_v26  ;;  %5476 = vst [vmem:[#allocation28_spill] sm:$0xff] %v3420_v1  ;;  %v1274_v63 = vshll.u32 %v5467_v17, %v3360_v34  ;;  %v1275_v23 = vshrl.u32 %v5465_v47, %v3385_v2  ;;  %v3431_v25 = vand.u32 31, %v1777_v46  ;;  %v1671_v59 = vadd.s32 1, %v2541_v24 }
  0xb3   :  { %5477 = vst [vmem:[#allocation29_spill] sm:$0xff] %v3425_v30  ;;  %vm1280_vm3 = vcmp.lt.s32.totalorder %v3404_v0, 4  ;;  %v1584_v32 = vshrl.u32 %v5467_v17, %v3407_v5  ;;  %v1587_v35 = vshrl.u32 %v5465_v47, %v3407_v5  ;;  %v3439_v39 = vmul.f32 %v3160_v50, %v582_v28 }
  0xb4   :  { %5478 = vst [vmem:[#allocation30_spill] sm:$0xff] %v3431_v25  ;;  %v3444_v3 = vsel %vm1384_vm2, %v3414_v26, 920167782  ;;  %v3448_v2 = vsel %vm1384_vm2, %v1380_v45, 1326507024  ;;  %v3450_v24 = vor.u32 %v1272_v54, %v1271_v56  ;;  %v3452_v34 = vshrl.u32 %v1569_v37, 5  ;;  %v597_v37 = vpop.permute.xlu1 %596 }
  0xb5   :  { %5479 = vst [vmem:[#allocation31_spill] sm:$0xff] %v3439_v39  ;;  %5480 = vst [vmem:[#allocation32_spill] sm:$0xff] %v3444_v3  ;;  %v1583_v1 = vshll.u32 %v5464_v49, %v3378_v11  ;;  %v1586_v28 = vshll.u32 %v5467_v17, %v3378_v11  ;;  %v1480_v5 = vshrl.u32 %v5467_v17, %v3425_v30  ;;  %v2553_v8 = vadd.s32 4294967169, %v1977_v7 }
  0xb6   :  { %5481 = vst [vmem:[#allocation33_spill] sm:$0xff] %v3448_v2  ;;  %5482 = vst [vmem:[#allocation34_spill] sm:$0xff] %v3450_v24  ;;  %v1276_v26 = vor.u32 %v1275_v23, %v1274_v63  ;;  %v1483_v3 = vshrl.u32 %v5465_v47, %v3425_v30  ;;  %v3463_v45 = vsub.s32 32, %v3431_v25  ;;  %vm1672_vm4 = vcmp.gt.s32.totalorder %v1671_v59, 0 }
  0xb7   :  { %5483 = vst [vmem:[#allocation35_spill] sm:$0xff] %v3452_v34  ;;  %v3465_v56 = vor.u32 %v1584_v32, %v1583_v1  ;;  %v1588_v54 = vor.u32 %v1587_v35, %v1586_v28  ;;  %v1479_v2 = vshll.u32 %v5464_v49, %v3392_v15  ;;  %v1872_v11 = vand.u32 2139095040, %v3439_v39 }
  0xb8   :  { %5484 = vst [vmem:[#allocation36_spill] sm:$0xff] %v3463_v45  ;;  %v3473_v7 = vsel %vm1280_vm3, %v3450_v24, 920167782  ;;  %vm1592_vm6 = vcmp.lt.s32.totalorder %v3452_v34, 4  ;;  %v3476_v63 = vshrl.u32 %v1465_v51, 5  ;;  %v1482_v23 = vshll.u32 %v5467_v17, %v3392_v15  ;;  %v592_v24 = vpop.permute.xlu0 %591 }
  0xb9   :  { %5485 = vst [vmem:[#allocation37_spill] sm:$0xff] %v3465_v56  ;;  %5486 = vst [vmem:[#allocation38_spill] sm:$0xff] %v3473_v7  ;;  %v3480_v1 = vor.u32 %v1480_v5, %v1479_v2  ;;  %v1673_v35 = vsel %vm1672_vm4, %v1671_v59, 0  ;;  %v1983_v32 = vadd.s32 1, %v2553_v8  ;;  %v3483_v28 = vmul.f32 %v3160_v50, %v597_v37 }
  0xba   :  { %5487 = vst [vmem:[#allocation39_spill] sm:$0xff] %v3476_v63  ;;  %v3487_v39 = vsel %vm1280_vm3, %v1276_v26, 1326507024  ;;  %v1484_v30 = vor.u32 %v1483_v3, %v1482_v23  ;;  %v1792_v7 = vshrl.u32 %v5467_v17, %v3463_v45  ;;  %v1795_v51 = vshrl.u32 %v5465_v47, %v3463_v45 }
  0xbb   :  { %5488 = vst [vmem:[#allocation40_spill] sm:$0xff] %v3480_v1  ;;  %5489 = vst [vmem:[#allocation41_spill] sm:$0xff] %v3483_v28  ;;  %v3496_v2 = vsel %vm1592_vm6, %v3465_v56, 920167782  ;;  %v3500_v8 = vsel %vm1592_vm6, %v1588_v54, 1326507024  ;;  %v1791_v59 = vshll.u32 %v5464_v49, %v3431_v25  ;;  %v1794_v3 = vshll.u32 %v5467_v17, %v3431_v25 }
  0xbc   :  { %5490 = vst [vmem:[#allocation42_spill] sm:$0xff] %v3496_v2  ;;  %5491 = vst [vmem:[#allocation43_spill] sm:$0xff] %v3500_v8  ;;  %v3502_v5 = vshrl.u32 %v1777_v46, 5  ;;  %v1873_v26 = vshrl.u32 %v1872_v11, 23  ;;  %vm1488_vm8 = vcmp.lt.s32.totalorder %v3476_v63, 4  ;;  %v3509_v37 = vand.u32 31, %v1673_v35 }
  0xbd   :  { %v3514_v23 = vsel %vm1488_vm8, %v3480_v1, 920167782  ;;  %vm1984_vm9 = vcmp.gt.s32.totalorder %v1983_v32, 0  ;;  %v2184_v46 = vand.u32 2139095040, %v3483_v28  ;;  %v3518_v11 = vmul.f32 %v3160_v50, %v592_v24 }
  0xbe   :  { %5492 = vst [vmem:[#allocation44_spill] sm:$0xff] %v3502_v5  ;;  %5493 = vst [vmem:[#allocation45_spill] sm:$0xff] %v3509_v37  ;;  %v3522_v54 = vsel %vm1488_vm8, %v1484_v30, 1326507024  ;;  %v3524_v45 = vor.u32 %v1792_v7, %v1791_v59  ;;  %v1796_v25 = vor.u32 %v1795_v51, %v1794_v3  ;;  %v5403_v15 = vmov 2475754826  }
  0xbf   :  { %5494 = vst [vmem:[#allocation46_spill] sm:$0xff] %v3514_v23  ;;  %5495 = vst [vmem:[#allocation47_spill] sm:$0xff] %v3518_v11  ;;  %v743_v56 = vshrl.u32 %v5403_v15, %v3260_v10  ;;  %vm1800_vm12 = vcmp.lt.s32.totalorder %v3502_v5, 4  ;;  %v3529_v23 = vshrl.u32 %v1673_v35, 5  ;;  %v2549_v1 = vadd.s32 4294967169, %v1873_v26 }
  0xc0   :  { %5496 = vst [vmem:[#allocation48_spill] sm:$0xff] %v3522_v54  ;;  %5497 = vst [vmem:[#allocation49_spill] sm:$0xff] %v3524_v45  ;;  %v5401_v28 = vmov 683565275   ;;  %v3534_v24 = vsub.s32 32, %v3509_v37  ;;  %v1985_v30 = vsel %vm1984_vm9, %v1983_v32, 0  ;;  %v745_v7 = vshll.u32 %v5403_v15, %v3241_v12 }
  0xc1   :  { %v742_v50 = vshll.u32 %v5401_v28, %v3241_v12  ;;  %v5405_v51 = vmov 2131351028   ;;  %v1687_v35 = vshll.u32 %v5464_v49, %v3509_v37  ;;  %v3544_v26 = vshll.u32 %v5467_v17, %v3509_v37 }
  0xc2   :  { %5498 = vst [vmem:[#allocation50_spill] sm:$0xff] %v3534_v24  ;;  %v746_v59 = vshrl.u32 %v5405_v51, %v3260_v10  ;;  %v2185_v3 = vshrl.u32 %v2184_v46, 23  ;;  %v3549_v32 = vsel %vm1800_vm12, %v3524_v45, 920167782  ;;  %v3553_v15 = vsel %vm1800_vm12, %v1796_v25, 1326507024 }
  0xc3   :  { %v744_v28 = vor.u32 %v743_v56, %v742_v50  ;;  %5499 = vst [vmem:[#allocation51_spill] sm:$0xff] %v3549_v32  ;;  %5500 = vst [vmem:[#allocation52_spill] sm:$0xff] %v3553_v15  ;;  %v749_v51 = vshrl.u32 %v5464_v49, %v3260_v10  ;;  %v3557_v63 = vshrl.u32 %v1985_v30, 5  ;;  %v3559_v8 = vand.u32 31, %v1985_v30 }
  0xc4   :  { %v747_v54 = vor.u32 %v746_v59, %v745_v7  ;;  %v733_v46 = vor.u32 8388608, %v3216_v44  ;;  %v5503_v56 = vmov 2131351028   ;;  %v1688_v37 = vshrl.u32 %v5467_v17, %v3534_v24 }
  0xc5   :  { %5501 = vst [vmem:[#allocation53_spill] sm:$0xff] %v3557_v63  ;;  %5502 = vst [vmem:[#allocation54_spill] sm:$0xff] %v3559_v8  ;;  %v748_v50 = vshll.u32 %v5503_v56, %v3241_v12  ;;  %v3568_v25 = vshrl.u32 %v5465_v47, %v3534_v24  ;;  %v5504_v7 = vmov 683565275   ;;  %vm757_vm13 = vcmp.lt.s32.totalorder %v3267_v40, 1 }
  0xc6   :  { %v741_v59 = vshrl.u32 %v5504_v7, %v3260_v10  ;;  %v3573_v45 = vadd.s32 1, %v2549_v1  ;;  %vm759_vm15 = vcmp.lt.s32.totalorder %v3267_v40, 3  ;;  %v765_v44 = vsel %vm757_vm13, %v744_v28, %v747_v54 }
  0xc7   :  { %v750_v30 = vor.u32 %v749_v51, %v748_v50  ;;  %v2561_v15 = vadd.s32 4294967169, %v2185_v3  ;;  %vm758_vm1 = vcmp.lt.s32.totalorder %v3267_v40, 2  ;;  %v771_v32 = vsel %vm759_vm15, %v3308_v4, %v3341_v22 }
  0xc8   :  { %v761_v12 = vsel %vm757_vm13, %v741_v59, %v744_v28  ;;  %v773_v2 = vshll.u32 %v733_v46, 8  ;;  %v3583_v1 = vsub.s32 32, %v3559_v8  ;;  %v3587_v51 = vshll.u32 %v5464_v49, %v3559_v8 }
  0xc9   :  { %v762_v24 = vsel %vm760_vm11, %v750_v30, 2102212464  ;;  %v767_v10 = vsel %vm759_vm15, %v750_v30, %v3335_v52  ;;  %v769_v5 = vsel %vm757_vm13, %v747_v54, %v750_v30  ;;  %v3591_v28 = vshll.u32 %v5467_v17, %v3559_v8 }
  0xca   :  { %5505 = vst [vmem:[#allocation55_spill] sm:$0xff] %v3583_v1  ;;  %v763_v3 = vsel %vm759_vm15, %v747_v54, %v762_v24  ;;  %v768_v50 = vsel %vm758_vm1, %v765_v44, %v767_v10  ;;  %v772_v4 = vsel %vm758_vm1, %v769_v5, %v771_v32  ;;  %v3597_v52 = vor.u32 %v1688_v37, %v1687_v35 }
  0xcb   :  { %v3593_v40 = vmul.u32.u64.low %v773_v2, %v768_v50  ;;  %v3594_v22 = vmul.u32.u64.high %v773_v2, %v768_v50, %v3593_v40  ;;  %v764_v46 = vsel %vm758_vm1, %v761_v12, %v763_v3  ;;  %v1692_v34 = vor.u32 %v3568_v25, %v3544_v26 }
  0xcc   :  { %v3599_v59 = vmul.u32.u64.low %v773_v2, %v772_v4  ;;  %v3600_v30 = vmul.u32.u64.high %v773_v2, %v772_v4, %v3599_v59  ;;  %v629_v54 = vor.u32 8388608, %v3207_v33  ;;  %v638_v24 = vshll.u32 %v5504_v7, %v3191_v18 }
  0xcd   :  { %v5506_v5 = vmov 2475754826   ;;  %v642_v37 = vshrl.u32 %v5503_v56, %v3203_v29  ;;  %v644_v35 = vshll.u32 %v5503_v56, %v3191_v18  ;;  %v645_v26 = vshrl.u32 %v5464_v49, %v3203_v29 }
  0xce   :  { %v639_v32 = vshrl.u32 %v5506_v5, %v3203_v29  ;;  %v641_v44 = vshll.u32 %v5506_v5, %v3191_v18  ;;  %v780_v25 = vmul.u32 %v773_v2, %v764_v46  ;;  %v783_v33 = vadd.s32 1, %v3594_v22 }
  0xcf   :  { %v637_v12 = vshrl.u32 %v5504_v7, %v3203_v29  ;;  %vm1696_vm11 = vcmp.lt.s32.totalorder %v3529_v23, 4  ;;  %vm782_vm4 = vc.u32 %v3600_v30, %v3593_v40  ;;  %v646_v50 = vor.u32 %v645_v26, %v644_v35 }
  0xd0   :  { %v640_v10 = vor.u32 %v639_v32, %v638_v24  ;;  %v643_v3 = vor.u32 %v642_v37, %v641_v44  ;;  %vm653_vm9 = vcmp.lt.s32.totalorder %v3237_v58, 1  ;;  %v784_v18 = vsel %vm782_vm4, %v783_v33, %v3594_v22 }
  0xd1   :  { %vm654_vm13 = vcmp.lt.s32.totalorder %v3237_v58, 2  ;;  %vm655_vm15 = vcmp.lt.s32.totalorder %v3237_v58, 3  ;;  %v785_v4 = vadd.s32 %v784_v18, %v780_v25  ;;  %v658_v29 = vsel %vm656_vm7, %v646_v50, 2102212464 }
  0xd2   :  { %v657_v2 = vsel %vm653_vm9, %v637_v12, %v640_v10  ;;  %v661_v46 = vsel %vm653_vm9, %v640_v10, %v643_v3  ;;  %v663_v59 = vsel %vm655_vm15, %v646_v50, %v3276_v48  ;;  %v665_v32 = vsel %vm653_vm9, %v643_v3, %v646_v50 }
  0xd3   :  { %v664_v24 = vsel %vm654_vm13, %v661_v46, %v663_v59  ;;  %v667_v44 = vsel %vm655_vm15, %v3250_v6, %v3291_v20  ;;  %v669_v22 = vshll.u32 %v629_v54, 8  ;;  %v786_v37 = vadd.s32 536870912, %v785_v4 }
  0xd4   :  { %v659_v35 = vsel %vm655_vm15, %v643_v3, %v658_v29  ;;  %v668_v26 = vsel %vm654_vm13, %v665_v32, %v667_v44  ;;  %v5418_v25 = vand.u32 2147483647, %v3171_v60  ;;  %v2000_v50 = vshrl.u32 %v5467_v17, %v3583_v1 }
  0xd5   :  { %v3637_v33 = vmul.u32.u64.low %v669_v22, %v668_v26  ;;  %v3638_v12 = vmul.u32.u64.high %v669_v22, %v668_v26, %v3637_v33  ;;  %v3640_v10 = vmul.u32.u64.low %v669_v22, %v664_v24  ;;  %v3641_v48 = vmul.u32.u64.high %v669_v22, %v664_v24, %v3640_v10 }
  0xd6   :  { %vm1880_vm7 = vcmp.gt.s32.totalorder %v3573_v45, 0  ;;  %v3647_v6 = vadd.s32 1, %v2561_v15  ;;  %v3649_v20 = vshrl.u32 %v786_v37, 30  ;;  %v3653_v54 = vshrl.u32 %v5465_v47, %v3583_v1 }
  0xd7   :  { %v660_v3 = vsel %vm654_vm13, %v657_v2, %v659_v35  ;;  %v940_v18 = vand.u32 8388607, %v5418_v25  ;;  %v951_v29 = vshrl.u32 %v5506_v5, %v3253_v61  ;;  %v950_v15 = vshll.u32 %v5504_v7, %v3231_v55 }
  0xd8   :  { %v788_v46 = vshll.u32 %v3649_v20, 30  ;;  %v953_v59 = vshll.u32 %v5506_v5, %v3231_v55  ;;  %v954_v24 = vshrl.u32 %v5503_v56, %v3253_v61  ;;  %v3671_v58 = vsel %vm1696_vm11, %v3597_v52, 920167782 }
  0xd9   :  { %5507 = vst [vmem:[#allocation56_spill] sm:$0xff] %v3671_v58  ;;  %v1881_v2 = vsel %vm1880_vm7, %v3573_v45, 0  ;;  %vm678_vm1 = vc.u32 %v3638_v12, %v3640_v10  ;;  %v679_v32 = vadd.s32 1, %v3641_v48  ;;  %v676_v37 = vmul.u32 %v669_v22, %v660_v3 }
  0xda   :  { %v3677_v44 = vsub.s32 %v785_v4, %v788_v46  ;;  %v952_v35 = vor.u32 %v951_v29, %v950_v15  ;;  %v955_v26 = vor.u32 %v954_v24, %v953_v59  ;;  %v3681_v33 = vsel %vm1696_vm11, %v1692_v34, 1326507024 }
  0xdb   :  { %v680_v25 = vsel %vm678_vm1, %v679_v32, %v3641_v48  ;;  %v956_v1 = vshll.u32 %v5503_v56, %v3231_v55  ;;  %v957_v45 = vshrl.u32 %v5464_v49, %v3253_v61  ;;  %v3688_v8 = vand.u32 31, %v1881_v2 }
  0xdc   :  { %v791_v4 = vsub.s32 0, %v3677_v44  ;;  %v681_v46 = vadd.s32 %v680_v25, %v676_v37  ;;  %v941_v22 = vor.u32 8388608, %v940_v18  ;;  %v3691_v3 = vshrl.u32 %v1881_v2, 5 }
  0xdd   :  { %5508 = vst [vmem:[#allocation57_spill] sm:$0xff] %v3688_v8  ;;  %v958_v29 = vor.u32 %v957_v45, %v956_v1  ;;  %vm965_vm4 = vcmp.lt.s32.totalorder %v3257_v9, 1  ;;  %vm967_vm9 = vcmp.lt.s32.totalorder %v3257_v9, 3  ;;  %v3703_v25 = vor.u32 %v2000_v50, %v3587_v51 }
  0xde   :  { %v2506_v34 = vmin.u32 %v791_v4, %v3677_v44  ;;  %v682_v48 = vadd.s32 536870912, %v681_v46  ;;  %v973_v55 = vsel %vm965_vm4, %v952_v35, %v955_v26  ;;  %v979_v15 = vsel %vm967_vm9, %v3301_v62, %v3330_v19 }
  0xdf   :  { %5509 = vst [vmem:[#allocation58_spill] sm:$0xff] %v3703_v25  ;;  %vm5434_vm13 = vcmp.lt.s32.totalorder %v3557_v63, 4  ;;  %v2080_v1 = vand.u32 2139095040, %v3518_v11  ;;  %v975_v18 = vsel %vm967_vm9, %v958_v29, %v3321_v42  ;;  %v977_v59 = vsel %vm965_vm4, %v955_v26, %v958_v29 }
  0xe0   :  { %v3713_v24 = vsub.s32 32, %v3688_v8  ;;  %v793_v2 = vclz %v2506_v34  ;;  %vm966_vm15 = vcmp.lt.s32.totalorder %v3257_v9, 2  ;;  %v981_v62 = vshll.u32 %v941_v22, 8 }
  0xe1   :  { %v3716_v19 = vshrl.u32 %v682_v48, 30  ;;  %v970_v51 = vsel %vm968_vm10, %v958_v29, 2102212464  ;;  %v976_v50 = vsel %vm966_vm15, %v973_v55, %v975_v18  ;;  %v980_v42 = vsel %vm966_vm15, %v977_v59, %v979_v15 }
  0xe2   :  { %5510 = vst [vmem:[#allocation59_spill] sm:$0xff] %v3713_v24  ;;  %v2507_v32 = vadd.s32 4294967294, %v793_v2  ;;  %v949_v37 = vshrl.u32 %v5504_v7, %v3253_v61  ;;  %v3726_v45 = vmul.u32.u64.low %v981_v62, %v980_v42  ;;  %v3727_v4 = vmul.u32.u64.high %v981_v62, %v980_v42, %v3726_v45 }
  0xe3   :  { %vm2192_vm7 = vcmp.gt.s32.totalorder %v3647_v6, 0  ;;  %v684_v22 = vshll.u32 %v3716_v19, 30  ;;  %v3731_v34 = vmul.u32.u64.low %v981_v62, %v976_v50  ;;  %v3732_v48 = vmul.u32.u64.high %v981_v62, %v976_v50, %v3731_v34 }
  0xe4   :  { %v2004_v29 = vor.u32 %v3653_v54, %v3591_v28  ;;  %vm2508_vm10 = vcmp.lt.s32.totalorder %v2507_v32, 0  ;;  %v969_v55 = vsel %vm965_vm4, %v949_v37, %v952_v35  ;;  %v971_v61 = vsel %vm967_vm9, %v955_v26, %v970_v51 }
  0xe5   :  { %v1895_v15 = vshll.u32 %v5464_v49, %v3688_v8  ;;  %v3745_v18 = vshll.u32 %v5467_v17, %v3688_v8  ;;  %v796_v59 = vsel %vm2508_vm10, 0, %v2507_v32  ;;  %v3747_v2 = vsub.s32 %v681_v46, %v684_v22 }
  0xe6   :  { %v1896_v28 = vshrl.u32 %v5467_v17, %v3713_v24  ;;  %v2193_v54 = vsel %vm2192_vm7, %v3647_v6, 0  ;;  %v2081_v50 = vshrl.u32 %v2080_v1, 23  ;;  %v801_v35 = vsub.s32 4294967266, %v796_v59 }
  0xe7   :  { %v3754_v26 = vshrl.u32 %v5465_v47, %v3713_v24  ;;  %v687_v51 = vsub.s32 0, %v3747_v2  ;;  %v972_v42 = vsel %vm966_vm15, %v969_v55, %v971_v61  ;;  %vm990_vm1 = vc.u32 %v3727_v4, %v3731_v34 }
  0xe8   :  { %v3764_v46 = vsel %vm5434_vm13, %v3703_v25, 920167782  ;;  %v797_v6 = vsub.s32 32, %v796_v59  ;;  %v802_v1 = vadd.s32 127, %v801_v35  ;;  %v991_v32 = vadd.s32 1, %v3732_v48 }
  0xe9   :  { %5511 = vst [vmem:[#allocation60_spill] sm:$0xff] %v3764_v46  ;;  %v3769_v37 = vsel %vm5434_vm13, %v2004_v29, 1326507024  ;;  %v3771_v45 = vshrl.u32 %v2193_v54, 5  ;;  %v3773_v9 = vand.u32 31, %v2193_v54  ;;  %v2502_v22 = vmin.u32 %v687_v51, %v3747_v2 }
  0xea   :  { %5512 = vst [vmem:[#allocation61_spill] sm:$0xff] %v3769_v37  ;;  %vm5440_vm4 = vcmp.lt.s32.totalorder %v3691_v3, 4  ;;  %v781_v55 = vadd.s32 %v3593_v40, %v3600_v30  ;;  %v803_v61 = vshll.u32 %v802_v1, 23  ;;  %v988_v11 = vmul.u32 %v981_v62, %v972_v42 }
  0xeb   :  { %5513 = vst [vmem:[#allocation62_spill] sm:$0xff] %v3771_v45  ;;  %5514 = vst [vmem:[#allocation63_spill] sm:$0xff] %v3773_v9  ;;  %v992_v35 = vsel %vm990_vm1, %v991_v32, %v3732_v48  ;;  %v3780_v8 = vor.u32 %v1896_v28, %v1895_v15  ;;  %v2557_v24 = vadd.s32 4294967169, %v2081_v50  ;;  %v689_v25 = vclz %v2502_v22 }
  0xec   :  { %v798_v54 = vshll.u32 %v3677_v44, %v796_v59  ;;  %v799_v37 = vshrl.u32 %v781_v55, %v797_v6  ;;  %v993_v51 = vadd.s32 %v992_v35, %v988_v11  ;;  %v846_v46 = vshll.u32 %v5504_v7, %v3185_v14 }
  0xed   :  { %v804_v63 = vor.u32 4788187, %v803_v61  ;;  %v2503_v40 = vadd.s32 4294967294, %v689_v25  ;;  %v847_v30 = vshrl.u32 %v5506_v5, %v3196_v27  ;;  %v849_v62 = vshll.u32 %v5506_v5, %v3185_v14 }
  0xee   :  { %v994_v48 = vadd.s32 536870912, %v993_v51  ;;  %v850_v15 = vshrl.u32 %v5503_v56, %v3196_v27  ;;  %v852_v44 = vshll.u32 %v5503_v56, %v3185_v14  ;;  %v853_v11 = vshrl.u32 %v5464_v49, %v3196_v27 }
  0xef   :  { %v3798_v59 = vsub.s32 32, %v3773_v9  ;;  %v2207_v25 = vshll.u32 %v5464_v49, %v3773_v9  ;;  %v3804_v28 = vshll.u32 %v5467_v17, %v3773_v9  ;;  %vm2504_vm9 = vcmp.lt.s32.totalorder %v2503_v40, 0 }
  0xf0   :  { %v800_v50 = vor.u32 %v799_v37, %v798_v54  ;;  %v692_v42 = vsel %vm2504_vm9, 0, %v2503_v40  ;;  %v3806_v6 = vshrl.u32 %v994_v48, 30  ;;  %v5516_v14 = vand.u32 2147483647, %v3163_v53 }
  0xf1   :  { %5515 = vst [vmem:[#allocation64_spill] sm:$0xff] %v3798_v59  ;;  %vm727_vm15 = vcmp.lt.s32.totalorder %v3174_v57, 0  ;;  %v3811_v32 = vadd.s32 1, %v2557_v24  ;;  %v693_v22 = vsub.s32 32, %v692_v42  ;;  %v697_v55 = vsub.s32 4294967266, %v692_v42 }
  0xf2   :  { %v836_v1 = vand.u32 8388607, %v5516_v14  ;;  %v848_v61 = vor.u32 %v847_v30, %v846_v46  ;;  %v805_v35 = vand.u32 2147483647, %v804_v63  ;;  %v996_v29 = vshll.u32 %v3806_v6, 30 }
  0xf3   :  { %v851_v9 = vor.u32 %v850_v15, %v849_v62  ;;  %v854_v58 = vor.u32 %v853_v11, %v852_v44  ;;  %v3817_v37 = vsel %vm5440_vm4, %v3780_v8, 920167782  ;;  %v811_v54 = vsub.s32 4, %v3649_v20 }
  0xf4   :  { %v677_v40 = vadd.s32 %v3640_v10, %v3638_v12  ;;  %v698_v24 = vadd.s32 127, %v697_v55  ;;  %v807_v48 = vcvt.s32.f32 %v800_v50  ;;  %v3822_v14 = vsub.s32 %v993_v51, %v996_v29 }
  0xf5   :  { %v837_v46 = vor.u32 8388608, %v836_v1  ;;  %v845_v63 = vshrl.u32 %v5504_v7, %v3196_v27  ;;  %v5517_v30 = vand.u32 2147483647, %v3174_v57  ;;  %vm861_vm10 = vcmp.lt.s32.totalorder %v3210_v36, 1 }
  0xf6   :  { %v695_v15 = vshrl.u32 %v677_v40, %v693_v22  ;;  %v699_v44 = vshll.u32 %v698_v24, 23  ;;  %vm863_vm1 = vcmp.lt.s32.totalorder %v3210_v36, 3  ;;  %v808_v12 = vmul.f32 %v807_v48, %v805_v35 }
  0xf7   :  { %vm3828_vm7 = vcmp.le.f32.partialorder %v5517_v30, 0.7853982  ;;  %v999_v10 = vsub.s32 0, %v3822_v14  ;;  %v869_v29 = vsel %vm861_vm10, %v848_v61, %v851_v9  ;;  %v871_v27 = vsel %vm863_vm1, %v854_v58, %v3265_v13 }
  0xf8   :  { %v694_v51 = vshll.u32 %v3747_v2, %v692_v42  ;;  %v700_v11 = vor.u32 4788187, %v699_v44  ;;  %v866_v50 = vsel %vm864_vm5, %v854_v58, 2102212464  ;;  %v873_v1 = vsel %vm861_vm10, %v851_v9, %v854_v58 }
  0xf9   :  { %v2208_v22 = vshrl.u32 %v5467_v17, %v3798_v59  ;;  %v2514_v55 = vmin.u32 %v999_v10, %v3822_v14  ;;  %vm862_vm9 = vcmp.lt.s32.totalorder %v3210_v36, 2  ;;  %v875_v13 = vsel %vm863_vm1, %v3243_v21, %v3271_v16 }
  0xfa   :  { %v696_v2 = vor.u32 %v695_v15, %v694_v51  ;;  %v872_v42 = vsel %vm862_vm9, %v869_v29, %v871_v27  ;;  %v876_v35 = vsel %vm862_vm9, %v873_v1, %v875_v13  ;;  %v877_v58 = vshll.u32 %v837_v46, 8 }
  0xfb   :  { %v812_v40 = vsel %vm727_vm15, %v811_v54, %v3649_v20  ;;  %v1001_v24 = vclz %v2514_v55  ;;  %v865_v48 = vsel %vm861_vm10, %v845_v63, %v848_v61  ;;  %v867_v30 = vsel %vm863_vm1, %v851_v9, %v866_v50  ;;  %v5520_v63 = vld [vmem:[#allocation2_spill] sm:$0xff] }
  0xfc   :  { %vm623_vm5 = vcmp.lt.s32.totalorder %v3166_v38, 0  ;;  %v809_v21 = vxor.u32 2147483648, %v808_v12  ;;  %v701_v16 = vand.u32 2147483647, %v700_v11  ;;  %v3870_v46 = vshrl.u32 %v5465_v47, %v3798_v59 }
  0xfd   :  { %v3865_v15 = vmul.u32.u64.low %v877_v58, %v876_v35  ;;  %v3866_v44 = vmul.u32.u64.high %v877_v58, %v876_v35, %v3865_v15  ;;  %v2515_v10 = vadd.s32 4294967294, %v1001_v24  ;;  %vm2088_vm10 = vcmp.gt.s32.totalorder %v3811_v32, 0  ;;  %v5525_v24 = vld [vmem:[#allocation11_spill] sm:$0xff] }
  0xfe   :  { %v3872_v20 = vmul.u32.u64.low %v877_v58, %v872_v42  ;;  %v3873_v54 = vmul.u32.u64.high %v877_v58, %v872_v42, %v3872_v20  ;;  %v703_v61 = vcvt.s32.f32 %v696_v2  ;;  %v868_v9 = vsel %vm862_vm9, %v865_v48, %v867_v30 }
  0xff   :  { %v5435_v29 = vand.u32 2147483647, %v5520_v63  ;;  %v3880_v27 = vor.u32 %v2208_v22, %v2207_v25  ;;  %v814_v51 = vsel %vm3828_vm7, 0, %v812_v40  ;;  %v5522_v11 = vand.u32 2147483647, %v3166_v38 }
 0x100   :  { %v707_v1 = vsub.s32 4, %v3716_v19  ;;  %vm2516_vm13 = vcmp.lt.s32.totalorder %v2515_v10, 0  ;;  %v810_v36 = vsel %vm727_vm15, %v809_v21, %v808_v12  ;;  %v704_v55 = vmul.f32 %v703_v61, %v701_v16  ;;  %v5526_v21 = vld [vmem:[#allocation9_spill] sm:$0xff] }
 0x101   :  { %5521 = vst [vmem:[#allocation2_spill] sm:$0xff] %v3880_v27  ;;  %vm3886_vm1 = vcmp.le.f32.partialorder %v5522_v11, 0.7853982  ;;  %v989_v25 = vadd.s32 %v3731_v34, %v3727_v4  ;;  %v1004_v22 = vsel %vm2516_vm13, 0, %v2515_v10  ;;  %v884_v42 = vmul.u32 %v877_v58, %v868_v9 }
 0x102   :  { %v1005_v13 = vsub.s32 32, %v1004_v22  ;;  %v1009_v2 = vsub.s32 4294967266, %v1004_v22  ;;  %vm886_vm9 = vc.u32 %v3866_v44, %v3872_v20  ;;  %v887_v35 = vadd.s32 1, %v3873_v54 }
 0x103   :  { %v1148_v40 = vand.u32 8388607, %v5435_v29  ;;  %v1159_v48 = vshrl.u32 %v5506_v5, %v5525_v24  ;;  %v1162_v12 = vshrl.u32 %v5503_v56, %v5525_v24  ;;  %v1006_v4 = vshll.u32 %v3822_v14, %v1004_v22 }
 0x104   :  { %v1007_v34 = vshrl.u32 %v989_v25, %v1005_v13  ;;  %v1010_v30 = vadd.s32 127, %v1009_v2  ;;  %v1158_v58 = vshll.u32 %v5504_v7, %v5526_v21  ;;  %v888_v16 = vsel %vm886_vm9, %v887_v35, %v3873_v54 }
 0x105   :  { %v1161_v15 = vshll.u32 %v5506_v5, %v5526_v21  ;;  %v1164_v10 = vshll.u32 %v5503_v56, %v5526_v21  ;;  %v1165_v61 = vshrl.u32 %v5464_v49, %v5525_v24  ;;  %v708_v14 = vsel %vm623_vm5, %v707_v1, %v3716_v19 }
 0x106   :  { %v1008_v9 = vor.u32 %v1007_v34, %v1006_v4  ;;  %v1011_v11 = vshll.u32 %v1010_v30, 23  ;;  %v889_v25 = vadd.s32 %v888_v16, %v884_v42  ;;  %v2089_v54 = vsel %vm2088_vm10, %v3811_v32, 0  ;;  %v5527_v34 = vld [vmem:[#allocation24_spill] sm:$0xff]  ;;  %v5528_v30 = vld [vmem:[#allocation18_spill] sm:$0xff] }
 0x107   :  { %v1160_v22 = vor.u32 %v1159_v48, %v1158_v58  ;;  %v1163_v13 = vor.u32 %v1162_v12, %v1161_v15  ;;  %v1166_v2 = vor.u32 %v1165_v61, %v1164_v10  ;;  %v813_v35 = vsel %vm3828_vm7, %v3174_v57, %v810_v36 }
 0x108   :  { %v705_v21 = vxor.u32 2147483648, %v704_v55  ;;  %v1012_v29 = vor.u32 4788187, %v1011_v11  ;;  %v890_v59 = vadd.s32 536870912, %v889_v25  ;;  %vm5439_vm13 = vcmp.lt.s32.totalorder %v3771_v45, 4  ;;  %v5549_v45 = vld [vmem:[#allocation33_spill] sm:$0xff] }
 0x109   :  { %v818_v19 = vadd.s32 3, %v814_v51  ;;  %v710_v1 = vsel %vm3886_vm1, 0, %v708_v14  ;;  %v1149_v42 = vor.u32 8388608, %v1148_v40  ;;  %vm1173_vm15 = vcmp.lt.s32.totalorder %v3323_v43, 1 }
 0x10a   :  { %vm935_vm10 = vcmp.lt.s32.totalorder %v3171_v60, 0  ;;  %v1013_v32 = vand.u32 2147483647, %v1012_v29  ;;  %v1015_v48 = vcvt.s32.f32 %v1008_v9  ;;  %v3928_v12 = vshrl.u32 %v890_v59, 30 }
 0x10b   :  { %vm1175_vm7 = vcmp.lt.s32.totalorder %v3323_v43, 3  ;;  %2756 = vcosq.f32 %v813_v35  ;;  %v1181_v62 = vsel %vm1173_vm15, %v1160_v22, %v1163_v13  ;;  %v1185_v36 = vsel %vm1173_vm15, %v1163_v13, %v1166_v2 }
 0x10c   :  { %v1183_v51 = vsel %vm1175_vm7, %v1166_v2, %v3390_v41  ;;  %2758 = vsinq.f32 %v813_v35  ;;  %v706_v29 = vsel %vm623_vm5, %v705_v21, %v704_v55  ;;  %v1016_v40 = vmul.f32 %v1015_v48, %v1013_v32 }
 0x10d   :  { %v892_v59 = vshll.u32 %v3928_v12, 30  ;;  %vm1174_vm9 = vcmp.lt.s32.totalorder %v3323_v43, 2  ;;  %v1178_v4 = vsel %vm1176_vm14, %v1166_v2, 2102212464  ;;  %v1187_v41 = vsel %vm1175_vm7, %v5528_v30, %v5527_v34 }
 0x10e   :  { %v1189_v58 = vshll.u32 %v1149_v42, 8  ;;  %v1157_v15 = vshrl.u32 %v5504_v7, %v5525_v24  ;;  %v1184_v55 = vsel %vm1174_vm9, %v1181_v62, %v1183_v51  ;;  %v1188_v10 = vsel %vm1174_vm9, %v1185_v36, %v1187_v41 }
 0x10f   :  { %v3948_v16 = vsub.s32 %v889_v25, %v892_v59  ;;  %v709_v61 = vsel %vm3886_vm1, %v3166_v38, %v706_v29  ;;  %v1019_v14 = vsub.s32 4, %v3806_v6  ;;  %v1017_v25 = vxor.u32 2147483648, %v1016_v40 }
 0x110   :  { %v3960_v9 = vmul.u32.u64.low %v1189_v58, %v1188_v10  ;;  %v3961_v11 = vmul.u32.u64.high %v1189_v58, %v1188_v10, %v3960_v9  ;;  %v1177_v24 = vsel %vm1173_vm15, %v1157_v15, %v1160_v22  ;;  %v1179_v35 = vsel %vm1175_vm7, %v1163_v13, %v1178_v4  ;;  %v5536_v15 = vld [vmem:[#allocation3_spill] sm:$0xff] }
 0x111   :  { %v895_v2 = vsub.s32 0, %v3948_v16  ;;  %v5529_v21 = vor.u32 %v3754_v26, %v3745_v18  ;;  %v2212_v42 = vor.u32 %v3870_v46, %v3804_v28  ;;  %v3984_v22 = vsel %vm5439_vm13, %v3880_v27, 920167782 }
 0x112   :  { %v3977_v32 = vmul.u32.u64.low %v1189_v58, %v1184_v55  ;;  %v3978_v48 = vmul.u32.u64.high %v1189_v58, %v1184_v55, %v3977_v32  ;;  %5530 = vst [vmem:[#allocation11_spill] sm:$0xff] %v3984_v22  ;;  %v3986_v13 = vshrl.u32 %v2089_v54, 5  ;;  %v714_v62 = vadd.s32 3, %v710_v1 }
 0x113   :  { %v3973_v50 = vsel %vm5440_vm4, %v5529_v21, 1326507024  ;;  %v2510_v18 = vmin.u32 %v895_v2, %v3948_v16  ;;  %v3989_v26 = vand.u32 3, %v818_v19  ;;  %2760 = vcosq.f32 %v709_v61 }
 0x114   :  { %5531 = vst [vmem:[#allocation9_spill] sm:$0xff] %v3986_v13  ;;  %v1020_v28 = vsel %vm935_vm10, %v1019_v14, %v3806_v6  ;;  %v1180_v46 = vsel %vm1174_vm9, %v1177_v24, %v1179_v35  ;;  %2762 = vsinq.f32 %v709_v61  ;;  %v1018_v51 = vsel %vm935_vm10, %v1017_v25, %v1016_v40  ;;  %v5537_v14 = vld [vmem:[#allocation13_spill] sm:$0xff] }
 0x115   :  { %v897_v36 = vclz %v2510_v18  ;;  %vm1198_vm14 = vc.u32 %v3961_v11, %v3977_v32  ;;  %v4002_v19 = vsel %vm5439_vm13, %v2212_v42, 1326507024  ;;  %v4004_v1 = vand.u32 31, %v2089_v54 }
 0x116   :  { %5532 = vst [vmem:[#allocation24_spill] sm:$0xff] %v4002_v19  ;;  %v5533_v29 = vand.u32 2147483647, %v3171_v60  ;;  %v1199_v43 = vadd.s32 1, %v3978_v48  ;;  %v4013_v59 = vand.u32 3, %v714_v62  ;;  %v1196_v34 = vmul.u32 %v1189_v58, %v1180_v46 }
 0x117   :  { %v2511_v4 = vadd.s32 4294967294, %v897_v36  ;;  %v885_v30 = vadd.s32 %v3872_v20, %v3866_v44  ;;  %v5438_v55 = vand.u32 2147483647, %v5536_v15  ;;  %vm821_vm1 = vcmp.eq.s32.totalorder %v3989_v26, 0  ;;  %v5538_v44 = vld [vmem:[#allocation10_spill] sm:$0xff] }
 0x118   :  { %vm4008_vm5 = vcmp.le.f32.partialorder %v5533_v29, 0.7853982  ;;  %v1200_v41 = vsel %vm1198_vm14, %v1199_v43, %v3978_v48  ;;  %v2757_v10 = vpop.eup %2756  ;;  %vm824_vm15 = vcmp.eq.s32.totalorder %v3989_v26, 2  ;;  %v1055_v58 = vshrl.u32 %v5506_v5, %v5537_v14 }
 0x119   :  { %v1022_v40 = vsel %vm4008_vm5, 0, %v1020_v28  ;;  %v1021_v54 = vsel %vm4008_vm5, %v3171_v60, %v1018_v51  ;;  %vm2512_vm10 = vcmp.lt.s32.totalorder %v2511_v4, 0  ;;  %v1201_v61 = vadd.s32 %v1200_v41, %v1196_v34  ;;  %v2759_v25 = vpop.eup %2758 }
 0x11a   :  { %v1058_v9 = vshrl.u32 %v5503_v56, %v5537_v14  ;;  %v900_v2 = vsel %vm2512_vm10, 0, %v2511_v4  ;;  %v1057_v20 = vshll.u32 %v5506_v5, %v5538_v44  ;;  %v1060_v24 = vshll.u32 %v5503_v56, %v5538_v44 }
 0x11b   :  { %v1061_v35 = vshrl.u32 %v5464_v49, %v5537_v14  ;;  %vm831_vm7 = vcmp.lt.s32.totalorder %v3163_v53, 0  ;;  %2764 = vcosq.f32 %v1021_v54  ;;  %v901_v21 = vsub.s32 32, %v900_v2 }
 0x11c   :  { %v905_v42 = vsub.s32 4294967266, %v900_v2  ;;  %v1202_v48 = vadd.s32 536870912, %v1201_v61  ;;  %v1044_v62 = vand.u32 8388607, %v5438_v55  ;;  %v1054_v18 = vshll.u32 %v5504_v7, %v5538_v44 }
 0x11d   :  { %v1059_v28 = vor.u32 %v1058_v9, %v1057_v20  ;;  %v1062_v46 = vor.u32 %v1061_v35, %v1060_v24  ;;  %2766 = vsinq.f32 %v1021_v54  ;;  %v903_v51 = vshrl.u32 %v885_v30, %v901_v21  ;;  %v5542_v30 = vld [vmem:[#allocation15_spill] sm:$0xff] }
 0x11e   :  { %v906_v36 = vadd.s32 127, %v905_v42  ;;  %v4041_v29 = vshrl.u32 %v1202_v48, 30  ;;  %v822_v6 = vxor.u32 2147483648, %v2759_v25  ;;  %v825_v43 = vxor.u32 2147483648, %v2757_v10 }
 0x11f   :  { %v902_v4 = vshll.u32 %v3948_v16, %v900_v2  ;;  %v1056_v34 = vor.u32 %v1055_v58, %v1054_v18  ;;  %vm820_vm9 = vcmp.lt.s32.totalorder %v3989_v26, 2  ;;  %v5539_v41 = vand.u32 2147483647, %v3163_v53  ;;  %v5543_v58 = vld [vmem:[#allocation28_spill] sm:$0xff] }
 0x120   :  { %v907_v9 = vshll.u32 %v906_v36, 23  ;;  %v1204_v54 = vshll.u32 %v4041_v29, 30  ;;  %vm1069_vm5 = vcmp.lt.s32.totalorder %v5542_v30, 1  ;;  %vm1071_vm10 = vcmp.lt.s32.totalorder %v5542_v30, 3  ;;  %v5544_v2 = vld [vmem:[#allocation20_spill] sm:$0xff]  ;;  %v2761_v35 = vpop.eup %2760 }
 0x121   :  { %vm4047_vm14 = vcmp.le.f32.partialorder %v5539_v41, 0.7853982  ;;  %v915_v44 = vsub.s32 4, %v3928_v12  ;;  %v1045_v20 = vor.u32 8388608, %v1044_v62  ;;  %v1081_v16 = vsel %vm1069_vm5, %v1059_v28, %v1062_v46  ;;  %v2763_v36 = vpop.eup %2762 }
 0x122   :  { %v1083_v24 = vsel %vm1071_vm10, %v5544_v2, %v5543_v58  ;;  %vm717_vm13 = vcmp.eq.s32.totalorder %v4013_v59, 0  ;;  %v1026_v21 = vadd.s32 3, %v1022_v40  ;;  %v904_v42 = vor.u32 %v903_v51, %v902_v4  ;;  %v5545_v40 = vld [vmem:[#allocation26_spill] sm:$0xff] }
 0x123   :  { %v908_v48 = vor.u32 4788187, %v907_v9  ;;  %v4062_v18 = vsub.s32 %v1201_v61, %v1204_v54  ;;  %v823_v62 = vsel %vm821_vm1, %v2757_v10, %v822_v6  ;;  %v826_v41 = vsel %vm824_vm15, %v825_v43, %v2759_v25 }
 0x124   :  { %vm1070_vm4 = vcmp.lt.s32.totalorder %v5542_v30, 2  ;;  %v1077_v58 = vsel %vm1069_vm5, %v1056_v34, %v1059_v28  ;;  %v1079_v61 = vsel %vm1071_vm10, %v1062_v46, %v5545_v40  ;;  %v4080_v10 = vsel %vm831_vm7, %v915_v44, %v3928_v12 }
 0x125   :  { %v909_v2 = vand.u32 2147483647, %v908_v48  ;;  %v1207_v13 = vsub.s32 0, %v4062_v18  ;;  %v1084_v51 = vsel %vm1070_vm4, %v1081_v16, %v1083_v24  ;;  %v1053_v25 = vshrl.u32 %v5504_v7, %v5537_v14 }
 0x126   :  { %v1074_v6 = vsel %vm1072_vm0, %v1062_v46, 2102212464  ;;  %v1085_v43 = vshll.u32 %v1045_v20, 8  ;;  %v718_v4 = vxor.u32 2147483648, %v2763_v36  ;;  %v721_v9 = vxor.u32 2147483648, %v2761_v35  ;;  %v5546_v20 = vld [vmem:[#allocation4_spill] sm:$0xff] }
 0x127   :  { %v911_v54 = vcvt.s32.f32 %v904_v42  ;;  %v2522_v48 = vmin.u32 %v1207_v13, %v4062_v18  ;;  %v1073_v16 = vsel %vm1069_vm5, %v1053_v25, %v1056_v34  ;;  %v1080_v24 = vsel %vm1070_vm4, %v1077_v58, %v1079_v61 }
 0x128   :  { %v4091_v12 = vmul.u32.u64.low %v1085_v43, %v1084_v51  ;;  %v4092_v44 = vmul.u32.u64.high %v1085_v43, %v1084_v51, %v4091_v12  ;;  %v1075_v46 = vsel %vm1071_vm10, %v1059_v28, %v1074_v6  ;;  %v5443_v27 = vand.u32 2147483647, %v5546_v20  ;;  %v4097_v19 = vpop.eup %2764 }
 0x129   :  { %v912_v40 = vmul.f32 %v911_v54, %v909_v2  ;;  %v1209_v14 = vclz %v2522_v48  ;;  %v4101_v13 = vsel %vm820_vm9, %v823_v62, %v826_v41  ;;  %vm720_vm0 = vcmp.eq.s32.totalorder %v4013_v59, 2 }
 0x12a   :  { %v4104_v34 = vand.u32 3, %v1026_v21  ;;  %v4109_v58 = vsel %vm720_vm0, %v721_v9, %v2763_v36  ;;  %v4111_v28 = vmul.u32.u64.low %v1085_v43, %v1080_v24  ;;  %v4112_v61 = vmul.u32.u64.high %v1085_v43, %v1080_v24, %v4111_v28  ;;  %v4115_v51 = vpop.eup %2766 }
 0x12b   :  { %v2523_v2 = vadd.s32 4294967294, %v1209_v14  ;;  %v4119_v26 = vsel %vm717_vm13, %v2761_v35, %v718_v4  ;;  %v1197_v21 = vadd.s32 %v3977_v32, %v3961_v11  ;;  %v1227_v62 = vsub.s32 4, %v4041_v29  ;;  %v5547_v35 = vld [vmem:[#allocation14_spill] sm:$0xff]  ;;  %v5548_v11 = vld [vmem:[#allocation16_spill] sm:$0xff] }
 0x12c   :  { %v1076_v36 = vsel %vm1070_vm4, %v1073_v16, %v1075_v46  ;;  %v913_v25 = vxor.u32 2147483648, %v912_v40  ;;  %v1356_v6 = vand.u32 8388607, %v5443_v27  ;;  %vm1094_vm13 = vc.u32 %v4092_v44, %v4111_v28 }
 0x12d   :  { %vm2524_vm1 = vcmp.lt.s32.totalorder %v2523_v2, 0  ;;  %v1366_v4 = vshll.u32 %v5504_v7, %v5547_v35  ;;  %v1367_v32 = vshrl.u32 %v5506_v5, %v5548_v11  ;;  %vm1143_vm15 = vcmp.lt.s32.totalorder %v5520_v63, 0 }
 0x12e   :  { %v1212_v9 = vsel %vm2524_vm1, 0, %v2523_v2  ;;  %v1030_v30 = vxor.u32 2147483648, %v4115_v51  ;;  %v1092_v48 = vmul.u32 %v1085_v43, %v1076_v36  ;;  %v1095_v16 = vadd.s32 1, %v4112_v61 }
 0x12f   :  { %v1217_v54 = vsub.s32 4294967266, %v1212_v9  ;;  %v1213_v24 = vsub.s32 32, %v1212_v9  ;;  %v1368_v12 = vor.u32 %v1367_v32, %v1366_v4  ;;  %v1369_v14 = vshll.u32 %v5506_v5, %v5547_v35 }
 0x130   :  { %v1370_v46 = vshrl.u32 %v5503_v56, %v5548_v11  ;;  %v1096_v27 = vsel %vm1094_vm13, %v1095_v16, %v4112_v61  ;;  %v1372_v42 = vshll.u32 %v5503_v56, %v5547_v35  ;;  %v1373_v41 = vshrl.u32 %v5464_v49, %v5548_v11 }
 0x131   :  { %v1218_v2 = vadd.s32 127, %v1217_v54  ;;  %vm716_vm4 = vcmp.lt.s32.totalorder %v4013_v59, 2  ;;  %vm1032_vm9 = vcmp.eq.s32.totalorder %v4104_v34, 2  ;;  %v914_v43 = vsel %vm831_vm7, %v913_v25, %v912_v40  ;;  %v5550_v40 = vld [vmem:[#allocation27_spill] sm:$0xff] }
 0x132   :  { %v1097_v36 = vadd.s32 %v1096_v27, %v1092_v48  ;;  %v1357_v4 = vor.u32 8388608, %v1356_v6  ;;  %v1371_v32 = vor.u32 %v1370_v46, %v1369_v14  ;;  %vm1029_vm5 = vcmp.eq.s32.totalorder %v4104_v34, 0 }
 0x133   :  { %v1219_v54 = vshll.u32 %v1218_v2, 23  ;;  %v1374_v61 = vor.u32 %v1373_v41, %v1372_v42  ;;  %vm1381_vm10 = vcmp.lt.s32.totalorder %v3376_v31, 1  ;;  %vm1383_vm0 = vcmp.lt.s32.totalorder %v3376_v31, 3 }
 0x134   :  { %vm817_vm1 = vweird.f32 %v3174_v57  ;;  %v1215_v35 = vshrl.u32 %v1197_v21, %v1213_v24  ;;  %v1098_v16 = vadd.s32 536870912, %v1097_v36  ;;  %v1389_v22 = vsel %vm1381_vm10, %v1368_v12, %v1371_v32  ;;  %v5551_v21 = vld [vmem:[#allocation32_spill] sm:$0xff] }
 0x135   :  { %v1395_v27 = vsel %vm1383_vm0, %v5550_v40, %v5549_v45  ;;  %vm713_vm7 = vweird.f32 %v3166_v38  ;;  %v917_v42 = vsel %vm4047_vm14, %v3163_v53, %v914_v43  ;;  %v1214_v41 = vshll.u32 %v4062_v18, %v1212_v9 }
 0x136   :  { %vm1382_vm13 = vcmp.lt.s32.totalorder %v3376_v31, 2  ;;  %v1391_v25 = vsel %vm1383_vm0, %v1374_v61, %v5551_v21  ;;  %v1220_v6 = vor.u32 4788187, %v1219_v54  ;;  %v4170_v48 = vshrl.u32 %v1098_v16, 30 }
 0x137   :  { %v1386_v45 = vsel %vm1384_vm2, %v1374_v61, 2102212464  ;;  %v1393_v24 = vsel %vm1381_vm10, %v1371_v32, %v1374_v61  ;;  %v1365_v14 = vshrl.u32 %v5504_v7, %v5548_v11  ;;  %v1392_v18 = vsel %vm1382_vm13, %v1389_v22, %v1391_v25 }
 0x138   :  { %v1396_v9 = vsel %vm1382_vm13, %v1393_v24, %v1395_v27  ;;  %v1397_v46 = vshll.u32 %v1357_v4, 8  ;;  %2768 = vcosq.f32 %v917_v42  ;;  %v1216_v2 = vor.u32 %v1215_v35, %v1214_v41  ;;  %v5557_v24 = vld [vmem:[#allocation5_spill] sm:$0xff] }
 0x139   :  { %v1228_v43 = vsel %vm1143_vm15, %v1227_v62, %v4041_v29  ;;  %v1100_v54 = vshll.u32 %v4170_v48, 30  ;;  %v1385_v61 = vsel %vm1381_vm10, %v1365_v14, %v1368_v12  ;;  %v1387_v11 = vsel %vm1383_vm0, %v1371_v32, %v1386_v45  ;;  %v2288_v45 = vpop.permute.xlu0 %2287 }
 0x13a   :  { %v4190_v16 = vmul.u32.u64.low %v1397_v46, %v1396_v9  ;;  %v4191_v22 = vmul.u32.u64.high %v1397_v46, %v1396_v9, %v4190_v16  ;;  %v1221_v40 = vand.u32 2147483647, %v1220_v6  ;;  %v723_v29 = vsel %vm716_vm4, %v4119_v26, %v4109_v58 }
 0x13b   :  { %v4193_v27 = vsub.s32 %v1097_v36, %v1100_v54  ;;  %v4195_v4 = vmul.u32.u64.low %v1397_v46, %v1392_v18  ;;  %v4196_v35 = vmul.u32.u64.high %v1397_v46, %v1392_v18, %v4195_v4  ;;  %v5552_v62 = vxor.u32 2147483648, %v4097_v19 }
 0x13c   :  { %2770 = vsinq.f32 %v917_v42  ;;  %v5553_v32 = vand.u32 2147483647, %v5520_v63  ;;  %v1031_v41 = vsel %vm1029_vm5, %v4097_v19, %v1030_v30  ;;  %v1223_v21 = vcvt.s32.f32 %v1216_v2 }
 0x13d   :  { %v1034_v12 = vsel %vm1032_vm9, %v5552_v62, %v4115_v51  ;;  %v1103_v58 = vsub.s32 0, %v4193_v27  ;;  %v828_v51 = vsel %vm817_vm1, nan, %v4101_v13  ;;  %vm1028_vm4 = vcmp.lt.s32.totalorder %v4104_v34, 2  ;;  %v2293_v34 = vpop.permute.xlu1 %2292  ;;  %v5559_v62 = vld [vmem:[#allocation22_spill] sm:$0xff] }
 0x13e   :  { %vm4210_vm2 = vcmp.le.f32.partialorder %v5553_v32, 0.7853982  ;;  %v5556_v26 = vsel %vm4047_vm14, 0, %v4080_v10  ;;  %v1388_v19 = vsel %vm1382_vm13, %v1385_v61, %v1387_v11  ;;  %v724_v30 = vsel %vm713_vm7, nan, %v723_v29 }
 0x13f   :  { %v1230_v59 = vsel %vm4210_vm2, 0, %v1228_v43  ;;  %v922_v42 = vadd.s32 3, %v5556_v26  ;;  %v1224_v25 = vmul.f32 %v1223_v21, %v1221_v40  ;;  %v2518_v6 = vmin.u32 %v1103_v58, %v4193_v27 }
 0x140   :  { %vm1406_vm9 = vc.u32 %v4191_v22, %v4195_v4  ;;  %v4236_v57 = vsub.s32 32, %v4004_v1  ;;  %v1035_v13 = vsel %vm1028_vm4, %v1031_v41, %v1034_v12  ;;  %v1234_v55 = vadd.s32 3, %v1230_v59 }
 0x141   :  { %v1407_v10 = vadd.s32 1, %v4196_v35  ;;  %vm1025_vm14 = vweird.f32 %v3171_v60  ;;  %v1105_v31 = vclz %v2518_v6  ;;  %v1404_v38 = vmul.u32 %v1397_v46, %v1388_v19  ;;  %v5558_v46 = vld [vmem:[#allocation17_spill] sm:$0xff] }
 0x142   :  { %v1245_v14 = vand.u32 2147483647, %v5557_v24  ;;  %v4241_v18 = vmul.f32 %v2293_v34, %v828_v51  ;;  %v4243_v9 = vmul.f32 %v2288_v45, %v724_v30  ;;  %v4245_v2 = vand.u32 3, %v922_v42 }
 0x143   :  { %v1408_v43 = vsel %vm1406_vm9, %v1407_v10, %v4196_v35  ;;  %v4248_v54 = vsel %vm1025_vm14, nan, %v1035_v13  ;;  %v1225_v61 = vxor.u32 2147483648, %v1224_v25  ;;  %v2519_v11 = vadd.s32 4294967294, %v1105_v31 }
 0x144   :  { %v1409_v16 = vadd.s32 %v1408_v43, %v1404_v38  ;;  %v4250_v40 = vand.u32 3, %v1234_v55  ;;  %v1093_v60 = vadd.s32 %v4111_v28, %v4092_v44  ;;  %v1265_v29 = vshll.u32 %v5506_v5, %v5558_v46  ;;  %v5560_v38 = vld [vmem:[#allocation34_spill] sm:$0xff]  ;;  %2397 = vrot.lane.b32.xlu0 %v4243_v9, %s2827_s0  ;;  %2399 = vrot.lane.b32.xlu1 %v4241_v18, %s2827_s0 }
 0x145   :  { %v1266_v12 = vshrl.u32 %v5503_v56, %v5559_v62  ;;  %vm2520_vm5 = vcmp.lt.s32.totalorder %v2519_v11, 0  ;;  %v1252_v35 = vand.u32 8388607, %v1245_v14  ;;  %v1269_v41 = vshrl.u32 %v5464_v49, %v5559_v62  ;;  %v2769_v21 = vpop.eup %2768 }
 0x146   :  { %v1410_v32 = vadd.s32 536870912, %v1409_v16  ;;  %v1108_v59 = vsel %vm2520_vm5, 0, %v2519_v11  ;;  %v1263_v58 = vshrl.u32 %v5506_v5, %v5559_v62  ;;  %v1268_v28 = vshll.u32 %v5503_v56, %v5558_v46 }
 0x147   :  { %v1267_v44 = vor.u32 %v1266_v12, %v1265_v29  ;;  %v1226_v51 = vsel %vm1143_vm15, %v1225_v61, %v1224_v25  ;;  %v1109_v26 = vsub.s32 32, %v1108_v59  ;;  %v1113_v42 = vsub.s32 4294967266, %v1108_v59 }
 0x148   :  { %v4268_v19 = vshrl.u32 %v1410_v32, 30  ;;  %vm1039_vm10 = vcmp.lt.s32.totalorder %v5536_v15, 0  ;;  %v1110_v30 = vshll.u32 %v4193_v27, %v1108_v59  ;;  %v1262_v6 = vshll.u32 %v5504_v7, %v5558_v46 }
 0x149   :  { %v1270_v13 = vor.u32 %v1269_v41, %v1268_v28  ;;  %vm1277_vm0 = vcmp.lt.s32.totalorder %v3404_v0, 1  ;;  %v2771_v55 = vpop.eup %2770  ;;  %vm925_vm1 = vcmp.eq.s32.totalorder %v4245_v2, 0  ;;  %vm928_vm7 = vcmp.eq.s32.totalorder %v4245_v2, 2  ;;  %v5588_v41 = vld [vmem:[#allocation36_spill] sm:$0xff] }
 0x14a   :  { %v1111_v25 = vshrl.u32 %v1093_v60, %v1109_v26  ;;  %v1114_v10 = vadd.s32 127, %v1113_v42  ;;  %v1412_v34 = vshll.u32 %v4268_v19, 30  ;;  %vm1279_vm15 = vcmp.lt.s32.totalorder %v3404_v0, 3 }
 0x14b   :  { %v1253_v45 = vor.u32 8388608, %v1252_v35  ;;  %v1264_v31 = vor.u32 %v1263_v58, %v1262_v6  ;;  %v1289_v27 = vsel %vm1277_vm0, %v1267_v44, %v1270_v13  ;;  %v1291_v43 = vsel %vm1279_vm15, %v5560_v38, %v3487_v39 }
 0x14c   :  { %v1112_v61 = vor.u32 %v1111_v25, %v1110_v30  ;;  %v1115_v11 = vshll.u32 %v1114_v10, 23  ;;  %v1123_v46 = vsub.s32 4, %v4170_v48  ;;  %v4286_v60 = vsub.s32 %v1409_v16, %v1412_v34 }
 0x14d   :  { %vm924_vm13 = vcmp.lt.s32.totalorder %v4245_v2, 2  ;;  %v926_v29 = vxor.u32 2147483648, %v2771_v55  ;;  %v929_v12 = vxor.u32 2147483648, %v2769_v21  ;;  %v1229_v32 = vsel %vm4210_vm2, %v5520_v63, %v1226_v51  ;;  %v5564_v51 = vld [vmem:[#allocation38_spill] sm:$0xff] }
 0x14e   :  { %v5561_v35 = vand.u32 2147483647, %v5536_v15  ;;  %vm1278_vm9 = vcmp.lt.s32.totalorder %v3404_v0, 2  ;;  %vm1351_vm14 = vcmp.lt.s32.totalorder %v5546_v20, 0  ;;  %v1116_v39 = vor.u32 4788187, %v1115_v11  ;;  %v2303_v11 = vpop.permute.xlu1 %2302 }
 0x14f   :  { %v1415_v16 = vsub.s32 0, %v4286_v60  ;;  %v1282_v59 = vsel %vm1280_vm3, %v1270_v13, 2102212464  ;;  %v1292_v36 = vsel %vm1278_vm9, %v1289_v27, %v1291_v43  ;;  %v1261_v58 = vshrl.u32 %v5504_v7, %v5559_v62 }
 0x150   :  { %vm4294_vm4 = vcmp.le.f32.partialorder %v5561_v35, 0.7853982  ;;  %v1285_v28 = vsel %vm1277_vm0, %v1264_v31, %v1267_v44  ;;  %v1287_v26 = vsel %vm1279_vm15, %v1270_v13, %v5564_v51  ;;  %v1293_v42 = vshll.u32 %v1253_v45, 8 }
 0x151   :  { %2772 = vcosq.f32 %v1229_v32  ;;  %v1117_v30 = vand.u32 2147483647, %v1116_v39  ;;  %v1119_v6 = vcvt.s32.f32 %v1112_v61  ;;  %v2530_v25 = vmin.u32 %v1415_v16, %v4286_v60 }
 0x152   :  { %v1281_v10 = vsel %vm1277_vm0, %v1261_v58, %v1264_v31  ;;  %v1283_v34 = vsel %vm1279_vm15, %v1267_v44, %v1282_v59  ;;  %v4317_v62 = vmul.u32.u64.low %v1293_v42, %v1292_v36  ;;  %v4318_v27 = vmul.u32.u64.high %v1293_v42, %v1292_v36, %v4317_v62 }
 0x153   :  { %v1120_v38 = vmul.f32 %v1119_v6, %v1117_v30  ;;  %v4323_v13 = vsel %vm1039_vm10, %v1123_v46, %v4170_v48  ;;  %v1417_v45 = vclz %v2530_v25  ;;  %v1288_v43 = vsel %vm1278_vm9, %v1285_v28, %v1287_v26  ;;  %v5565_v46 = vld [vmem:[#allocation6_spill] sm:$0xff]  ;;  %v5569_v6 = vld [vmem:[#allocation21_spill] sm:$0xff] }
 0x154   :  { %v927_v61 = vsel %vm925_vm1, %v2769_v21, %v926_v29  ;;  %v930_v31 = vsel %vm928_vm7, %v929_v12, %v2771_v55  ;;  %2774 = vsinq.f32 %v1229_v32  ;;  %v1435_v44 = vsub.s32 4, %v4268_v19 }
 0x155   :  { %v1121_v35 = vxor.u32 2147483648, %v1120_v38  ;;  %v2531_v39 = vadd.s32 4294967294, %v1417_v45  ;;  %v1284_v48 = vsel %vm1278_vm9, %v1281_v10, %v1283_v34  ;;  %v1557_v16 = vand.u32 2147483647, %v5565_v46  ;;  %v5570_v10 = vld [vmem:[#allocation25_spill] sm:$0xff] }
 0x156   :  { %v4336_v59 = vmul.f32 %v2303_v11, %v4248_v54  ;;  %v5566_v36 = vand.u32 2147483647, %v5546_v20  ;;  %v4344_v55 = vmul.u32.u64.low %v1293_v42, %v1288_v43  ;;  %v4345_v29 = vmul.u32.u64.high %v1293_v42, %v1288_v43, %v4344_v55 }
 0x157   :  { %v4350_v12 = vsel %vm924_vm13, %v927_v61, %v930_v31  ;;  %v1126_v0 = vsel %vm4294_vm4, 0, %v4323_v13  ;;  %v1405_v54 = vadd.s32 %v4195_v4, %v4191_v22  ;;  %vm2532_vm2 = vcmp.lt.s32.totalorder %v2531_v39, 0 }
 0x158   :  { %vm4340_vm3 = vcmp.le.f32.partialorder %v5566_v36, 0.7853982  ;;  %v1122_v32 = vsel %vm1039_vm10, %v1121_v35, %v1120_v38  ;;  %v1420_v58 = vsel %vm2532_vm2, 0, %v2531_v39  ;;  %v4362_v28 = vsel %vm1351_vm14, %v1435_v44, %v4268_v19  ;;  %2403 = vrot.lane.b32.xlu1 %v4336_v59, %s2827_s0 }
 0x159   :  { %v1300_v2 = vmul.u32 %v1293_v42, %v1284_v48  ;;  %v1421_v51 = vsub.s32 32, %v1420_v58  ;;  %v1425_v26 = vsub.s32 4294967266, %v1420_v58  ;;  %vm1302_vm5 = vc.u32 %v4318_v27, %v4344_v55 }
 0x15a   :  { %v1564_v30 = vand.u32 8388607, %v1557_v16  ;;  %v1422_v22 = vshll.u32 %v4286_v60, %v1420_v58  ;;  %v1303_v4 = vadd.s32 1, %v4345_v29  ;;  %v1574_v25 = vshll.u32 %v5504_v7, %v5569_v6 }
 0x15b   :  { %v1575_v19 = vshrl.u32 %v5506_v5, %v5570_v10  ;;  %v1423_v34 = vshrl.u32 %v1405_v54, %v1421_v51  ;;  %v1426_v42 = vadd.s32 127, %v1425_v26  ;;  %v1577_v62 = vshll.u32 %v5506_v5, %v5569_v6  ;;  %v5571_v26 = vld [vmem:[#allocation35_spill] sm:$0xff] }
 0x15c   :  { %v1578_v38 = vshrl.u32 %v5503_v56, %v5570_v10  ;;  %v1304_v45 = vsel %vm1302_vm5, %v1303_v4, %v4345_v29  ;;  %v1580_v60 = vshll.u32 %v5503_v56, %v5569_v6  ;;  %v1581_v61 = vshrl.u32 %v5464_v49, %v5570_v10 }
 0x15d   :  { %v1576_v43 = vor.u32 %v1575_v19, %v1574_v25  ;;  %v1427_v31 = vshll.u32 %v1426_v42, 23  ;;  %v1438_v44 = vsel %vm4340_vm3, 0, %v4362_v28  ;;  %v1305_v11 = vadd.s32 %v1304_v45, %v1300_v2  ;;  %v5572_v2 = vld [vmem:[#allocation42_spill] sm:$0xff] }
 0x15e   :  { %v1579_v35 = vor.u32 %v1578_v38, %v1577_v62  ;;  %v2773_v39 = vpop.eup %2772  ;;  %v1125_v48 = vsel %vm4294_vm4, %v5536_v15, %v1122_v32  ;;  %v1424_v36 = vor.u32 %v1423_v34, %v1422_v22  ;;  %v1565_v29 = vor.u32 8388608, %v1564_v30  ;;  %v5573_v62 = vld [vmem:[#allocation43_spill] sm:$0xff]  ;;  %v5574_v38 = vld [vmem:[#allocation37_spill] sm:$0xff] }
 0x15f   :  { %v1582_v54 = vor.u32 %v1581_v61, %v1580_v60  ;;  %vm921_vm10 = vweird.f32 %v3163_v53  ;;  %v1428_v58 = vor.u32 4788187, %v1427_v31  ;;  %v1306_v51 = vadd.s32 536870912, %v1305_v11  ;;  %v2298_v53 = vpop.permute.xlu0 %2297 }
 0x160   :  { %vm1589_vm0 = vcmp.lt.s32.totalorder %v5571_v26, 1  ;;  %vm1591_vm1 = vcmp.lt.s32.totalorder %v5571_v26, 3  ;;  %vm1590_vm7 = vcmp.lt.s32.totalorder %v5571_v26, 2  ;;  %vm1247_vm15 = vcmp.lt.s32.totalorder %v5557_v24, 0 }
 0x161   :  { %v1597_v28 = vsel %vm1589_vm0, %v1576_v43, %v1579_v35  ;;  %v1599_v32 = vsel %vm1591_vm1, %v1582_v54, %v5572_v2  ;;  %v1601_v30 = vsel %vm1589_vm0, %v1579_v35, %v1582_v54  ;;  %v2775_v22 = vpop.eup %2774  ;;  %v1241_v4 = vxor.u32 2147483648, %v2773_v39 }
 0x162   :  { %v1307_v6 = vshrl.u32 %v1306_v51, 30  ;;  %v1573_v25 = vshrl.u32 %v5504_v7, %v5570_v10  ;;  %v1600_v19 = vsel %vm1590_vm7, %v1597_v28, %v1599_v32  ;;  %v1429_v34 = vand.u32 2147483647, %v1428_v58 }
 0x163   :  { %v1594_v42 = vsel %vm1592_vm6, %v1582_v54, 2102212464  ;;  %v1603_v45 = vsel %vm1591_vm1, %v5574_v38, %v5573_v62  ;;  %v1605_v60 = vshll.u32 %v1565_v29, 8  ;;  %2776 = vcosq.f32 %v1125_v48 }
 0x164   :  { %v1431_v61 = vcvt.s32.f32 %v1424_v36  ;;  %v1308_v31 = vshll.u32 %v1307_v6, 30  ;;  %v1604_v51 = vsel %vm1590_vm7, %v1601_v30, %v1603_v45  ;;  %v1238_v54 = vxor.u32 2147483648, %v2775_v22 }
 0x165   :  { %v4413_v10 = vmul.u32.u64.low %v1605_v60, %v1604_v51  ;;  %v4414_v2 = vmul.u32.u64.high %v1605_v60, %v1604_v51, %v4413_v10  ;;  %v4416_v28 = vmul.u32.u64.low %v1605_v60, %v1600_v19  ;;  %v4417_v58 = vmul.u32.u64.high %v1605_v60, %v1600_v19, %v4416_v28 }
 0x166   :  { %v4420_v32 = vsub.s32 %v1305_v11, %v1308_v31  ;;  %v1593_v62 = vsel %vm1589_vm0, %v1573_v25, %v1576_v43  ;;  %v1595_v36 = vsel %vm1591_vm1, %v1579_v35, %v1594_v42  ;;  %2778 = vsinq.f32 %v1125_v48 }
 0x167   :  { %v1130_v29 = vadd.s32 3, %v1126_v0  ;;  %v1432_v30 = vmul.f32 %v1431_v61, %v1429_v34  ;;  %v1331_v38 = vsub.s32 4, %v1307_v6  ;;  %vm1236_vm6 = vcmp.lt.s32.totalorder %v4250_v40, 2  ;;  %v5577_v61 = vld [vmem:[#allocation7_spill] sm:$0xff] }
 0x168   :  { %vm1237_vm13 = vcmp.eq.s32.totalorder %v4250_v40, 0  ;;  %v1442_v11 = vadd.s32 3, %v1438_v44  ;;  %v1311_v19 = vsub.s32 0, %v4420_v32  ;;  %v932_v43 = vsel %vm921_vm10, nan, %v4350_v12 }
 0x169   :  { %vm1240_vm9 = vcmp.eq.s32.totalorder %v4250_v40, 2  ;;  %vm4439_vm2 = vcmp.le.f32.partialorder %v1245_v14, 0.7853982  ;;  %v1596_v13 = vsel %vm1590_vm7, %v1593_v62, %v1595_v36  ;;  %v1239_v0 = vsel %vm1237_vm13, %v2773_v39, %v1238_v54  ;;  %v5578_v54 = vld [vmem:[#allocation29_spill] sm:$0xff]  ;;  %v5579_v36 = vld [vmem:[#allocation23_spill] sm:$0xff] }
 0x16a   :  { %v1242_v35 = vsel %vm1240_vm9, %v1241_v4, %v2775_v22  ;;  %v2526_v44 = vmin.u32 %v1311_v19, %v4420_v32  ;;  %vm1614_vm4 = vc.u32 %v4414_v2, %v4416_v28  ;;  %v4448_v12 = vand.u32 3, %v1130_v29 }
 0x16b   :  { %v1433_v48 = vxor.u32 2147483648, %v1432_v30  ;;  %v1332_v14 = vsel %vm1247_vm15, %v1331_v38, %v1307_v6  ;;  %v1615_v25 = vadd.s32 1, %v4417_v58  ;;  %v4453_v34 = vmul.f32 %v2298_v53, %v932_v43 }
 0x16c   :  { %v4455_v26 = vand.u32 3, %v1442_v11  ;;  %v1313_v39 = vclz %v2526_v44  ;;  %v1612_v22 = vmul.u32 %v1605_v60, %v1596_v13  ;;  %v4459_v4 = vsel %vm1236_vm6, %v1239_v0, %v1242_v35 }
 0x16d   :  { %v1301_v42 = vadd.s32 %v4344_v55, %v4318_v27  ;;  %v1616_v45 = vsel %vm1614_vm4, %v1615_v25, %v4417_v58  ;;  %v5446_v31 = vand.u32 2147483647, %v5577_v61  ;;  %v1334_v51 = vsel %vm4439_vm2, 0, %v1332_v14  ;;  %2401 = vrot.lane.b32.xlu0 %v4453_v34, %s2827_s0 }
 0x16e   :  { %v2527_v6 = vadd.s32 4294967294, %v1313_v39  ;;  %v1617_v10 = vadd.s32 %v1616_v45, %v1612_v22  ;;  %v1469_v62 = vshrl.u32 %v5504_v7, %v5578_v54  ;;  %v1434_v40 = vsel %vm1351_vm14, %v1433_v48, %v1432_v30  ;;  %v5580_v39 = vld [vmem:[#allocation39_spill] sm:$0xff] }
 0x16f   :  { %v1471_v60 = vshrl.u32 %v5506_v5, %v5578_v54  ;;  %v1473_v27 = vshll.u32 %v5506_v5, %v5579_v36  ;;  %v1474_v55 = vshrl.u32 %v5503_v56, %v5578_v54  ;;  %v1470_v29 = vshll.u32 %v5504_v7, %v5579_v36 }
 0x170   :  { %vm2528_vm5 = vcmp.lt.s32.totalorder %v2527_v6, 0  ;;  %v1618_v58 = vadd.s32 536870912, %v1617_v10  ;;  %v1477_v38 = vshrl.u32 %v5464_v49, %v5578_v54  ;;  %v2777_v11 = vpop.eup %2776  ;;  %v1460_v30 = vand.u32 8388607, %v5446_v31 }
 0x171   :  { %v1316_v19 = vsel %vm2528_vm5, 0, %v2527_v6  ;;  %v1475_v43 = vor.u32 %v1474_v55, %v1473_v27  ;;  %v1476_v13 = vshll.u32 %v5503_v56, %v5579_v36  ;;  %vm1136_vm14 = vcmp.eq.s32.totalorder %v4448_v12, 2 }
 0x172   :  { %v1437_v0 = vsel %vm4340_vm3, %v5546_v20, %v1434_v40  ;;  %v1317_v35 = vsub.s32 32, %v1316_v19  ;;  %v1321_v44 = vsub.s32 4294967266, %v1316_v19  ;;  %v1619_v53 = vshrl.u32 %v1618_v58, 30 }
 0x173   :  { %vm1133_vm10 = vcmp.eq.s32.totalorder %v4448_v12, 0  ;;  %v1318_v48 = vshll.u32 %v4420_v32, %v1316_v19  ;;  %v1472_v14 = vor.u32 %v1471_v60, %v1470_v29  ;;  %v1478_v25 = vor.u32 %v1477_v38, %v1476_v13  ;;  %v2779_v22 = vpop.eup %2778  ;;  %v5581_v32 = vld [vmem:[#allocation48_spill] sm:$0xff] }
 0x174   :  { %vm1485_vm0 = vcmp.lt.s32.totalorder %v5580_v39, 1  ;;  %vm1559_vm1 = vcmp.lt.s32.totalorder %v5565_v46, 0  ;;  %vm1233_vm7 = vweird.f32 %v5520_v63  ;;  %v1319_v45 = vshrl.u32 %v1301_v42, %v1317_v35  ;;  %v5582_v60 = vld [vmem:[#allocation40_spill] sm:$0xff] }
 0x175   :  { %v1322_v6 = vadd.s32 127, %v1321_v44  ;;  %v1620_v21 = vshll.u32 %v1619_v53, 30  ;;  %vm1487_vm3 = vcmp.lt.s32.totalorder %v5580_v39, 3  ;;  %v1137_v54 = vxor.u32 2147483648, %v2777_v11 }
 0x176   :  { %v1461_v40 = vor.u32 8388608, %v1460_v30  ;;  %v1497_v36 = vsel %vm1485_vm0, %v1475_v43, %v1478_v25  ;;  %v1499_v27 = vsel %vm1487_vm3, %v5582_v60, %v5581_v32  ;;  %vm1132_vm6 = vcmp.lt.s32.totalorder %v4448_v12, 2 }
 0x177   :  { %v1320_v55 = vor.u32 %v1319_v45, %v1318_v48  ;;  %v1323_v58 = vshll.u32 %v1322_v6, 23  ;;  %v1338_v29 = vadd.s32 3, %v1334_v51  ;;  %v4502_v42 = vsub.s32 %v1617_v10, %v1620_v21  ;;  %v5583_v10 = vld [vmem:[#allocation46_spill] sm:$0xff] }
 0x178   :  { %v1134_v38 = vxor.u32 2147483648, %v2779_v22  ;;  %2780 = vcosq.f32 %v1437_v0  ;;  %vm1486_vm13 = vcmp.lt.s32.totalorder %v5580_v39, 2  ;;  %v1490_v19 = vsel %vm1488_vm8, %v1478_v25, 2102212464 }
 0x179   :  { %v1324_v30 = vor.u32 4788187, %v1323_v58  ;;  %v1623_v13 = vsub.s32 0, %v4502_v42  ;;  %v1489_v35 = vsel %vm1485_vm0, %v1469_v62, %v1472_v14  ;;  %v1500_v44 = vsel %vm1486_vm13, %v1497_v36, %v1499_v27 }
 0x17a   :  { %v1643_v48 = vsub.s32 4, %v1619_v53  ;;  %v1493_v51 = vsel %vm1485_vm0, %v1472_v14, %v1475_v43  ;;  %v1495_v45 = vsel %vm1487_vm3, %v1478_v25, %v5583_v10  ;;  %v1501_v6 = vshll.u32 %v1461_v40, 8 }
 0x17b   :  { %v1325_v21 = vand.u32 2147483647, %v1324_v30  ;;  %v1327_v32 = vcvt.s32.f32 %v1320_v55  ;;  %v2538_v60 = vmin.u32 %v1623_v13, %v4502_v42  ;;  %v1491_v58 = vsel %vm1487_vm3, %v1475_v43, %v1490_v19 }
 0x17c   :  { %v1138_v62 = vsel %vm1136_vm14, %v1137_v54, %v2779_v22  ;;  %2782 = vsinq.f32 %v1437_v0  ;;  %v4522_v36 = vmul.u32.u64.low %v1501_v6, %v1500_v44  ;;  %v4523_v27 = vmul.u32.u64.high %v1501_v6, %v1500_v44, %v4522_v36 }
 0x17d   :  { %v1135_v14 = vsel %vm1133_vm10, %v2777_v11, %v1134_v38  ;;  %v1328_v31 = vmul.f32 %v1327_v32, %v1325_v21  ;;  %v1625_v25 = vclz %v2538_v60  ;;  %v1496_v40 = vsel %vm1486_vm13, %v1493_v51, %v1495_v45 }
 0x17e   :  { %v4532_v55 = vsel %vm1233_vm7, nan, %v4459_v4  ;;  %vm4536_vm8 = vcmp.le.f32.partialorder %v1557_v16, 0.7853982  ;;  %v4542_v0 = vsel %vm1559_vm1, %v1643_v48, %v1619_v53  ;;  %v1492_v11 = vsel %vm1486_vm13, %v1489_v35, %v1491_v58  ;;  %v5586_v4 = vld [vmem:[#allocation8_spill] sm:$0xff]  ;;  %v5587_v35 = vld [vmem:[#allocation30_spill] sm:$0xff] }
 0x17f   :  { %v1329_v22 = vxor.u32 2147483648, %v1328_v31  ;;  %v1613_v54 = vadd.s32 %v4416_v28, %v4414_v2  ;;  %v2539_v63 = vadd.s32 4294967294, %v1625_v25  ;;  %v1765_v38 = vand.u32 2147483647, %v5586_v4 }
 0x180   :  { %v4551_v16 = vsel %vm1132_vm6, %v1135_v14, %v1138_v62  ;;  %v4553_v19 = vand.u32 3, %v1338_v29  ;;  %v4555_v30 = vmul.u32.u64.low %v1501_v6, %v1496_v40  ;;  %v4556_v13 = vmul.u32.u64.high %v1501_v6, %v1496_v40, %v4555_v30 }
 0x181   :  { %v1330_v53 = vsel %vm1247_vm15, %v1329_v22, %v1328_v31  ;;  %vm2540_vm9 = vcmp.lt.s32.totalorder %v2539_v63, 0  ;;  %v1646_v2 = vsel %vm4536_vm8, 0, %v4542_v0  ;;  %v1508_v28 = vmul.u32 %v1501_v6, %v1492_v11 }
 0x182   :  { %v1333_v12 = vsel %vm4439_vm2, %v5557_v24, %v1330_v53  ;;  %v1628_v39 = vsel %vm2540_vm9, 0, %v2539_v63  ;;  %v1772_v29 = vand.u32 8388607, %v1765_v38  ;;  %v1782_v44 = vshll.u32 %v5504_v7, %v5587_v35 }
 0x183   :  { %2784 = vcosq.f32 %v1333_v12  ;;  %v1629_v48 = vsub.s32 32, %v1628_v39  ;;  %v1633_v31 = vsub.s32 4294967266, %v1628_v39  ;;  %vm1510_vm15 = vc.u32 %v4523_v27, %v4555_v30 }
 0x184   :  { %2786 = vsinq.f32 %v1333_v12  ;;  %v1630_v51 = vshll.u32 %v4502_v42, %v1628_v39  ;;  %v1511_v10 = vadd.s32 1, %v4556_v13  ;;  %v1783_v45 = vshrl.u32 %v5506_v5, %v5588_v41 }
 0x185   :  { %v2781_v6 = vpop.eup %2780  ;;  %v1631_v21 = vshrl.u32 %v1613_v54, %v1629_v48  ;;  %v1634_v32 = vadd.s32 127, %v1633_v31  ;;  %v1785_v60 = vshll.u32 %v5506_v5, %v5587_v35  ;;  %v1786_v58 = vshrl.u32 %v5503_v56, %v5588_v41 }
 0x186   :  { %v1512_v62 = vsel %vm1510_vm15, %v1511_v10, %v4556_v13  ;;  %v1784_v36 = vor.u32 %v1783_v45, %v1782_v44  ;;  %v1788_v42 = vshll.u32 %v5503_v56, %v5587_v35  ;;  %v1789_v14 = vshrl.u32 %v5464_v49, %v5588_v41  ;;  %v5589_v44 = vld [vmem:[#allocation44_spill] sm:$0xff] }
 0x187   :  { %vm1445_vm2 = vcmp.eq.s32.totalorder %v4455_v26, 0  ;;  %vm1448_vm4 = vcmp.eq.s32.totalorder %v4455_v26, 2  ;;  %v1632_v25 = vor.u32 %v1631_v21, %v1630_v51  ;;  %v1635_v40 = vshll.u32 %v1634_v32, 23 }
 0x188   :  { %v1513_v11 = vadd.s32 %v1512_v62, %v1508_v28  ;;  %v1787_v22 = vor.u32 %v1786_v58, %v1785_v60  ;;  %vm1129_vm5 = vweird.f32 %v5536_v15  ;;  %v1449_v54 = vxor.u32 2147483648, %v2781_v6  ;;  %v5591_v60 = vld [vmem:[#allocation52_spill] sm:$0xff]  ;;  %v5592_v58 = vld [vmem:[#allocation49_spill] sm:$0xff] }
 0x189   :  { %v1773_v63 = vor.u32 8388608, %v1772_v29  ;;  %v1781_v13 = vshrl.u32 %v5504_v7, %v5588_v41  ;;  %v1790_v53 = vor.u32 %v1789_v14, %v1788_v42  ;;  %v2783_v12 = vpop.eup %2782  ;;  %v1636_v39 = vor.u32 4788187, %v1635_v40  ;;  %v5590_v29 = vld [vmem:[#allocation51_spill] sm:$0xff] }
 0x18a   :  { %v1514_v35 = vadd.s32 536870912, %v1513_v11  ;;  %vm1797_vm14 = vcmp.lt.s32.totalorder %v5589_v44, 1  ;;  %vm1799_vm10 = vcmp.lt.s32.totalorder %v5589_v44, 3  ;;  %vm1455_vm0 = vcmp.lt.s32.totalorder %v5577_v61, 0 }
 0x18b   :  { %vm1444_vm7 = vcmp.lt.s32.totalorder %v4455_v26, 2  ;;  %vm1798_vm3 = vcmp.lt.s32.totalorder %v5589_v44, 2  ;;  %v1805_v28 = vsel %vm1797_vm14, %v1784_v36, %v1787_v22  ;;  %v1807_v48 = vsel %vm1799_vm10, %v1790_v53, %v5590_v29 }
 0x18c   :  { %v1809_v31 = vsel %vm1797_vm14, %v1787_v22, %v1790_v53  ;;  %v1637_v51 = vand.u32 2147483647, %v1636_v39  ;;  %v1639_v10 = vcvt.s32.f32 %v1632_v25  ;;  %v1515_v41 = vshrl.u32 %v1514_v35, 30 }
 0x18d   :  { %v1808_v45 = vsel %vm1798_vm3, %v1805_v28, %v1807_v48  ;;  %v1446_v21 = vxor.u32 2147483648, %v2783_v12  ;;  %v1802_v32 = vsel %vm1800_vm12, %v1790_v53, 2102212464  ;;  %v1811_v62 = vsel %vm1799_vm10, %v5592_v58, %v5591_v60  ;;  %v2313_v48 = vpop.permute.xlu1 %2312 }
 0x18e   :  { %v1813_v42 = vshll.u32 %v1773_v63, 8  ;;  %vm1441_vm6 = vweird.f32 %v5546_v20  ;;  %v1640_v14 = vmul.f32 %v1639_v10, %v1637_v51  ;;  %v1516_v40 = vshll.u32 %v1515_v41, 30 }
 0x18f   :  { %v1801_v25 = vsel %vm1797_vm14, %v1781_v13, %v1784_v36  ;;  %v1812_v39 = vsel %vm1798_vm3, %v1809_v31, %v1811_v62  ;;  %v1539_v58 = vsub.s32 4, %v1515_v41  ;;  %v1803_v51 = vsel %vm1799_vm10, %v1787_v22, %v1802_v32 }
 0x190   :  { %v4616_v35 = vmul.u32.u64.low %v1813_v42, %v1812_v39  ;;  %v4617_v28 = vmul.u32.u64.high %v1813_v42, %v1812_v39, %v4616_v35  ;;  %v4619_v53 = vmul.u32.u64.low %v1813_v42, %v1808_v45  ;;  %v4620_v29 = vmul.u32.u64.high %v1813_v42, %v1808_v45, %v4619_v53  ;;  %v2785_v10 = vpop.eup %2784 }
 0x191   :  { %v1641_v60 = vxor.u32 2147483648, %v1640_v14  ;;  %v4623_v63 = vsub.s32 %v1513_v11, %v1516_v40  ;;  %v4628_v36 = vmul.f32 %v2313_v48, %v4532_v55  ;;  %v1447_v13 = vsel %vm1445_vm2, %v2781_v6, %v1446_v21  ;;  %v2787_v11 = vpop.eup %2786  ;;  %v5596_v40 = vld [vmem:[#allocation12_spill] sm:$0xff] }
 0x192   :  { %v1450_v31 = vsel %vm1448_vm4, %v1449_v54, %v2783_v12  ;;  %v5593_v45 = vand.u32 2147483647, %v5577_v61  ;;  %v1140_v22 = vsel %vm1129_vm5, nan, %v4551_v16  ;;  %vm1341_vm13 = vcmp.eq.s32.totalorder %v4553_v19, 0 }
 0x193   :  { %v1642_v55 = vsel %vm1559_vm1, %v1641_v60, %v1640_v14  ;;  %v1519_v6 = vsub.s32 0, %v4623_v63  ;;  %vm1344_vm9 = vcmp.eq.s32.totalorder %v4553_v19, 2  ;;  %v1650_v12 = vadd.s32 3, %v1646_v2  ;;  %v2308_v2 = vpop.permute.xlu0 %2307  ;;  %2407 = vrot.lane.b32.xlu1 %v4628_v36, %s2827_s0 }
 0x194   :  { %vm4636_vm12 = vcmp.le.f32.partialorder %v5593_v45, 0.7853982  ;;  %v1645_v54 = vsel %vm4536_vm8, %v5565_v46, %v1642_v55  ;;  %v1804_v15 = vsel %vm1798_vm3, %v1801_v25, %v1803_v51  ;;  %v1451_v16 = vsel %vm1444_vm7, %v1447_v13, %v1450_v31  ;;  %v5597_v31 = vld [vmem:[#allocation45_spill] sm:$0xff] }
 0x195   :  { %vm1340_vm1 = vcmp.lt.s32.totalorder %v4553_v19, 2  ;;  %v2534_v21 = vmin.u32 %v1519_v6, %v4623_v63  ;;  %v1540_v32 = vsel %vm1455_vm0, %v1539_v58, %v1515_v41  ;;  %vm1822_vm15 = vc.u32 %v4617_v28, %v4619_v53 }
 0x196   :  { %v1342_v43 = vxor.u32 2147483648, %v2787_v11  ;;  %v1345_v14 = vxor.u32 2147483648, %v2785_v10  ;;  %2788 = vcosq.f32 %v1645_v54  ;;  %v1823_v0 = vadd.s32 1, %v4620_v29 }
 0x197   :  { %2790 = vsinq.f32 %v1645_v54  ;;  %v1521_v44 = vclz %v2534_v21  ;;  %v1820_v26 = vmul.u32 %v1813_v42, %v1804_v15  ;;  %v1661_v25 = vand.u32 2147483647, %v5596_v40 }
 0x198   :  { %v4667_v39 = vmul.f32 %v2308_v2, %v1140_v22  ;;  %v4671_v35 = vsel %vm1441_vm6, nan, %v1451_v16  ;;  %v4673_v41 = vand.u32 3, %v1650_v12  ;;  %v1824_v48 = vsel %vm1822_vm15, %v1823_v0, %v4620_v29  ;;  %v5598_v29 = vld [vmem:[#allocation50_spill] sm:$0xff] }
 0x199   :  { %v1509_v60 = vadd.s32 %v4555_v30, %v4523_v27  ;;  %v2535_v58 = vadd.s32 4294967294, %v1521_v44  ;;  %v1542_v51 = vsel %vm4636_vm12, 0, %v1540_v32  ;;  %v1825_v42 = vadd.s32 %v1824_v48, %v1820_v26 }
 0x19a   :  { %vm1337_vm8 = vweird.f32 %v5557_v24  ;;  %v1343_v13 = vsel %vm1341_vm13, %v2785_v10, %v1342_v43  ;;  %v1346_v20 = vsel %vm1344_vm9, %v1345_v14, %v2787_v11  ;;  %v1681_v45 = vshll.u32 %v5506_v5, %v5597_v31  ;;  %2405 = vrot.lane.b32.xlu0 %v4667_v39, %s2827_s0 }
 0x19b   :  { %v1682_v22 = vshrl.u32 %v5503_v56, %v5598_v29  ;;  %vm2536_vm2 = vcmp.lt.s32.totalorder %v2535_v58, 0  ;;  %v1826_v27 = vadd.s32 536870912, %v1825_v42  ;;  %v1668_v30 = vand.u32 8388607, %v1661_v25 }
 0x19c   :  { %v1685_v55 = vshrl.u32 %v5464_v49, %v5598_v29  ;;  %v1524_v6 = vsel %vm2536_vm2, 0, %v2535_v58  ;;  %v1679_v10 = vshrl.u32 %v5506_v5, %v5598_v29  ;;  %v1684_v11 = vshll.u32 %v5503_v56, %v5597_v31 }
 0x19d   :  { %v1683_v54 = vor.u32 %v1682_v22, %v1681_v45  ;;  %v1525_v12 = vsub.s32 32, %v1524_v6  ;;  %v1529_v15 = vsub.s32 4294967266, %v1524_v6  ;;  %v1827_v16 = vshrl.u32 %v1826_v27, 30 }
 0x19e   :  { %v1678_v21 = vshll.u32 %v5504_v7, %v5597_v31  ;;  %v1347_v32 = vsel %vm1340_vm1, %v1343_v13, %v1346_v20  ;;  %v1526_v43 = vshll.u32 %v4623_v63, %v1524_v6  ;;  %v1686_v14 = vor.u32 %v1685_v55, %v1684_v11  ;;  %v5599_v55 = vld [vmem:[#allocation56_spill] sm:$0xff] }
 0x19f   :  { %vm1693_vm4 = vcmp.lt.s32.totalorder %v3529_v23, 1  ;;  %v1527_v0 = vshrl.u32 %v1509_v60, %v1525_v12  ;;  %v1530_v2 = vadd.s32 127, %v1529_v15  ;;  %v1828_v44 = vshll.u32 %v1827_v16, 30 }
 0x1a0   :  { %vm1695_vm5 = vcmp.lt.s32.totalorder %v3529_v23, 3  ;;  %v1669_v26 = vor.u32 8388608, %v1668_v30  ;;  %v1680_v48 = vor.u32 %v1679_v10, %v1678_v21  ;;  %v1705_v58 = vsel %vm1693_vm4, %v1683_v54, %v1686_v14 }
 0x1a1   :  { %v1707_v19 = vsel %vm1695_vm5, %v3597_v52, %v3681_v33  ;;  %vm1767_vm14 = vcmp.lt.s32.totalorder %v5586_v4, 0  ;;  %vm1656_vm10 = vcmp.eq.s32.totalorder %v4673_v41, 2  ;;  %v1528_v63 = vor.u32 %v1527_v0, %v1526_v43 }
 0x1a2   :  { %v1531_v60 = vshll.u32 %v1530_v2, 23  ;;  %v4712_v13 = vsub.s32 %v1825_v42, %v1828_v44  ;;  %vm1653_vm7 = vcmp.eq.s32.totalorder %v4673_v41, 0  ;;  %v1546_v20 = vadd.s32 3, %v1542_v51  ;;  %v2323_v2 = vpop.permute.xlu1 %2322 }
 0x1a3   :  { %v1677_v31 = vshrl.u32 %v5504_v7, %v5598_v29  ;;  %vm1694_vm3 = vcmp.lt.s32.totalorder %v3529_v23, 2  ;;  %v1698_v45 = vsel %vm1696_vm11, %v1686_v14, 2102212464  ;;  %v2789_v52 = vpop.eup %2788  ;;  %v1348_v33 = vsel %vm1337_vm8, nan, %v1347_v32 }
 0x1a4   :  { %v1532_v22 = vor.u32 4788187, %v1531_v60  ;;  %v1831_v27 = vsub.s32 0, %v4712_v13  ;;  %v1708_v42 = vsel %vm1694_vm3, %v1705_v58, %v1707_v19  ;;  %v2791_v30 = vpop.eup %2790  ;;  %v1701_v29 = vsel %vm1693_vm4, %v1680_v48, %v1683_v54  ;;  %v2318_v19 = vpop.permute.xlu0 %2317 }
 0x1a5   :  { %v1697_v51 = vsel %vm1693_vm4, %v1677_v31, %v1680_v48  ;;  %v1703_v6 = vsel %vm1695_vm5, %v1686_v14, %v5599_v55  ;;  %v1709_v10 = vshll.u32 %v1669_v26, 8  ;;  %v1535_v11 = vcvt.s32.f32 %v1528_v63  ;;  %v5603_v55 = vld [vmem:[#allocation54_spill] sm:$0xff] }
 0x1a6   :  { %v1533_v24 = vand.u32 2147483647, %v1532_v22  ;;  %v2546_v12 = vmin.u32 %v1831_v27, %v4712_v13  ;;  %v1699_v15 = vsel %vm1695_vm5, %v1683_v54, %v1698_v45  ;;  %v1657_v21 = vxor.u32 2147483648, %v2789_v52 }
 0x1a7   :  { %v1851_v32 = vsub.s32 4, %v1827_v16  ;;  %v4735_v43 = vmul.u32.u64.low %v1709_v10, %v1708_v42  ;;  %v4736_v0 = vmul.u32.u64.high %v1709_v10, %v1708_v42, %v4735_v43  ;;  %v1654_v44 = vxor.u32 2147483648, %v2791_v30 }
 0x1a8   :  { %v1536_v48 = vmul.f32 %v1535_v11, %v1533_v24  ;;  %v1833_v58 = vclz %v2546_v12  ;;  %v1704_v14 = vsel %vm1694_vm3, %v1701_v29, %v1703_v6  ;;  %v4741_v26 = vmul.f32 %v2323_v2, %v4671_v35  ;;  %v5604_v11 = vld [vmem:[#allocation55_spill] sm:$0xff] }
 0x1a9   :  { %v4743_v63 = vand.u32 3, %v1546_v20  ;;  %v1821_v54 = vadd.s32 %v4619_v53, %v4617_v28  ;;  %v1700_v60 = vsel %vm1694_vm3, %v1697_v51, %v1699_v15  ;;  %v4749_v31 = vmul.f32 %v2318_v19, %v1348_v33  ;;  %v5602_v20 = vld [vmem:[#allocation19_spill] sm:$0xff] }
 0x1aa   :  { %vm1652_vm11 = vcmp.lt.s32.totalorder %v4673_v41, 2  ;;  %v1537_v45 = vxor.u32 2147483648, %v1536_v48  ;;  %vm4754_vm6 = vcmp.le.f32.partialorder %v1765_v38, 0.7853982  ;;  %v2547_v35 = vadd.s32 4294967294, %v1833_v58  ;;  %2411 = vrot.lane.b32.xlu1 %v4741_v26, %s2827_s0 }
 0x1ab   :  { %v1973_v27 = vand.u32 2147483647, %v5602_v20  ;;  %v1658_v28 = vsel %vm1656_vm10, %v1657_v21, %v2791_v30  ;;  %v4763_v23 = vsel %vm1767_vm14, %v1851_v32, %v1827_v16  ;;  %v1655_v38 = vsel %vm1653_vm7, %v2789_v52, %v1654_v44  ;;  %2409 = vrot.lane.b32.xlu0 %v4749_v31, %s2827_s0 }
 0x1ac   :  { %v4765_v53 = vmul.u32.u64.low %v1709_v10, %v1704_v14  ;;  %v4766_v33 = vmul.u32.u64.high %v1709_v10, %v1704_v14, %v4765_v53  ;;  %v1538_v42 = vsel %vm1455_vm0, %v1537_v45, %v1536_v48  ;;  %vm2548_vm13 = vcmp.lt.s32.totalorder %v2547_v35, 0 }
 0x1ad   :  { %v1716_v51 = vmul.u32 %v1709_v10, %v1700_v60  ;;  %v1541_v30 = vsel %vm4636_vm12, %v5577_v61, %v1538_v42  ;;  %v1836_v29 = vsel %vm2548_vm13, 0, %v2547_v35  ;;  %v1980_v16 = vand.u32 8388607, %v1973_v27  ;;  %v5605_v42 = vld [vmem:[#allocation53_spill] sm:$0xff] }
 0x1ae   :  { %v1990_v6 = vshll.u32 %v5504_v7, %v5603_v55  ;;  %vm1649_vm9 = vweird.f32 %v5565_v46  ;;  %2792 = vcosq.f32 %v1541_v30  ;;  %v1837_v52 = vsub.s32 32, %v1836_v29 }
 0x1af   :  { %v1841_v24 = vsub.s32 4294967266, %v1836_v29  ;;  %vm1718_vm0 = vc.u32 %v4736_v0, %v4765_v53  ;;  %2794 = vsinq.f32 %v1541_v30  ;;  %v1838_v10 = vshll.u32 %v4712_v13, %v1836_v29 }
 0x1b0   :  { %v1719_v62 = vadd.s32 1, %v4766_v33  ;;  %v1991_v12 = vshrl.u32 %v5506_v5, %v5604_v11  ;;  %v1839_v15 = vshrl.u32 %v1821_v54, %v1837_v52  ;;  %v1993_v32 = vshll.u32 %v5506_v5, %v5603_v55 }
 0x1b1   :  { %v1842_v21 = vadd.s32 127, %v1841_v24  ;;  %v1994_v13 = vshrl.u32 %v5503_v56, %v5604_v11  ;;  %v1996_v44 = vshll.u32 %v5503_v56, %v5603_v55  ;;  %v1997_v9 = vshrl.u32 %v5464_v49, %v5604_v11  ;;  %v5608_v55 = vld [vmem:[#allocation61_spill] sm:$0xff] }
 0x1b2   :  { %v1720_v43 = vsel %vm1718_vm0, %v1719_v62, %v4766_v33  ;;  %v1992_v2 = vor.u32 %v1991_v12, %v1990_v6  ;;  %v1840_v48 = vor.u32 %v1839_v15, %v1838_v10  ;;  %v1659_v19 = vsel %vm1652_vm11, %v1655_v38, %v1658_v28  ;;  %v5606_v28 = vld [vmem:[#allocation60_spill] sm:$0xff]  ;;  %v5609_v6 = vld [vmem:[#allocation58_spill] sm:$0xff] }
 0x1b3   :  { %v1843_v58 = vshll.u32 %v1842_v21, 23  ;;  %v1721_v18 = vadd.s32 %v1720_v43, %v1716_v51  ;;  %v1995_v14 = vor.u32 %v1994_v13, %v1993_v32  ;;  %v1854_v54 = vsel %vm4754_vm6, 0, %v4763_v23 }
 0x1b4   :  { %v1981_v60 = vor.u32 8388608, %v1980_v16  ;;  %v1998_v45 = vor.u32 %v1997_v9, %v1996_v44  ;;  %vm2005_vm12 = vcmp.lt.s32.totalorder %v5605_v42, 1  ;;  %vm2007_vm1 = vcmp.lt.s32.totalorder %v5605_v42, 3 }
 0x1b5   :  { %v1844_v35 = vor.u32 4788187, %v1843_v58  ;;  %v1722_v33 = vadd.s32 536870912, %v1721_v18  ;;  %vm2006_vm15 = vcmp.lt.s32.totalorder %v5605_v42, 2  ;;  %v2013_v41 = vsel %vm2005_vm12, %v1992_v2, %v1995_v14  ;;  %v2333_v58 = vpop.permute.xlu1 %2332 }
 0x1b6   :  { %v2015_v23 = vsel %vm2007_vm1, %v1998_v45, %v5606_v28  ;;  %v2017_v34 = vsel %vm2005_vm12, %v1995_v14, %v1998_v45  ;;  %v1847_v59 = vcvt.s32.f32 %v1840_v48  ;;  %v1660_v29 = vsel %vm1649_vm9, nan, %v1659_v19 }
 0x1b7   :  { %v1845_v38 = vand.u32 2147483647, %v1844_v35  ;;  %v4819_v51 = vshrl.u32 %v1722_v33, 30  ;;  %v2016_v30 = vsel %vm2006_vm15, %v2013_v41, %v2015_v23  ;;  %vm5607_vm8 = vcmp.lt.s32.totalorder %v5605_v42, 4 }
 0x1b8   :  { %v2010_v16 = vsel %vm5607_vm8, %v1998_v45, 2102212464  ;;  %v2019_v52 = vsel %vm2007_vm1, %v5609_v6, %v5608_v55  ;;  %v2021_v24 = vshll.u32 %v1981_v60, 8  ;;  %v1989_v46 = vshrl.u32 %v5504_v7, %v5604_v11 }
 0x1b9   :  { %v1848_v10 = vmul.f32 %v1847_v59, %v1845_v38  ;;  %v1724_v62 = vshll.u32 %v4819_v51, 30  ;;  %v2020_v12 = vsel %vm2006_vm15, %v2017_v34, %v2019_v52  ;;  %v2011_v44 = vsel %vm2007_vm1, %v1995_v14, %v2010_v16  ;;  %v2328_v38 = vpop.permute.xlu0 %2327 }
 0x1ba   :  { %v4840_v15 = vmul.u32.u64.low %v2021_v24, %v2020_v12  ;;  %v4841_v21 = vmul.u32.u64.high %v2021_v24, %v2020_v12, %v4840_v15  ;;  %v4843_v32 = vmul.u32.u64.low %v2021_v24, %v2016_v30  ;;  %v4844_v13 = vmul.u32.u64.high %v2021_v24, %v2016_v30, %v4843_v32 }
 0x1bb   :  { %v1849_v39 = vxor.u32 2147483648, %v1848_v10  ;;  %v4847_v43 = vsub.s32 %v1721_v18, %v1724_v62  ;;  %v2009_v36 = vsel %vm2005_vm12, %v1989_v46, %v1992_v2  ;;  %v2793_v11 = vpop.eup %2792  ;;  %v4855_v9 = vshll.u32 %v5464_v49, %v4004_v1  ;;  %v5612_v62 = vld [vmem:[#allocation57_spill] sm:$0xff] }
 0x1bc   :  { %v4859_v48 = vshrl.u32 %v5467_v17, %v4236_v57  ;;  %vm1549_vm2 = vcmp.eq.s32.totalorder %v4743_v63, 0  ;;  %vm1552_vm4 = vcmp.eq.s32.totalorder %v4743_v63, 2  ;;  %v2795_v2 = vpop.eup %2794  ;;  %v1553_v18 = vxor.u32 2147483648, %v2793_v11 }
 0x1bd   :  { %v1850_v14 = vsel %vm1767_vm14, %v1849_v39, %v1848_v10  ;;  %v1858_v19 = vadd.s32 3, %v1854_v54  ;;  %v1727_v60 = vsub.s32 0, %v4847_v43  ;;  %v2374_v45 = vmul.f32 %v2333_v58, %v1660_v29  ;;  %v5610_v29 = vld [vmem:[#allocation31_spill] sm:$0xff] }
 0x1be   :  { %v1550_v35 = vxor.u32 2147483648, %v2795_v2  ;;  %v1853_v33 = vsel %vm4754_vm6, %v5586_v4, %v1850_v14  ;;  %v2012_v31 = vsel %vm2006_vm15, %v2009_v36, %v2011_v44  ;;  %v1554_v41 = vsel %vm1552_vm4, %v1553_v18, %v2795_v2 }
 0x1bf   :  { %2796 = vcosq.f32 %v1853_v33  ;;  %v2542_v26 = vmin.u32 %v1727_v60, %v4847_v43  ;;  %vm2030_vm5 = vc.u32 %v4841_v21, %v4843_v32  ;;  %vm1548_vm14 = vcmp.lt.s32.totalorder %v4743_v63, 2  ;;  %2415 = vrot.lane.b32.xlu1 %v2374_v45, %s2827_s0 }
 0x1c0   :  { %v1551_v54 = vsel %vm1549_vm2, %v2793_v11, %v1550_v35  ;;  %2798 = vsinq.f32 %v1853_v33  ;;  %v2031_v28 = vadd.s32 1, %v4844_v13  ;;  %vm1545_vm10 = vweird.f32 %v5577_v61 }
 0x1c1   :  { %v1555_v22 = vsel %vm1548_vm14, %v1551_v54, %v1554_v41  ;;  %v1729_v42 = vclz %v2542_v26  ;;  %v2028_v23 = vmul.u32 %v2021_v24, %v2012_v31  ;;  %v4884_v59 = vand.u32 3, %v1858_v19  ;;  %v5611_v24 = vld [vmem:[#allocation59_spill] sm:$0xff] }
 0x1c2   :  { %v1556_v34 = vsel %vm1545_vm10, nan, %v1555_v22  ;;  %v2032_v30 = vsel %vm2030_vm5, %v2031_v28, %v4844_v13  ;;  %v1869_v16 = vand.u32 2147483647, %v5610_v29  ;;  %vm1663_vm7 = vcmp.lt.s32.totalorder %v5596_v40, 0 }
 0x1c3   :  { %v4891_v63 = vshrl.u32 %v5465_v47, %v4236_v57  ;;  %v2373_v55 = vmul.f32 %v2328_v38, %v1556_v34  ;;  %v2543_v6 = vadd.s32 4294967294, %v1729_v42  ;;  %v2033_v61 = vadd.s32 %v2032_v30, %v2028_v23 }
 0x1c4   :  { %v1717_v52 = vadd.s32 %v4765_v53, %v4736_v0  ;;  %v1887_v10 = vshrl.u32 %v5506_v5, %v5611_v24  ;;  %v1889_v46 = vshll.u32 %v5506_v5, %v5612_v62  ;;  %v1890_v12 = vshrl.u32 %v5503_v56, %v5611_v24 }
 0x1c5   :  { %vm2544_vm3 = vcmp.lt.s32.totalorder %v2543_v6, 0  ;;  %v2034_v15 = vadd.s32 536870912, %v2033_v61  ;;  %v1886_v47 = vshll.u32 %v5504_v7, %v5612_v62  ;;  %v1893_v13 = vshrl.u32 %v5464_v49, %v5611_v24  ;;  %2413 = vrot.lane.b32.xlu0 %v2373_v55, %s2827_s0 }
 0x1c6   :  { %vm1864_vm11 = vcmp.eq.s32.totalorder %v4884_v59, 2  ;;  %v1732_v0 = vsel %vm2544_vm3, 0, %v2543_v6  ;;  %v1876_v53 = vand.u32 8388607, %v1869_v16  ;;  %v1891_v39 = vor.u32 %v1890_v12, %v1889_v46 }
 0x1c7   :  { %v1892_v36 = vshll.u32 %v5503_v56, %v5612_v62  ;;  %vm1861_vm6 = vcmp.eq.s32.totalorder %v4884_v59, 0  ;;  %vm4914_vm13 = vcmp.le.f32.partialorder %v1661_v25, 0.7853982  ;;  %v1733_v11 = vsub.s32 32, %v1732_v0 }
 0x1c8   :  { %v1737_v2 = vsub.s32 4294967266, %v1732_v0  ;;  %v1747_v58 = vsub.s32 4, %v4819_v51  ;;  %v4919_v18 = vshrl.u32 %v2034_v15, 30  ;;  %vm1860_vm9 = vcmp.lt.s32.totalorder %v4884_v59, 2 }
 0x1c9   :  { %v1734_v14 = vshll.u32 %v4847_v43, %v1732_v0  ;;  %v1888_v19 = vor.u32 %v1887_v10, %v1886_v47  ;;  %v1894_v60 = vor.u32 %v1893_v13, %v1892_v36  ;;  %vm1901_vm0 = vcmp.lt.s32.totalorder %v3691_v3, 1 }
 0x1ca   :  { %vm1857_vm12 = vweird.f32 %v5586_v4  ;;  %v1735_v25 = vshrl.u32 %v1717_v52, %v1733_v11  ;;  %v1738_v45 = vadd.s32 127, %v1737_v2  ;;  %v2036_v35 = vshll.u32 %v4919_v18, 30 }
 0x1cb   :  { %vm1903_vm1 = vcmp.lt.s32.totalorder %v3691_v3, 3  ;;  %v1877_v33 = vor.u32 8388608, %v1876_v53  ;;  %v1885_v31 = vshrl.u32 %v5504_v7, %v5611_v24  ;;  %v1913_v41 = vsel %vm1901_vm0, %v1891_v39, %v1894_v60 }
 0x1cc   :  { %v1915_v43 = vsel %vm1903_vm1, %v3780_v8, %v3973_v50  ;;  %v1736_v26 = vor.u32 %v1735_v25, %v1734_v14  ;;  %v1739_v54 = vshll.u32 %v1738_v45, 23  ;;  %v4935_v28 = vsub.s32 %v2033_v61, %v2036_v35  ;;  %v2797_v42 = vpop.eup %2796  ;;  %v2343_v14 = vpop.permute.xlu1 %2342  ;;  %v5616_v45 = vld [vmem:[#allocation41_spill] sm:$0xff] }
 0x1cd   :  { %vm5615_vm15 = vcmp.lt.s32.totalorder %v3691_v3, 4  ;;  %v1748_v23 = vsel %vm1663_vm7, %v1747_v58, %v4819_v51  ;;  %vm1902_vm8 = vcmp.lt.s32.totalorder %v3691_v3, 2  ;;  %v1905_v34 = vsel %vm1901_vm0, %v1885_v31, %v1888_v19  ;;  %v2799_v50 = vpop.eup %2798 }
 0x1ce   :  { %v1906_v22 = vsel %vm5615_vm15, %v1894_v60, 2102212464  ;;  %v1909_v8 = vsel %vm1901_vm0, %v1888_v19, %v1891_v39  ;;  %v1865_v38 = vxor.u32 2147483648, %v2797_v42  ;;  %v1740_v30 = vor.u32 4788187, %v1739_v54  ;;  %v5617_v54 = vld [vmem:[#allocation63_spill] sm:$0xff] }
 0x1cf   :  { %v2039_v55 = vsub.s32 0, %v4935_v28  ;;  %v1916_v6 = vsel %vm1902_vm8, %v1913_v41, %v1915_v43  ;;  %v1862_v61 = vxor.u32 2147483648, %v2799_v50  ;;  %v1907_v51 = vsel %vm1903_vm1, %v1891_v39, %v1906_v22 }
 0x1d0   :  { %v1911_v52 = vsel %vm1903_vm1, %v1894_v60, %v3817_v37  ;;  %v1917_v24 = vshll.u32 %v1877_v33, 8  ;;  %v1866_v10 = vsel %vm1864_vm11, %v1865_v38, %v2799_v50  ;;  %v1741_v62 = vand.u32 2147483647, %v1740_v30 }
 0x1d1   :  { %v1743_v46 = vcvt.s32.f32 %v1736_v26  ;;  %v2554_v12 = vmin.u32 %v2039_v55, %v4935_v28  ;;  %v1863_v15 = vsel %vm1861_vm6, %v2797_v42, %v1862_v61  ;;  %v1750_v47 = vsel %vm4914_vm13, 0, %v1748_v23  ;;  %v5618_v23 = vld [vmem:[#allocation64_spill] sm:$0xff] }
 0x1d2   :  { %v4962_v13 = vmul.u32.u64.low %v1917_v24, %v1916_v6  ;;  %v4963_v0 = vmul.u32.u64.high %v1917_v24, %v1916_v6, %v4962_v13  ;;  %v1867_v37 = vsel %vm1860_vm9, %v1863_v15, %v1866_v10  ;;  %v1912_v36 = vsel %vm1902_vm8, %v1909_v8, %v1911_v52 }
 0x1d3   :  { %v1744_v53 = vmul.f32 %v1743_v46, %v1741_v62  ;;  %v2041_v39 = vclz %v2554_v12  ;;  %v4971_v11 = vor.u32 %v4859_v48, %v4855_v9  ;;  %v4975_v2 = vshll.u32 %v5467_v17, %v4004_v1 }
 0x1d4   :  { %v1868_v58 = vsel %vm1857_vm12, nan, %v1867_v37  ;;  %v1908_v59 = vsel %vm1902_vm8, %v1905_v34, %v1907_v51  ;;  %v2181_v35 = vand.u32 2147483647, %v5616_v45  ;;  %v1754_v48 = vadd.s32 3, %v1750_v47  ;;  %v5619_v37 = vld [vmem:[#allocation62_spill] sm:$0xff] }
 0x1d5   :  { %v2376_v19 = vmul.f32 %v2343_v14, %v1868_v58  ;;  %v1745_v60 = vxor.u32 2147483648, %v1744_v53  ;;  %v2555_v25 = vadd.s32 4294967294, %v2041_v39  ;;  %v2108_v9 = vor.u32 %v4891_v63, %v4975_v2  ;;  %v5620_v39 = vld [vmem:[#allocation11_spill] sm:$0xff] }
 0x1d6   :  { %v4984_v33 = vmul.u32.u64.low %v1917_v24, %v1912_v36  ;;  %v4985_v31 = vmul.u32.u64.high %v1917_v24, %v1912_v36, %v4984_v33  ;;  %v2029_v3 = vadd.s32 %v4843_v32, %v4841_v21  ;;  %v1924_v4 = vmul.u32 %v1917_v24, %v1908_v59 }
 0x1d7   :  { %v1746_v17 = vsel %vm1663_vm7, %v1745_v60, %v1744_v53  ;;  %vm2556_vm2 = vcmp.lt.s32.totalorder %v2555_v25, 0  ;;  %2419 = vrot.lane.b32.xlu1 %v2376_v19, %s2827_s0  ;;  %v2188_v26 = vand.u32 8388607, %v2181_v35  ;;  %v2198_v22 = vshll.u32 %v5504_v7, %v5617_v54 }
 0x1d8   :  { %v1749_v41 = vsel %vm4914_vm13, %v5596_v40, %v1746_v17  ;;  %v2044_v43 = vsel %vm2556_vm2, 0, %v2555_v25  ;;  %vm1975_vm4 = vcmp.lt.s32.totalorder %v5602_v20, 0  ;;  %vm1926_vm5 = vc.u32 %v4963_v0, %v4984_v33  ;;  %v5623_v17 = vld [vmem:[#allocation2_spill] sm:$0xff] }
 0x1d9   :  { %2800 = vcosq.f32 %v1749_v41  ;;  %v2045_v42 = vsub.s32 32, %v2044_v43  ;;  %v2049_v21 = vsub.s32 4294967266, %v2044_v43  ;;  %v2046_v32 = vshll.u32 %v4935_v28, %v2044_v43 }
 0x1da   :  { %2802 = vsinq.f32 %v1749_v41  ;;  %v1927_v44 = vadd.s32 1, %v4985_v31  ;;  %v2199_v34 = vshrl.u32 %v5506_v5, %v5618_v23  ;;  %v2201_v38 = vshll.u32 %v5506_v5, %v5617_v54 }
 0x1db   :  { %v2047_v8 = vshrl.u32 %v2029_v3, %v2045_v42  ;;  %v2050_v50 = vadd.s32 127, %v2049_v21  ;;  %v2202_v30 = vshrl.u32 %v5503_v56, %v5618_v23  ;;  %v2204_v61 = vshll.u32 %v5503_v56, %v5617_v54 }
 0x1dc   :  { %v1928_v55 = vsel %vm1926_vm5, %v1927_v44, %v4985_v31  ;;  %v2200_v6 = vor.u32 %v2199_v34, %v2198_v22  ;;  %v2205_v28 = vshrl.u32 %v5464_v49, %v5618_v23  ;;  %v1755_v62 = vand.u32 3, %v1754_v48  ;;  %v5622_v31 = vld [vmem:[#allocation24_spill] sm:$0xff] }
 0x1dd   :  { %v2048_v51 = vor.u32 %v2047_v8, %v2046_v32  ;;  %v2051_v52 = vshll.u32 %v2050_v50, 23  ;;  %v1929_v24 = vadd.s32 %v1928_v55, %v1924_v4  ;;  %v2203_v10 = vor.u32 %v2202_v30, %v2201_v38 }
 0x1de   :  { %v2059_v46 = vsub.s32 4, %v4919_v18  ;;  %v2189_v12 = vor.u32 8388608, %v2188_v26  ;;  %v2206_v15 = vor.u32 %v2205_v28, %v2204_v61  ;;  %vm2213_vm14 = vcmp.lt.s32.totalorder %v5619_v37, 1 }
 0x1df   :  { %v2052_v47 = vor.u32 4788187, %v2051_v52  ;;  %v1930_v13 = vadd.s32 536870912, %v1929_v24  ;;  %vm2215_vm10 = vcmp.lt.s32.totalorder %v5619_v37, 3  ;;  %vm2214_vm7 = vcmp.lt.s32.totalorder %v5619_v37, 2 }
 0x1e0   :  { %v2221_v53 = vsel %vm2213_vm14, %v2200_v6, %v2203_v10  ;;  %v2223_v36 = vsel %vm2215_vm10, %v2206_v15, %v5620_v39  ;;  %v2225_v58 = vsel %vm2213_vm14, %v2203_v10, %v2206_v15  ;;  %v2055_v59 = vcvt.s32.f32 %v2048_v51  ;;  %v5627_v39 = vld [vmem:[#allocation9_spill] sm:$0xff] }
 0x1e1   :  { %v2053_v14 = vand.u32 2147483647, %v2052_v47  ;;  %v5027_v19 = vshrl.u32 %v1930_v13, 30  ;;  %v2224_v60 = vsel %vm2214_vm7, %v2221_v53, %v2223_v36  ;;  %v2060_v25 = vsel %vm1975_vm4, %v2059_v46, %v4919_v18  ;;  %v5626_v53 = vld [vmem:[#allocation47_spill] sm:$0xff] }
 0x1e2   :  { %vm5621_vm3 = vcmp.lt.s32.totalorder %v5619_v37, 4  ;;  %v2227_v3 = vsel %vm2215_vm10, %v5623_v17, %v5622_v31  ;;  %v2229_v4 = vshll.u32 %v2189_v12, 8  ;;  %v2197_v26 = vshrl.u32 %v5504_v7, %v5618_v23 }
 0x1e3   :  { %v2218_v48 = vsel %vm5621_vm3, %v2206_v15, 2102212464  ;;  %v2056_v41 = vmul.f32 %v2055_v59, %v2053_v14  ;;  %v1932_v43 = vshll.u32 %v5027_v19, 30  ;;  %v2228_v54 = vsel %vm2214_vm7, %v2225_v58, %v2227_v3  ;;  %v2338_v58 = vpop.permute.xlu0 %2337 }
 0x1e4   :  { %v5045_v22 = vmul.u32.u64.low %v2229_v4, %v2228_v54  ;;  %v5046_v18 = vmul.u32.u64.high %v2229_v4, %v2228_v54, %v5045_v22  ;;  %v5048_v42 = vmul.u32.u64.low %v2229_v4, %v2224_v60  ;;  %v5049_v21 = vmul.u32.u64.high %v2229_v4, %v2224_v60, %v5048_v42 }
 0x1e5   :  { %v2057_v32 = vxor.u32 2147483648, %v2056_v41  ;;  %v5052_v44 = vsub.s32 %v1929_v24, %v1932_v43  ;;  %v2217_v34 = vsel %vm2213_vm14, %v2197_v26, %v2200_v6  ;;  %v2219_v8 = vsel %vm2215_vm10, %v2203_v10, %v2218_v48 }
 0x1e6   :  { %v2801_v23 = vpop.eup %2800  ;;  %vm1753_vm11 = vweird.f32 %v5596_v40  ;;  %vm1756_vm6 = vcmp.lt.s32.totalorder %v1755_v62, 2  ;;  %vm1757_vm13 = vcmp.eq.s32.totalorder %v1755_v62, 0  ;;  %vm5061_vm9 = vcmp.le.f32.partialorder %v1973_v27, 0.7853982 }
 0x1e7   :  { %v2803_v38 = vpop.eup %2802  ;;  %v1761_v30 = vxor.u32 2147483648, %v2801_v23  ;;  %v2058_v55 = vsel %vm1975_vm4, %v2057_v32, %v2056_v41  ;;  %v2062_v6 = vsel %vm5061_vm9, 0, %v2060_v25  ;;  %v1935_v61 = vsub.s32 0, %v5052_v44 }
 0x1e8   :  { %v1758_v28 = vxor.u32 2147483648, %v2803_v38  ;;  %vm1760_vm0 = vcmp.eq.s32.totalorder %v1755_v62, 2  ;;  %v2061_v51 = vsel %vm5061_vm9, %v5602_v20, %v2058_v55  ;;  %v2220_v27 = vsel %vm2214_vm7, %v2217_v34, %v2219_v8 }
 0x1e9   :  { %v1762_v52 = vsel %vm1760_vm0, %v1761_v30, %v2803_v38  ;;  %2804 = vcosq.f32 %v2061_v51  ;;  %v2550_v24 = vmin.u32 %v1935_v61, %v5052_v44  ;;  %vm2238_vm12 = vc.u32 %v5046_v18, %v5048_v42 }
 0x1ea   :  { %v1759_v10 = vsel %vm1757_vm13, %v2801_v23, %v1758_v28  ;;  %2806 = vsinq.f32 %v2061_v51  ;;  %v2066_v46 = vadd.s32 3, %v2062_v6  ;;  %v2239_v12 = vadd.s32 1, %v5049_v21 }
 0x1eb   :  { %v1763_v15 = vsel %vm1756_vm6, %v1759_v10, %v1762_v52  ;;  %v1937_v47 = vclz %v2550_v24  ;;  %v2236_v13 = vmul.u32 %v2229_v4, %v2220_v27  ;;  %v2077_v37 = vand.u32 2147483647, %v5626_v53 }
 0x1ec   :  { %vm2112_vm1 = vcmp.lt.s32.totalorder %v5627_v39, 4  ;;  %v1764_v36 = vsel %vm1753_vm11, nan, %v1763_v15  ;;  %v2240_v14 = vsel %vm2238_vm12, %v2239_v12, %v5049_v21  ;;  %v2067_v31 = vand.u32 3, %v2066_v46 }
 0x1ed   :  { %v2118_v59 = vsel %vm2112_vm1, %v4971_v11, 920167782  ;;  %v2375_v60 = vmul.f32 %v2338_v58, %v1764_v36  ;;  %v2551_v25 = vadd.s32 4294967294, %v1937_v47  ;;  %v2241_v62 = vadd.s32 %v2240_v14, %v2236_v13 }
 0x1ee   :  { %v2122_v48 = vsel %vm2112_vm1, %v2108_v9, 1326507024  ;;  %v2097_v40 = vshll.u32 %v5506_v5, %v4004_v1  ;;  %v2098_v17 = vshrl.u32 %v5503_v56, %v4236_v57  ;;  %v2084_v4 = vand.u32 8388607, %v2077_v37 }
 0x1ef   :  { %vm2552_vm15 = vcmp.lt.s32.totalorder %v2551_v25, 0  ;;  %v2242_v3 = vadd.s32 536870912, %v2241_v62  ;;  %v2101_v41 = vshrl.u32 %v5464_v49, %v4236_v57  ;;  %2417 = vrot.lane.b32.xlu0 %v2375_v60, %s2827_s0  ;;  %v2095_v2 = vshrl.u32 %v5506_v5, %v4236_v57 }
 0x1f0   :  { %v1940_v63 = vsel %vm2552_vm15, 0, %v2551_v25  ;;  %v2099_v9 = vor.u32 %v2098_v17, %v2097_v40  ;;  %v2100_v43 = vshll.u32 %v5503_v56, %v4004_v1  ;;  %v1925_v26 = vadd.s32 %v4984_v33, %v4963_v0 }
 0x1f1   :  { %v1941_v54 = vsub.s32 32, %v1940_v63  ;;  %v1945_v22 = vsub.s32 4294967266, %v1940_v63  ;;  %v5109_v21 = vshrl.u32 %v2242_v3, 30  ;;  %v1942_v32 = vshll.u32 %v5052_v44, %v1940_v63 }
 0x1f2   :  { %v2094_v49 = vshll.u32 %v5504_v7, %v4004_v1  ;;  %v2102_v34 = vor.u32 %v2101_v41, %v2100_v43  ;;  %vm2109_vm8 = vcmp.lt.s32.totalorder %v5627_v39, 1  ;;  %vm2065_vm2 = vweird.f32 %v5602_v20 }
 0x1f3   :  { %v1943_v5 = vshrl.u32 %v1925_v26, %v1941_v54  ;;  %v1946_v8 = vadd.s32 127, %v1945_v22  ;;  %v2244_v56 = vshll.u32 %v5109_v21, 30  ;;  %vm2111_vm4 = vcmp.lt.s32.totalorder %v5627_v39, 3 }
 0x1f4   :  { %v2085_v0 = vor.u32 8388608, %v2084_v4  ;;  %v2096_v33 = vor.u32 %v2095_v2, %v2094_v49  ;;  %v2121_v23 = vsel %vm2109_vm8, %v2099_v9, %v2102_v34  ;;  %v2123_v1 = vsel %vm2111_vm4, %v4971_v11, %v2122_v48 }
 0x1f5   :  { %vm2068_vm5 = vcmp.lt.s32.totalorder %v2067_v31, 2  ;;  %v1944_v44 = vor.u32 %v1943_v5, %v1942_v32  ;;  %v1947_v50 = vshll.u32 %v1946_v8, 23  ;;  %v2245_v38 = vsub.s32 %v2241_v62, %v2244_v56  ;;  %v2353_v62 = vpop.permute.xlu1 %2352 }
 0x1f6   :  { %v2805_v30 = vpop.eup %2804  ;;  %vm2069_vm14 = vcmp.eq.s32.totalorder %v2067_v31, 0  ;;  %vm2072_vm10 = vcmp.eq.s32.totalorder %v2067_v31, 2  ;;  %v2093_v55 = vshrl.u32 %v5504_v7, %v4236_v57  ;;  %vm2110_vm7 = vcmp.lt.s32.totalorder %v5627_v39, 2 }
 0x1f7   :  { %v2807_v6 = vpop.eup %2806  ;;  %v2073_v61 = vxor.u32 2147483648, %v2805_v30  ;;  %v1948_v28 = vor.u32 4788187, %v1947_v50  ;;  %v2247_v51 = vsub.s32 0, %v2245_v38  ;;  %v2124_v27 = vsel %vm2110_vm7, %v2121_v23, %v2123_v1 }
 0x1f8   :  { %v2070_v11 = vxor.u32 2147483648, %v2807_v6  ;;  %v2117_v52 = vsel %vm2109_vm8, %v2096_v33, %v2099_v9  ;;  %v2119_v24 = vsel %vm2111_vm4, %v2102_v34, %v2118_v59  ;;  %v2125_v10 = vshll.u32 %v2085_v0, 8 }
 0x1f9   :  { %v2074_v46 = vsel %vm2072_vm10, %v2073_v61, %v2807_v6  ;;  %v1949_v12 = vand.u32 2147483647, %v1948_v28  ;;  %v1951_v7 = vcvt.s32.f32 %v1944_v44  ;;  %v2562_v57 = vmin.u32 %v2247_v51, %v2245_v38 }
 0x1fa   :  { %v2071_v15 = vsel %vm2069_vm14, %v2805_v30, %v2070_v11  ;;  %v2114_v47 = vsel %vm2112_vm1, %v2102_v34, 2102212464  ;;  %v5135_v13 = vmul.u32.u64.low %v2125_v10, %v2124_v27  ;;  %v5136_v36 = vmul.u32.u64.high %v2125_v10, %v2124_v27, %v5135_v13  ;;  %v2610_v11 = vpop.f32.mrf.mxu0 }
 0x1fb   :  { %v2075_v58 = vsel %vm2068_vm5, %v2071_v15, %v2074_v46  ;;  %v1952_v14 = vmul.f32 %v1951_v7, %v1949_v12  ;;  %v2249_v60 = vclz %v2562_v57  ;;  %v2120_v59 = vsel %vm2110_vm7, %v2117_v52, %v2119_v24 }
 0x1fc   :  { %v2076_v25 = vsel %vm2065_vm2, nan, %v2075_v58  ;;  %v2113_v48 = vsel %vm2109_vm8, %v2093_v55, %v2096_v33  ;;  %v2115_v4 = vsel %vm2111_vm4, %v2099_v9, %v2114_v47  ;;  %vm1871_vm3 = vcmp.lt.s32.totalorder %v5610_v29, 0  ;;  %v167_v58 = vpop.f32.mrf.mxu0 }
 0x1fd   :  { %v2378_v40 = vmul.f32 %v2353_v62, %v2076_v25  ;;  %v1953_v17 = vxor.u32 2147483648, %v1952_v14  ;;  %v2563_v3 = vadd.s32 4294967294, %v2249_v60  ;;  %v1955_v31 = vsub.s32 4, %v5027_v19  ;;  %v2348_v25 = vpop.permute.xlu0 %2347 }
 0x1fe   :  { %v5149_v41 = vmul.u32.u64.low %v2125_v10, %v2120_v59  ;;  %v5150_v63 = vmul.u32.u64.high %v2125_v10, %v2120_v59, %v5149_v41  ;;  %vm5155_vm11 = vcmp.le.f32.partialorder %v1869_v16, 0.7853982  ;;  %v2237_v43 = vadd.s32 %v5048_v42, %v5046_v18 }
 0x1ff   :  { %v1954_v2 = vsel %vm1871_vm3, %v1953_v17, %v1952_v14  ;;  %vm2564_vm6 = vcmp.lt.s32.totalorder %v2563_v3, 0  ;;  %2423 = vrot.lane.b32.xlu1 %v2378_v40, %s2827_s0  ;;  %v2116_v16 = vsel %vm2110_vm7, %v2113_v48, %v2115_v4  ;;  %v1956_v32 = vsel %vm1871_vm3, %v1955_v31, %v5027_v19  ;;  %v2613_v17 = vpop.f32.mrf.mxu0 }
 0x200   :  { %v1957_v9 = vsel %vm5155_vm11, %v5610_v29, %v1954_v2  ;;  %v2252_v26 = vsel %vm2564_vm6, 0, %v2563_v3  ;;  %vm2134_vm13 = vc.u32 %v5136_v36, %v5149_v41  ;;  %v2135_v49 = vadd.s32 1, %v5150_v63 }
 0x201   :  { %2808 = vcosq.f32 %v1957_v9  ;;  %v2253_v54 = vsub.s32 32, %v2252_v26  ;;  %v2257_v22 = vsub.s32 4294967266, %v2252_v26  ;;  %v2254_v34 = vshll.u32 %v2245_v38, %v2252_v26 }
 0x202   :  { %2810 = vsinq.f32 %v1957_v9  ;;  %v2132_v42 = vmul.u32 %v2125_v10, %v2116_v16  ;;  %v2136_v39 = vsel %vm2134_vm13, %v2135_v49, %v5150_v63  ;;  %v1958_v8 = vsel %vm5155_vm11, 0, %v1956_v32  ;;  %v177_v63 = vpop.f32.mrf.mxu0 }
 0x203   :  { %v2255_v5 = vshrl.u32 %v2237_v43, %v2253_v54  ;;  %v2258_v18 = vadd.s32 127, %v2257_v22  ;;  %v1962_v44 = vadd.s32 3, %v1958_v8  ;;  %vm2183_vm9 = vcmp.lt.s32.totalorder %v5616_v45, 0  ;;  %v5206_v22 = vld [vmem:[%s5333_s4] ss:$0 sm:$0xff] }
 0x204   :  { %v2137_v33 = vadd.s32 %v2136_v39, %v2132_v42  ;;  %v2267_v27 = vsub.s32 4, %v5109_v21  ;;  %vm5185_vm0 = vcmp.le.f32.partialorder %v2181_v35, 0.7853982  ;;  %vm1961_vm8 = vweird.f32 %v5610_v29  ;;  %v2616_v32 = vpop.f32.mrf.mxu0 }
 0x205   :  { %v2256_v56 = vor.u32 %v2255_v5, %v2254_v34  ;;  %v2259_v0 = vshll.u32 %v2258_v18, 23  ;;  %v1963_v6 = vand.u32 3, %v1962_v44  ;;  %v5208_v18 = vpop.permute.xlu0 %2357  ;;  %v173_v42 = vadd.f32 %v2610_v11, %v5206_v22 }
 0x206   :  { %v2138_v1 = vadd.s32 536870912, %v2137_v33  ;;  %v2268_v35 = vsel %vm2183_vm9, %v2267_v27, %v5109_v21  ;;  %v2133_v21 = vadd.s32 %v5149_v41, %v5136_v36  ;;  %v2363_v41 = vpop.permute.xlu1 %2362  ;;  %vm2445_vm10 = vcmask 261120  }
 0x207   :  { %v2260_v23 = vor.u32 4788187, %v2259_v0  ;;  %v2263_v19 = vcvt.s32.f32 %v2256_v56  ;;  %vm1968_vm12 = vcmp.eq.s32.totalorder %v1963_v6, 2  ;;  %vm1965_vm1 = vcmp.eq.s32.totalorder %v1963_v6, 0 }
 0x208   :  { %v5178_v30 = vshrl.u32 %v2138_v1, 30  ;;  %vm1964_vm15 = vcmp.lt.s32.totalorder %v1963_v6, 2  ;;  %v2270_v48 = vsel %vm5185_vm0, 0, %v2268_v35  ;;  %v168_v0 = vadd.f32 %v5206_v22, %v167_v58 }
 0x209   :  { %v2261_v50 = vand.u32 2147483647, %v2260_v23  ;;  %v2274_v3 = vadd.s32 3, %v2270_v48  ;;  %v187_v23 = vpop.f32.mrf.mxu0  ;;  %vm2273_vm7 = vweird.f32 %v5616_v45  ;;  %vm2462_vm3 = vcmask 326656  }
 0x20a   :  { %v2140_v38 = vshll.u32 %v5178_v30, 30  ;;  %v2400_v6 = vpop.permute.xlu1 %2399  ;;  %vm2079_vm11 = vcmp.lt.s32.totalorder %v5626_v53, 0  ;;  %vm5229_vm6 = vcmp.le.f32.partialorder %v2077_v37, 0.7853982  ;;  %v188_v37 = vadd.f32 %v5206_v22, %v187_v23 }
 0x20b   :  { %v2264_v55 = vmul.f32 %v2263_v19, %v2261_v50  ;;  %v2275_v43 = vand.u32 3, %v2274_v3  ;;  %v2398_v19 = vpop.permute.xlu0 %2397  ;;  %v2447_v27 = vsel %vm2445_vm10, %v173_v42, %v2400_v6  ;;  %v2619_v11 = vpop.f32.mrf.mxu0 }
 0x20c   :  { %v2141_v28 = vsub.s32 %v2137_v33, %v2140_v38  ;;  %v178_v38 = vadd.f32 %v5206_v22, %v177_v63  ;;  %2464 = vst.msk [vmem:[%s5334_s5 + $0x8] sm:$0xff] %vm2462_vm3, %v2447_v27  ;;  %v203_v58 = vadd.f32 %v2619_v11, %v5206_v22 }
 0x20d   :  { %v2265_v61 = vxor.u32 2147483648, %v2264_v55  ;;  %vm2277_vm4 = vcmp.eq.s32.totalorder %v2275_v43, 0  ;;  %vm2280_vm5 = vcmp.eq.s32.totalorder %v2275_v43, 2  ;;  %vm2276_vm14 = vcmp.lt.s32.totalorder %v2275_v43, 2 }
 0x20e   :  { %v2809_v51 = vpop.eup %2808  ;;  %v2143_v12 = vsub.s32 0, %v2141_v28 }
 0x20f   :  { %v2811_v52 = vpop.eup %2810  ;;  %v1969_v24 = vxor.u32 2147483648, %v2809_v51  ;;  %v2266_v46 = vsel %vm2183_vm9, %v2265_v61, %v2264_v55  ;;  %v183_v55 = vadd.f32 %v2613_v17, %v5206_v22 }
 0x210   :  { %v1966_v7 = vxor.u32 2147483648, %v2811_v52  ;;  %v2269_v57 = vsel %vm5185_vm0, %v5616_v45, %v2266_v46  ;;  %v2558_v47 = vmin.u32 %v2143_v12, %v2141_v28  ;;  %v2163_v45 = vsub.s32 4, %v5178_v30  ;;  %v2402_v46 = vpop.permute.xlu0 %2401 }
 0x211   :  { %v1970_v15 = vsel %vm1968_vm12, %v1969_v24, %v2811_v52  ;;  %2812 = vcosq.f32 %v2269_v57  ;;  %v193_v12 = vadd.f32 %v2616_v32, %v5206_v22  ;;  %vm2169_vm12 = vweird.f32 %v5626_v53 }
 0x212   :  { %v1967_v13 = vsel %vm1965_vm1, %v2809_v51, %v1966_v7  ;;  %2814 = vsinq.f32 %v2269_v57  ;;  %v2145_v60 = vclz %v2558_v47  ;;  %v2446_v51 = vsel %vm2445_vm10, %v168_v0, %v2398_v19  ;;  %v2404_v7 = vpop.permute.xlu1 %2403 }
 0x213   :  { %v1971_v14 = vsel %vm1964_vm15, %v1967_v13, %v1970_v15  ;;  %2463 = vst.msk [vmem:[%s5334_s5] sm:$0xff] %vm2462_vm3, %v2446_v51  ;;  %v2448_v57 = vsel %vm2445_vm10, %v178_v38, %v2402_v46  ;;  %v2449_v15 = vsel %vm2445_vm10, %v183_v55, %v2404_v7  ;;  %v2164_v47 = vsel %vm2079_vm11, %v2163_v45, %v5178_v30  ;;  %v197_v13 = vpop.f32.mrf.mxu0 }
 0x214   :  { %v1972_v59 = vsel %vm1961_vm8, nan, %v1971_v14  ;;  %v2559_v40 = vadd.s32 4294967294, %v2145_v60  ;;  %2465 = vst.msk [vmem:[%s5334_s5 + $0x10] sm:$0xff] %vm2462_vm3, %v2448_v57  ;;  %2466 = vst.msk [vmem:[%s5334_s5 + $0x18] sm:$0xff] %vm2462_vm3, %v2449_v15  ;;  %v2406_v35 = vpop.permute.xlu0 %2405  ;;  %v2166_v60 = vsel %vm5229_vm6, 0, %v2164_v47 }
 0x215   :  { %v2377_v62 = vmul.f32 %v2348_v25, %v1972_v59  ;;  %v2450_v30 = vsel %vm2445_vm10, %v188_v37, %v2406_v35  ;;  %v198_v59 = vadd.f32 %v5206_v22, %v197_v13  ;;  %v2170_v48 = vadd.s32 3, %v2166_v60 }
 0x216   :  { %vm2560_vm2 = vcmp.lt.s32.totalorder %v2559_v40, 0  ;;  %v2408_v14 = vpop.permute.xlu1 %2407  ;;  %2467 = vst.msk [vmem:[%s5334_s5 + $0x20] sm:$0xff] %vm2462_vm3, %v2450_v30 }
 0x217   :  { %2421 = vrot.lane.b32.xlu0 %v2377_v62, %s2827_s0  ;;  %v2148_v4 = vsel %vm2560_vm2, 0, %v2559_v40  ;;  %v2451_v25 = vsel %vm2445_vm10, %v193_v12, %v2408_v14  ;;  %v2622_v62 = vpop.f32.mrf.mxu1 }
 0x218   :  { %v2149_v31 = vsub.s32 32, %v2148_v4  ;;  %v2153_v29 = vsub.s32 4294967266, %v2148_v4  ;;  %v2150_v20 = vshll.u32 %v2141_v28, %v2148_v4  ;;  %2468 = vst.msk [vmem:[%s5334_s5 + $0x28] sm:$0xff] %vm2462_vm3, %v2451_v25 }
 0x21a   :  { %v2151_v2 = vshrl.u32 %v2133_v21, %v2149_v31  ;;  %v2154_v9 = vadd.s32 127, %v2153_v29  ;;  %v213_v21 = vadd.f32 %v2622_v62, %v5206_v22  ;;  %v207_v31 = vpop.f32.mrf.mxu1  ;;  %v2171_v29 = vand.u32 3, %v2170_v48 }
 0x21c   :  { %v2152_v26 = vor.u32 %v2151_v2, %v2150_v20  ;;  %v2155_v16 = vshll.u32 %v2154_v9, 23  ;;  %v2412_v17 = vpop.permute.xlu1 %2411  ;;  %v208_v9 = vadd.f32 %v5206_v22, %v207_v31  ;;  %vm2176_vm13 = vcmp.eq.s32.totalorder %v2171_v29, 2  ;;  %v2625_v42 = vpop.f32.mrf.mxu1 }
 0x21d   :  { %v2410_v40 = vpop.permute.xlu0 %2409  ;;  %v2453_v4 = vsel %vm2445_vm10, %v203_v58, %v2412_v17  ;;  %vm2173_vm9 = vcmp.eq.s32.totalorder %v2171_v29, 0  ;;  %vm2172_vm0 = vcmp.lt.s32.totalorder %v2171_v29, 2 }
 0x21e   :  { %v2813_v54 = vpop.eup %2812  ;;  %v2156_v5 = vor.u32 4788187, %v2155_v16  ;;  %v2159_v56 = vcvt.s32.f32 %v2152_v26  ;;  %v2452_v3 = vsel %vm2445_vm10, %v198_v59, %v2410_v40  ;;  %2470 = vst.msk [vmem:[%s5334_s5 + $0x38] sm:$0xff] %vm2462_vm3, %v2453_v4 }
 0x21f   :  { %v2815_v49 = vpop.eup %2814  ;;  %v2281_v34 = vxor.u32 2147483648, %v2813_v54  ;;  %2469 = vst.msk [vmem:[%s5334_s5 + $0x30] sm:$0xff] %vm2462_vm3, %v2452_v3 }
 0x220   :  { %v2278_v36 = vxor.u32 2147483648, %v2815_v49  ;;  %v2157_v8 = vand.u32 2147483647, %v2156_v5 }
 0x221   :  { %v2282_v39 = vsel %vm2280_vm5, %v2281_v34, %v2815_v49 }
 0x222   :  { %v2279_v33 = vsel %vm2277_vm4, %v2813_v54, %v2278_v36  ;;  %v2160_v44 = vmul.f32 %v2159_v56, %v2157_v8 }
 0x223   :  { %v2283_v1 = vsel %vm2276_vm14, %v2279_v33, %v2282_v39  ;;  %v223_v39 = vadd.f32 %v2625_v42, %v5206_v22 }
 0x224   :  { %v2284_v50 = vsel %vm2273_vm7, nan, %v2283_v1  ;;  %v2161_v28 = vxor.u32 2147483648, %v2160_v44 }
 0x225   :  { %v2380_v61 = vmul.f32 %v2363_v41, %v2284_v50 }
 0x226   :  { %v2162_v24 = vsel %vm2079_vm11, %v2161_v28, %v2160_v44 }
 0x227   :  { %2427 = vrot.lane.b32.xlu1 %v2380_v61, %s2827_s0  ;;  %v2165_v10 = vsel %vm5229_vm6, %v5626_v53, %v2162_v24  ;;  %v217_v53 = vpop.f32.mrf.mxu1 }
 0x228   :  { %2816 = vcosq.f32 %v2165_v10  ;;  %v218_v0 = vadd.f32 %v5206_v22, %v217_v53 }
 0x229   :  { %2818 = vsinq.f32 %v2165_v10 }
 0x231   :  { %v2416_v63 = vpop.permute.xlu1 %2415 }
 0x232   :  { %v2455_v20 = vsel %vm2445_vm10, %v213_v21, %v2416_v63 }
 0x233   :  { %2472 = vst.msk [vmem:[%s5334_s5 + $0x48] sm:$0xff] %vm2462_vm3, %v2455_v20 }
 0x235   :  { %v2817_v2 = vpop.eup %2816 }
 0x236   :  { %v2819_v43 = vpop.eup %2818  ;;  %v2177_v26 = vxor.u32 2147483648, %v2817_v2 }
 0x237   :  { %v2174_v16 = vxor.u32 2147483648, %v2819_v43  ;;  %v2414_v32 = vpop.permute.xlu0 %2413 }
 0x238   :  { %v2178_v54 = vsel %vm2176_vm13, %v2177_v26, %v2819_v43  ;;  %v2454_v34 = vsel %vm2445_vm10, %v208_v9, %v2414_v32 }
 0x239   :  { %v2175_v49 = vsel %vm2173_vm9, %v2817_v2, %v2174_v16  ;;  %2471 = vst.msk [vmem:[%s5334_s5 + $0x40] sm:$0xff] %vm2462_vm3, %v2454_v34 }
 0x23a   :  { %v2179_v5 = vsel %vm2172_vm0, %v2175_v49, %v2178_v54 }
 0x23b   :  { %v2180_v36 = vsel %vm2169_vm12, nan, %v2179_v5 }
 0x23c   :  { %v2379_v41 = vmul.f32 %v5208_v18, %v2180_v36  ;;  %v2628_v18 = vpop.f32.mrf.mxu1 }
 0x23d   :  { %v233_v1 = vadd.f32 %v2628_v18, %v5206_v22 }
 0x23e   :  { %2425 = vrot.lane.b32.xlu0 %v2379_v41, %s2827_s0  ;;  %v227_v19 = vpop.f32.mrf.mxu1 }
 0x23f   :  { %v228_v55 = vadd.f32 %v5206_v22, %v227_v19 }
 0x240   :  { %v2631_v61 = vpop.f32.mrf.mxu1 }
 0x241   :  { %v243_v28 = vadd.f32 %v2631_v61, %v5206_v22 }
 0x242   :  { %v237_v45 = vpop.f32.mrf.mxu1 }
 0x243   :  { %v238_v11 = vadd.f32 %v5206_v22, %v237_v45 }
 0x249   :  { %v2420_v8 = vpop.permute.xlu1 %2419 }
 0x24a   :  { %v2457_v56 = vsel %vm2445_vm10, %v223_v39, %v2420_v8 }
 0x24b   :  { %2474 = vst.msk [vmem:[%s5334_s5 + $0x58] sm:$0xff] %vm2462_vm3, %v2457_v56 }
 0x261   :  { %v2418_v33 = vpop.permute.xlu0 %2417 }
 0x262   :  { %v2456_v23 = vsel %vm2445_vm10, %v218_v0, %v2418_v33 }
 0x263   :  { %2473 = vst.msk [vmem:[%s5334_s5 + $0x50] sm:$0xff] %vm2462_vm3, %v2456_v23 }
 0x271   :  { %v2424_v44 = vpop.permute.xlu1 %2423 }
 0x272   :  { %v2459_v50 = vsel %vm2445_vm10, %v233_v1, %v2424_v44 }
 0x273   :  { %2476 = vst.msk [vmem:[%s5334_s5 + $0x68] sm:$0xff] %vm2462_vm3, %v2459_v50 }
 0x289   :  { %v2422_v38 = vpop.permute.xlu0 %2421 }
 0x28a   :  { %v2458_v6 = vsel %vm2445_vm10, %v228_v55, %v2422_v38 }
 0x28b   :  { %2475 = vst.msk [vmem:[%s5334_s5 + $0x60] sm:$0xff] %vm2462_vm3, %v2458_v6 }
 0x299   :  { %v2428_v51 = vpop.permute.xlu1 %2427 }
 0x29a   :  { %v2461_v27 = vsel %vm2445_vm10, %v243_v28, %v2428_v51 }
 0x29b   :  { %2478 = vst.msk [vmem:[%s5334_s5 + $0x78] sm:$0xff] %vm2462_vm3, %v2461_v27 }
 0x2b0   :  { %v2426_v52 = vpop.permute.xlu0 %2425 }
 0x2b1   :  { %v2460_v24 = vsel %vm2445_vm10, %v238_v11, %v2426_v52 }
 0x2b2   :  { %2477 = vst.msk [vmem:[%s5334_s5 + $0x70] sm:$0xff] %vm2462_vm3, %v2460_v24 }

</bundles_post_ra>
